<compile_context>
chip_gen: v7x
topology: tpu7x:2x2x1
jax: 0.10.0
libtpu: 0.0.40
codegen_flags: <defaults>
</compile_context>

<pallas_src>
import functools

import jax
import jax.numpy as jnp
import numpy as np
from jax.experimental import pallas as pl
from jax.experimental.pallas import tpu as pltpu


def _convlstm_kernel(x_ref, h_ref, c_ref, wx_ref, wh_ref, mask_ref, b_ref,
                     h_out_ref, c_out_ref, *, shifts):
    """One grid step = one batch element x one block of hidden channels.

    x_ref:     (1, cin_x_pad, Np)        flattened input frame (input dtype)
    h_ref:     (1, hid, Np)              flattened current hidden state (all channels)
    c_ref:     (1, hblk, Np)             current cell state, this channel block (f32)
    wx_ref:    (taps, 4*hblk, cin_x_pad) conv weights acting on x   (op dtype)
    wh_ref:    (taps, 4*hblk, hid)       conv weights acting on h   (op dtype)
    mask_ref:  (taps, 1, Np)             0/1 boundary masks per tap (op dtype)
    b_ref:     (4*hblk, 1)               conv bias (f32)
    h_out_ref: (1, hblk, Np)             next hidden state (input dtype)
    c_out_ref: (1, hblk, Np)             next cell state (f32)
    """
    hid_l = c_ref.shape[1]
    n_lanes = x_ref.shape[2]
    op_dtype = wx_ref.dtype

    x_op = x_ref[0].astype(op_dtype)      # (cin_x_pad, Np)
    h_op = h_ref[0].astype(op_dtype)      # (hid,       Np)

    # 'same'-padded conv, one tap at a time: lane-roll the flattened image,
    # zero the out-of-image lanes, accumulate a small-K MXU matmul per tap.
    acc = jnp.zeros((4 * hid_l, n_lanes), jnp.float32)
    for t, shift in enumerate(shifts):    # statically unrolled (kh*kw taps)
        m = mask_ref[t]                                        # (1, Np)
        xt = x_op if shift == 0 else pltpu.roll(x_op, shift=shift, axis=1)
        ht = h_op if shift == 0 else pltpu.roll(h_op, shift=shift, axis=1)
        acc = acc + jnp.dot(wx_ref[t], xt * m,
                            preferred_element_type=jnp.float32)
        acc = acc + jnp.dot(wh_ref[t], ht * m,
                            preferred_element_type=jnp.float32)
    acc = acc + b_ref[...]                                     # bias broadcast

    # Gate order matches torch.split(combined_conv, hidden_dim, dim=1):
    # rows are [ i | f | o | g ]; every slice start is a multiple of 8.
    i = jax.nn.sigmoid(acc[:hid_l])
    f = jax.nn.sigmoid(acc[hid_l:2 * hid_l])
    o = jax.nn.sigmoid(acc[2 * hid_l:3 * hid_l])
    g = jnp.tanh(acc[3 * hid_l:])

    c_cur = c_ref[0]                                           # (hblk, Np) f32
    c_next = f * c_cur + i * g
    h_next = o * jnp.tanh(c_next)

    # Lane-dense (unmasked) stores, already in flattened-NCHW layout.
    h_out_ref[0] = h_next.astype(h_out_ref.dtype)
    c_out_ref[0] = c_next.astype(c_out_ref.dtype)


def conv_lstm_cell_forward(x_nchw, h_nchw, c_nchw, weight, bias,
                           kernel_size=(3, 3), conv_dtype=None):
    """Pallas ConvLSTMCell.forward.

    x_nchw: (B, input_dim, H, W)
    h_nchw, c_nchw: (B, hidden_dim, H, W)
    weight: (4*hidden_dim, input_dim + hidden_dim, kh, kw)   (PyTorch OIHW)
    bias:   (4*hidden_dim,) or None
    conv_dtype: optional dtype for the MXU operands (e.g. jnp.bfloat16).  The
                cast happens inside the kernel (no extra HBM traffic);
                None keeps full input precision.  Gate math is always f32.
    Returns (h_next, c_next) in NCHW; c_next is always float32.
    """
    kh, kw = kernel_size
    if kh % 2 != 1 or kw % 2 != 1:
        raise ValueError(f"kernel_size must be odd for 'same' padding: {kernel_size}")
    ph, pw = kh // 2, kw // 2
    B, cin_x, H, W = x_nchw.shape
    hid = h_nchw.shape[1]
    cin = cin_x + hid
    if hid % 8 != 0:
        raise ValueError("hidden_dim must be a multiple of 8 so the per-gate "
                         f"sublane slices stay tile-aligned; got {hid}")
    if weight.shape != (4 * hid, cin, kh, kw):
        raise ValueError(f"weight shape {weight.shape} != {(4 * hid, cin, kh, kw)}")

    n_taps = kh * kw
    N = H * W
    Np = ((N + 127) // 128) * 128          # lane-dense spatial extent
    cin_xp = ((cin_x + 7) // 8) * 8        # sublane-aligned K for the x matmul

    out_h_dtype = x_nchw.dtype
    op_dtype = jnp.dtype(conv_dtype) if conv_dtype is not None else jnp.dtype(x_nchw.dtype)

    # Split over hidden-channel blocks only when needed to keep >= 2 parallel
    # grid steps (v7x has 2 TensorCores sharing the "parallel" grid axes).
    num_hblk = 2 if (B == 1 and hid % 16 == 0) else 1
    hblk = hid // num_hblk

    # ---- wrapper glue: reshapes / zero pads only (no im2col, no concat) ----
    x_flat = jnp.pad(x_nchw.reshape(B, cin_x, N),
                     ((0, 0), (0, cin_xp - cin_x), (0, Np - N)))
    h_flat = jnp.pad(h_nchw.reshape(B, hid, N), ((0, 0), (0, 0), (0, Np - N)))
    c_flat = jnp.pad(c_nchw.reshape(B, hid, N).astype(jnp.float32),
                     ((0, 0), (0, 0), (0, Np - N)))

    # Weight rows are [i|f|o|g] x hid.  Reorder gate-interleaved per hidden
    # block (so one contiguous 4*hblk row block = all four gates of one
    # channel block), split the input-channel axis into x / h parts, and put
    # the tap index in front.
    w4 = weight.reshape(4, num_hblk, hblk, cin, kh, kw)
    w4 = jnp.transpose(w4, (1, 0, 2, 3, 4, 5)).reshape(4 * hid, cin, kh, kw)
    w_taps = jnp.transpose(w4, (2, 3, 0, 1)).reshape(n_taps, 4 * hid, cin)
    w_x = jnp.pad(w_taps[:, :, :cin_x],
                  ((0, 0), (0, 0), (0, cin_xp - cin_x))).astype(op_dtype)
    w_h = w_taps[:, :, cin_x:].astype(op_dtype)

    if bias is None:
        bias = jnp.zeros((4 * hid,), jnp.float32)
    b4 = jnp.asarray(bias, jnp.float32).reshape(4, num_hblk, hblk)
    b_col = jnp.transpose(b4, (1, 0, 2)).reshape(4 * hid, 1)

    # Per-tap lane shifts and boundary masks (static, built with numpy).
    n_idx = np.arange(Np)
    yy = n_idx // W
    xx = n_idx % W
    shifts = []
    masks = np.zeros((n_taps, 1, Np), np.float32)
    t = 0
    for dy in range(kh):
        for dx in range(kw):
            off = (dy - ph) * W + (dx - pw)      # flat offset of this tap
            shifts.append(int((-off) % Np))      # tap[n] = image[n + off]
            yv = yy + (dy - ph)
            xv = xx + (dx - pw)
            masks[t, 0] = ((n_idx < N) & (yv >= 0) & (yv < H)
                           & (xv >= 0) & (xv < W)).astype(np.float32)
            t += 1
    mask_arr = jnp.asarray(masks, dtype=op_dtype)

    grid = (B, num_hblk)
    kernel = functools.partial(_convlstm_kernel, shifts=tuple(shifts))

    # Rough per-step working set -> scoped-VMEM limit (double-buffered
    # streamed blocks + resident weights/masks + f32 temporaries).
    x_it = jnp.dtype(x_nchw.dtype).itemsize
    h_it = jnp.dtype(h_nchw.dtype).itemsize
    op_it = jnp.dtype(op_dtype).itemsize
    streamed = Np * (cin_xp * x_it + hid * h_it + hblk * (4 + x_it + 4))
    resident = (n_taps * 4 * hblk * (cin_xp + hid) * op_it
                + n_taps * 8 * Np * op_it + 4 * hblk * 4)
    temps = 3 * (4 * hblk * Np * 4) + 4 * (cin_xp + hid) * Np * op_it
    est = 2 * streamed + resident + temps
    vmem_limit = int(min(max(2 * est, 32 * 1024 * 1024), 64 * 1024 * 1024))

    h_next, c_next = pl.pallas_call(
        kernel,
        out_shape=(
            jax.ShapeDtypeStruct((B, hid, Np), out_h_dtype),
            jax.ShapeDtypeStruct((B, hid, Np), jnp.float32),
        ),
        grid=grid,
        in_specs=[
            pl.BlockSpec((1, cin_xp, Np), lambda b, hb: (b, 0, 0)),          # x
            pl.BlockSpec((1, hid, Np), lambda b, hb: (b, 0, 0)),             # h_cur
            pl.BlockSpec((1, hblk, Np), lambda b, hb: (b, hb, 0)),           # c_cur
            pl.BlockSpec((n_taps, 4 * hblk, cin_xp), lambda b, hb: (0, hb, 0)),  # w_x
            pl.BlockSpec((n_taps, 4 * hblk, hid), lambda b, hb: (0, hb, 0)),     # w_h
            pl.BlockSpec((n_taps, 1, Np), lambda b, hb: (0, 0, 0)),          # masks
            pl.BlockSpec((4 * hblk, 1), lambda b, hb: (hb, 0)),              # bias
        ],
        out_specs=(
            pl.BlockSpec((1, hblk, Np), lambda b, hb: (b, hb, 0)),
            pl.BlockSpec((1, hblk, Np), lambda b, hb: (b, hb, 0)),
        ),
        compiler_params=pltpu.CompilerParams(
            dimension_semantics=("parallel", "parallel"),
            vmem_limit_bytes=vmem_limit),
    )(x_flat, h_flat, c_flat, w_x, w_h, mask_arr, b_col)

    if Np != N:
        h_next = h_next[:, :, :N]
        c_next = c_next[:, :, :N]
    return h_next.reshape(B, hid, H, W), c_next.reshape(B, hid, H, W)


def _reference_forward(x, h, c, weight, bias, kernel_size=(3, 3)):
    """Pure-JAX reference mirroring the PyTorch module (NCHW, f32)."""
    kh, kw = kernel_size
    combined = jnp.concatenate([x, h], axis=1)
    conv = jax.lax.conv_general_dilated(
        combined, weight, window_strides=(1, 1),
        padding=((kh // 2, kh // 2), (kw // 2, kw // 2)),
        dimension_numbers=("NCHW", "OIHW", "NCHW"))
    conv = conv + bias.reshape(1, -1, 1, 1)
    cc_i, cc_f, cc_o, cc_g = jnp.split(conv, 4, axis=1)
    i = jax.nn.sigmoid(cc_i)
    f = jax.nn.sigmoid(cc_f)
    o = jax.nn.sigmoid(cc_o)
    g = jnp.tanh(cc_g)
    c_next = f * c + i * g
    h_next = o * jnp.tanh(c_next)
    return h_next, c_next


if __name__ == "__main__":
    def _run_case(B, input_dim, hidden_dim, H, W, conv_dtype, rtol, atol):
        kernel_size = (3, 3)
        cin = input_dim + hidden_dim
        key = jax.random.PRNGKey(0)
        kx, kh_, kc, kw_, kb = jax.random.split(key, 5)
        x = jax.random.normal(kx, (B, input_dim, H, W), jnp.float32)
        h_cur = jax.random.normal(kh_, (B, hidden_dim, H, W), jnp.float32)
        c_cur = jax.random.normal(kc, (B, hidden_dim, H, W), jnp.float32)
        weight = 0.1 * jax.random.normal(
            kw_, (4 * hidden_dim, cin, kernel_size[0], kernel_size[1]),
            jnp.float32)
        bias = 0.1 * jax.random.normal(kb, (4 * hidden_dim,), jnp.float32)

        h_want, c_want = _reference_forward(x, h_cur, c_cur, weight, bias,
                                            kernel_size)
        h_got, c_got = conv_lstm_cell_forward(x, h_cur, c_cur, weight, bias,
                                              kernel_size,
                                              conv_dtype=conv_dtype)
        jax.block_until_ready((h_got, c_got))
        np.testing.assert_allclose(np.asarray(h_got), np.asarray(h_want),
                                   rtol=rtol, atol=atol)
        np.testing.assert_allclose(np.asarray(c_got), np.asarray(c_want),
                                   rtol=rtol, atol=atol)

    # Primary shape implied by the module: batch=2, input_dim=4,
    # hidden_dim=32, 16x16 spatial, 3x3 kernel.
    _run_case(2, 4, 32, 16, 16, None, rtol=3e-4, atol=3e-4)          # f32 MXU operands
    _run_case(2, 4, 32, 16, 16, jnp.bfloat16, rtol=5e-2, atol=5e-2)  # bf16 MXU operands
    # B=1 exercises the hidden-channel grid split (keeps both v7x TCs busy)
    # plus lane padding / boundary masks for a non-multiple-of-128 H*W.
    _run_case(1, 3, 16, 10, 10, None, rtol=3e-4, atol=3e-4)
    print("KERNEL_OK")
</pallas_src>

<mosaic_0001>
module attributes {stable_mosaic.version = 11 : i64} {
  func.func @_convlstm_kernel(%arg0: i32, %arg1: i32, %arg2: memref<1x8x256xf32, #tpu.memory_space<vmem>>, %arg3: memref<1x32x256xf32, #tpu.memory_space<vmem>>, %arg4: memref<1x32x256xf32, #tpu.memory_space<vmem>>, %arg5: memref<9x128x8xf32, #tpu.memory_space<vmem>>, %arg6: memref<9x128x32xf32, #tpu.memory_space<vmem>>, %arg7: memref<9x1x256xf32, #tpu.memory_space<vmem>>, %arg8: memref<128x1xf32, #tpu.memory_space<vmem>>, %arg9: memref<1x32x256xf32, #tpu.memory_space<vmem>>, %arg10: memref<1x32x256xf32, #tpu.memory_space<vmem>>) attributes {dimension_semantics = [#tpu.dimension_semantics<parallel>, #tpu.dimension_semantics<parallel>], iteration_bounds = array<i64: 2, 1>, scalar_prefetch = 0 : i64, scratch_operands = 0 : i64, tpu.core_type = #tpu.core_type<tc>, window_params = [{transform_indices = @transform_0, window_bounds = array<i64: 1, 8, 256>}, {transform_indices = @transform_1, window_bounds = array<i64: 1, 32, 256>}, {transform_indices = @transform_2, window_bounds = array<i64: 1, 32, 256>}, {transform_indices = @transform_3, window_bounds = array<i64: 9, 128, 8>}, {transform_indices = @transform_4, window_bounds = array<i64: 9, 128, 32>}, {pipeline_mode = #tpu.pipeline_mode<synchronous>, transform_indices = @transform_5, window_bounds = array<i64: 9, 1, 256>}, {transform_indices = @transform_6, window_bounds = array<i64: 128, 1>}, {transform_indices = @transform_7, window_bounds = array<i64: 1, 32, 256>}, {transform_indices = @transform_8, window_bounds = array<i64: 1, 32, 256>}]} {
    %c0 = arith.constant 0 : index
    %c0_0 = arith.constant 0 : index
    %c0_1 = arith.constant 0 : index
    %0 = vector.load %arg2[%c0, %c0_0, %c0_1] : memref<1x8x256xf32, #tpu.memory_space<vmem>>, vector<1x8x256xf32>
    %1 = vector.shape_cast %0 : vector<1x8x256xf32> to vector<8x256xf32>
    %c0_2 = arith.constant 0 : index
    %c0_3 = arith.constant 0 : index
    %c0_4 = arith.constant 0 : index
    %2 = vector.load %arg3[%c0_2, %c0_3, %c0_4] : memref<1x32x256xf32, #tpu.memory_space<vmem>>, vector<1x32x256xf32>
    %3 = vector.shape_cast %2 : vector<1x32x256xf32> to vector<32x256xf32>
    %cst = arith.constant 0.000000e+00 : f32
    %4 = vector.broadcast %cst : f32 to vector<128x256xf32>
    %c0_5 = arith.constant 0 : index
    %c0_6 = arith.constant 0 : index
    %c0_7 = arith.constant 0 : index
    %5 = vector.load %arg7[%c0_5, %c0_6, %c0_7] : memref<9x1x256xf32, #tpu.memory_space<vmem>>, vector<1x1x256xf32>
    %6 = vector.shape_cast %5 : vector<1x1x256xf32> to vector<1x256xf32>
    %c17_i32 = arith.constant 17 : i32
    %7 = tpu.dynamic_rotate %1 by %c17_i32 dim 1 : vector<8x256xf32>, i32 -> vector<8x256xf32>
    %c17_i32_8 = arith.constant 17 : i32
    %8 = tpu.dynamic_rotate %3 by %c17_i32_8 dim 1 : vector<32x256xf32>, i32 -> vector<32x256xf32>
    %c0_9 = arith.constant 0 : index
    %c0_10 = arith.constant 0 : index
    %c0_11 = arith.constant 0 : index
    %9 = vector.load %arg5[%c0_9, %c0_10, %c0_11] : memref<9x128x8xf32, #tpu.memory_space<vmem>>, vector<1x128x8xf32>
    %10 = vector.shape_cast %9 : vector<1x128x8xf32> to vector<128x8xf32>
    %11 = vector.broadcast %6 : vector<1x256xf32> to vector<8x256xf32>
    %12 = arith.mulf %7, %11 : vector<8x256xf32>
    %cst_12 = arith.constant dense<0.000000e+00> : vector<128x256xf32>
    %13 = tpu.matmul %10, %12, %cst_12 {dimension_numbers = #tpu.dot_dimension_numbers<[1], [0], [0], [1], [0, 0, 1, 1], [], []>} : vector<128x8xf32>, vector<8x256xf32>, vector<128x256xf32> -> vector<128x256xf32>
    %14 = arith.addf %4, %13 : vector<128x256xf32>
    %c0_13 = arith.constant 0 : index
    %c0_14 = arith.constant 0 : index
    %c0_15 = arith.constant 0 : index
    %15 = vector.load %arg6[%c0_13, %c0_14, %c0_15] : memref<9x128x32xf32, #tpu.memory_space<vmem>>, vector<1x128x32xf32>
    %16 = vector.shape_cast %15 : vector<1x128x32xf32> to vector<128x32xf32>
    %17 = vector.broadcast %6 : vector<1x256xf32> to vector<32x256xf32>
    %18 = arith.mulf %8, %17 : vector<32x256xf32>
    %cst_16 = arith.constant dense<0.000000e+00> : vector<128x256xf32>
    %19 = tpu.matmul %16, %18, %cst_16 {dimension_numbers = #tpu.dot_dimension_numbers<[1], [0], [0], [1], [0, 0, 1, 1], [], []>} : vector<128x32xf32>, vector<32x256xf32>, vector<128x256xf32> -> vector<128x256xf32>
    %20 = arith.addf %14, %19 : vector<128x256xf32>
    %c1 = arith.constant 1 : index
    %c0_17 = arith.constant 0 : index
    %c0_18 = arith.constant 0 : index
    %21 = vector.load %arg7[%c1, %c0_17, %c0_18] : memref<9x1x256xf32, #tpu.memory_space<vmem>>, vector<1x1x256xf32>
    %22 = vector.shape_cast %21 : vector<1x1x256xf32> to vector<1x256xf32>
    %c16_i32 = arith.constant 16 : i32
    %23 = tpu.dynamic_rotate %1 by %c16_i32 dim 1 : vector<8x256xf32>, i32 -> vector<8x256xf32>
    %c16_i32_19 = arith.constant 16 : i32
    %24 = tpu.dynamic_rotate %3 by %c16_i32_19 dim 1 : vector<32x256xf32>, i32 -> vector<32x256xf32>
    %c1_20 = arith.constant 1 : index
    %c0_21 = arith.constant 0 : index
    %c0_22 = arith.constant 0 : index
    %25 = vector.load %arg5[%c1_20, %c0_21, %c0_22] : memref<9x128x8xf32, #tpu.memory_space<vmem>>, vector<1x128x8xf32>
    %26 = vector.shape_cast %25 : vector<1x128x8xf32> to vector<128x8xf32>
    %27 = vector.broadcast %22 : vector<1x256xf32> to vector<8x256xf32>
    %28 = arith.mulf %23, %27 : vector<8x256xf32>
    %cst_23 = arith.constant dense<0.000000e+00> : vector<128x256xf32>
    %29 = tpu.matmul %26, %28, %cst_23 {dimension_numbers = #tpu.dot_dimension_numbers<[1], [0], [0], [1], [0, 0, 1, 1], [], []>} : vector<128x8xf32>, vector<8x256xf32>, vector<128x256xf32> -> vector<128x256xf32>
    %30 = arith.addf %20, %29 : vector<128x256xf32>
    %c1_24 = arith.constant 1 : index
    %c0_25 = arith.constant 0 : index
    %c0_26 = arith.constant 0 : index
    %31 = vector.load %arg6[%c1_24, %c0_25, %c0_26] : memref<9x128x32xf32, #tpu.memory_space<vmem>>, vector<1x128x32xf32>
    %32 = vector.shape_cast %31 : vector<1x128x32xf32> to vector<128x32xf32>
    %33 = vector.broadcast %22 : vector<1x256xf32> to vector<32x256xf32>
    %34 = arith.mulf %24, %33 : vector<32x256xf32>
    %cst_27 = arith.constant dense<0.000000e+00> : vector<128x256xf32>
    %35 = tpu.matmul %32, %34, %cst_27 {dimension_numbers = #tpu.dot_dimension_numbers<[1], [0], [0], [1], [0, 0, 1, 1], [], []>} : vector<128x32xf32>, vector<32x256xf32>, vector<128x256xf32> -> vector<128x256xf32>
    %36 = arith.addf %30, %35 : vector<128x256xf32>
    %c2 = arith.constant 2 : index
    %c0_28 = arith.constant 0 : index
    %c0_29 = arith.constant 0 : index
    %37 = vector.load %arg7[%c2, %c0_28, %c0_29] : memref<9x1x256xf32, #tpu.memory_space<vmem>>, vector<1x1x256xf32>
    %38 = vector.shape_cast %37 : vector<1x1x256xf32> to vector<1x256xf32>
    %c15_i32 = arith.constant 15 : i32
    %39 = tpu.dynamic_rotate %1 by %c15_i32 dim 1 : vector<8x256xf32>, i32 -> vector<8x256xf32>
    %c15_i32_30 = arith.constant 15 : i32
    %40 = tpu.dynamic_rotate %3 by %c15_i32_30 dim 1 : vector<32x256xf32>, i32 -> vector<32x256xf32>
    %c2_31 = arith.constant 2 : index
    %c0_32 = arith.constant 0 : index
    %c0_33 = arith.constant 0 : index
    %41 = vector.load %arg5[%c2_31, %c0_32, %c0_33] : memref<9x128x8xf32, #tpu.memory_space<vmem>>, vector<1x128x8xf32>
    %42 = vector.shape_cast %41 : vector<1x128x8xf32> to vector<128x8xf32>
    %43 = vector.broadcast %38 : vector<1x256xf32> to vector<8x256xf32>
    %44 = arith.mulf %39, %43 : vector<8x256xf32>
    %cst_34 = arith.constant dense<0.000000e+00> : vector<128x256xf32>
    %45 = tpu.matmul %42, %44, %cst_34 {dimension_numbers = #tpu.dot_dimension_numbers<[1], [0], [0], [1], [0, 0, 1, 1], [], []>} : vector<128x8xf32>, vector<8x256xf32>, vector<128x256xf32> -> vector<128x256xf32>
    %46 = arith.addf %36, %45 : vector<128x256xf32>
    %c2_35 = arith.constant 2 : index
    %c0_36 = arith.constant 0 : index
    %c0_37 = arith.constant 0 : index
    %47 = vector.load %arg6[%c2_35, %c0_36, %c0_37] : memref<9x128x32xf32, #tpu.memory_space<vmem>>, vector<1x128x32xf32>
    %48 = vector.shape_cast %47 : vector<1x128x32xf32> to vector<128x32xf32>
    %49 = vector.broadcast %38 : vector<1x256xf32> to vector<32x256xf32>
    %50 = arith.mulf %40, %49 : vector<32x256xf32>
    %cst_38 = arith.constant dense<0.000000e+00> : vector<128x256xf32>
    %51 = tpu.matmul %48, %50, %cst_38 {dimension_numbers = #tpu.dot_dimension_numbers<[1], [0], [0], [1], [0, 0, 1, 1], [], []>} : vector<128x32xf32>, vector<32x256xf32>, vector<128x256xf32> -> vector<128x256xf32>
    %52 = arith.addf %46, %51 : vector<128x256xf32>
    %c3 = arith.constant 3 : index
    %c0_39 = arith.constant 0 : index
    %c0_40 = arith.constant 0 : index
    %53 = vector.load %arg7[%c3, %c0_39, %c0_40] : memref<9x1x256xf32, #tpu.memory_space<vmem>>, vector<1x1x256xf32>
    %54 = vector.shape_cast %53 : vector<1x1x256xf32> to vector<1x256xf32>
    %c1_i32 = arith.constant 1 : i32
    %55 = tpu.dynamic_rotate %1 by %c1_i32 dim 1 : vector<8x256xf32>, i32 -> vector<8x256xf32>
    %c1_i32_41 = arith.constant 1 : i32
    %56 = tpu.dynamic_rotate %3 by %c1_i32_41 dim 1 : vector<32x256xf32>, i32 -> vector<32x256xf32>
    %c3_42 = arith.constant 3 : index
    %c0_43 = arith.constant 0 : index
    %c0_44 = arith.constant 0 : index
    %57 = vector.load %arg5[%c3_42, %c0_43, %c0_44] : memref<9x128x8xf32, #tpu.memory_space<vmem>>, vector<1x128x8xf32>
    %58 = vector.shape_cast %57 : vector<1x128x8xf32> to vector<128x8xf32>
    %59 = vector.broadcast %54 : vector<1x256xf32> to vector<8x256xf32>
    %60 = arith.mulf %55, %59 : vector<8x256xf32>
    %cst_45 = arith.constant dense<0.000000e+00> : vector<128x256xf32>
    %61 = tpu.matmul %58, %60, %cst_45 {dimension_numbers = #tpu.dot_dimension_numbers<[1], [0], [0], [1], [0, 0, 1, 1], [], []>} : vector<128x8xf32>, vector<8x256xf32>, vector<128x256xf32> -> vector<128x256xf32>
    %62 = arith.addf %52, %61 : vector<128x256xf32>
    %c3_46 = arith.constant 3 : index
    %c0_47 = arith.constant 0 : index
    %c0_48 = arith.constant 0 : index
    %63 = vector.load %arg6[%c3_46, %c0_47, %c0_48] : memref<9x128x32xf32, #tpu.memory_space<vmem>>, vector<1x128x32xf32>
    %64 = vector.shape_cast %63 : vector<1x128x32xf32> to vector<128x32xf32>
    %65 = vector.broadcast %54 : vector<1x256xf32> to vector<32x256xf32>
    %66 = arith.mulf %56, %65 : vector<32x256xf32>
    %cst_49 = arith.constant dense<0.000000e+00> : vector<128x256xf32>
    %67 = tpu.matmul %64, %66, %cst_49 {dimension_numbers = #tpu.dot_dimension_numbers<[1], [0], [0], [1], [0, 0, 1, 1], [], []>} : vector<128x32xf32>, vector<32x256xf32>, vector<128x256xf32> -> vector<128x256xf32>
    %68 = arith.addf %62, %67 : vector<128x256xf32>
    %c4 = arith.constant 4 : index
    %c0_50 = arith.constant 0 : index
    %c0_51 = arith.constant 0 : index
    %69 = vector.load %arg7[%c4, %c0_50, %c0_51] : memref<9x1x256xf32, #tpu.memory_space<vmem>>, vector<1x1x256xf32>
    %70 = vector.shape_cast %69 : vector<1x1x256xf32> to vector<1x256xf32>
    %c4_52 = arith.constant 4 : index
    %c0_53 = arith.constant 0 : index
    %c0_54 = arith.constant 0 : index
    %71 = vector.load %arg5[%c4_52, %c0_53, %c0_54] : memref<9x128x8xf32, #tpu.memory_space<vmem>>, vector<1x128x8xf32>
    %72 = vector.shape_cast %71 : vector<1x128x8xf32> to vector<128x8xf32>
    %73 = vector.broadcast %70 : vector<1x256xf32> to vector<8x256xf32>
    %74 = arith.mulf %1, %73 : vector<8x256xf32>
    %cst_55 = arith.constant dense<0.000000e+00> : vector<128x256xf32>
    %75 = tpu.matmul %72, %74, %cst_55 {dimension_numbers = #tpu.dot_dimension_numbers<[1], [0], [0], [1], [0, 0, 1, 1], [], []>} : vector<128x8xf32>, vector<8x256xf32>, vector<128x256xf32> -> vector<128x256xf32>
    %76 = arith.addf %68, %75 : vector<128x256xf32>
    %c4_56 = arith.constant 4 : index
    %c0_57 = arith.constant 0 : index
    %c0_58 = arith.constant 0 : index
    %77 = vector.load %arg6[%c4_56, %c0_57, %c0_58] : memref<9x128x32xf32, #tpu.memory_space<vmem>>, vector<1x128x32xf32>
    %78 = vector.shape_cast %77 : vector<1x128x32xf32> to vector<128x32xf32>
    %79 = vector.broadcast %70 : vector<1x256xf32> to vector<32x256xf32>
    %80 = arith.mulf %3, %79 : vector<32x256xf32>
    %cst_59 = arith.constant dense<0.000000e+00> : vector<128x256xf32>
    %81 = tpu.matmul %78, %80, %cst_59 {dimension_numbers = #tpu.dot_dimension_numbers<[1], [0], [0], [1], [0, 0, 1, 1], [], []>} : vector<128x32xf32>, vector<32x256xf32>, vector<128x256xf32> -> vector<128x256xf32>
    %82 = arith.addf %76, %81 : vector<128x256xf32>
    %c5 = arith.constant 5 : index
    %c0_60 = arith.constant 0 : index
    %c0_61 = arith.constant 0 : index
    %83 = vector.load %arg7[%c5, %c0_60, %c0_61] : memref<9x1x256xf32, #tpu.memory_space<vmem>>, vector<1x1x256xf32>
    %84 = vector.shape_cast %83 : vector<1x1x256xf32> to vector<1x256xf32>
    %c255_i32 = arith.constant 255 : i32
    %85 = tpu.dynamic_rotate %1 by %c255_i32 dim 1 : vector<8x256xf32>, i32 -> vector<8x256xf32>
    %c255_i32_62 = arith.constant 255 : i32
    %86 = tpu.dynamic_rotate %3 by %c255_i32_62 dim 1 : vector<32x256xf32>, i32 -> vector<32x256xf32>
    %c5_63 = arith.constant 5 : index
    %c0_64 = arith.constant 0 : index
    %c0_65 = arith.constant 0 : index
    %87 = vector.load %arg5[%c5_63, %c0_64, %c0_65] : memref<9x128x8xf32, #tpu.memory_space<vmem>>, vector<1x128x8xf32>
    %88 = vector.shape_cast %87 : vector<1x128x8xf32> to vector<128x8xf32>
    %89 = vector.broadcast %84 : vector<1x256xf32> to vector<8x256xf32>
    %90 = arith.mulf %85, %89 : vector<8x256xf32>
    %cst_66 = arith.constant dense<0.000000e+00> : vector<128x256xf32>
    %91 = tpu.matmul %88, %90, %cst_66 {dimension_numbers = #tpu.dot_dimension_numbers<[1], [0], [0], [1], [0, 0, 1, 1], [], []>} : vector<128x8xf32>, vector<8x256xf32>, vector<128x256xf32> -> vector<128x256xf32>
    %92 = arith.addf %82, %91 : vector<128x256xf32>
    %c5_67 = arith.constant 5 : index
    %c0_68 = arith.constant 0 : index
    %c0_69 = arith.constant 0 : index
    %93 = vector.load %arg6[%c5_67, %c0_68, %c0_69] : memref<9x128x32xf32, #tpu.memory_space<vmem>>, vector<1x128x32xf32>
    %94 = vector.shape_cast %93 : vector<1x128x32xf32> to vector<128x32xf32>
    %95 = vector.broadcast %84 : vector<1x256xf32> to vector<32x256xf32>
    %96 = arith.mulf %86, %95 : vector<32x256xf32>
    %cst_70 = arith.constant dense<0.000000e+00> : vector<128x256xf32>
    %97 = tpu.matmul %94, %96, %cst_70 {dimension_numbers = #tpu.dot_dimension_numbers<[1], [0], [0], [1], [0, 0, 1, 1], [], []>} : vector<128x32xf32>, vector<32x256xf32>, vector<128x256xf32> -> vector<128x256xf32>
    %98 = arith.addf %92, %97 : vector<128x256xf32>
    %c6 = arith.constant 6 : index
    %c0_71 = arith.constant 0 : index
    %c0_72 = arith.constant 0 : index
    %99 = vector.load %arg7[%c6, %c0_71, %c0_72] : memref<9x1x256xf32, #tpu.memory_space<vmem>>, vector<1x1x256xf32>
    %100 = vector.shape_cast %99 : vector<1x1x256xf32> to vector<1x256xf32>
    %c241_i32 = arith.constant 241 : i32
    %101 = tpu.dynamic_rotate %1 by %c241_i32 dim 1 : vector<8x256xf32>, i32 -> vector<8x256xf32>
    %c241_i32_73 = arith.constant 241 : i32
    %102 = tpu.dynamic_rotate %3 by %c241_i32_73 dim 1 : vector<32x256xf32>, i32 -> vector<32x256xf32>
    %c6_74 = arith.constant 6 : index
    %c0_75 = arith.constant 0 : index
    %c0_76 = arith.constant 0 : index
    %103 = vector.load %arg5[%c6_74, %c0_75, %c0_76] : memref<9x128x8xf32, #tpu.memory_space<vmem>>, vector<1x128x8xf32>
    %104 = vector.shape_cast %103 : vector<1x128x8xf32> to vector<128x8xf32>
    %105 = vector.broadcast %100 : vector<1x256xf32> to vector<8x256xf32>
    %106 = arith.mulf %101, %105 : vector<8x256xf32>
    %cst_77 = arith.constant dense<0.000000e+00> : vector<128x256xf32>
    %107 = tpu.matmul %104, %106, %cst_77 {dimension_numbers = #tpu.dot_dimension_numbers<[1], [0], [0], [1], [0, 0, 1, 1], [], []>} : vector<128x8xf32>, vector<8x256xf32>, vector<128x256xf32> -> vector<128x256xf32>
    %108 = arith.addf %98, %107 : vector<128x256xf32>
    %c6_78 = arith.constant 6 : index
    %c0_79 = arith.constant 0 : index
    %c0_80 = arith.constant 0 : index
    %109 = vector.load %arg6[%c6_78, %c0_79, %c0_80] : memref<9x128x32xf32, #tpu.memory_space<vmem>>, vector<1x128x32xf32>
    %110 = vector.shape_cast %109 : vector<1x128x32xf32> to vector<128x32xf32>
    %111 = vector.broadcast %100 : vector<1x256xf32> to vector<32x256xf32>
    %112 = arith.mulf %102, %111 : vector<32x256xf32>
    %cst_81 = arith.constant dense<0.000000e+00> : vector<128x256xf32>
    %113 = tpu.matmul %110, %112, %cst_81 {dimension_numbers = #tpu.dot_dimension_numbers<[1], [0], [0], [1], [0, 0, 1, 1], [], []>} : vector<128x32xf32>, vector<32x256xf32>, vector<128x256xf32> -> vector<128x256xf32>
    %114 = arith.addf %108, %113 : vector<128x256xf32>
    %c7 = arith.constant 7 : index
    %c0_82 = arith.constant 0 : index
    %c0_83 = arith.constant 0 : index
    %115 = vector.load %arg7[%c7, %c0_82, %c0_83] : memref<9x1x256xf32, #tpu.memory_space<vmem>>, vector<1x1x256xf32>
    %116 = vector.shape_cast %115 : vector<1x1x256xf32> to vector<1x256xf32>
    %c240_i32 = arith.constant 240 : i32
    %117 = tpu.dynamic_rotate %1 by %c240_i32 dim 1 : vector<8x256xf32>, i32 -> vector<8x256xf32>
    %c240_i32_84 = arith.constant 240 : i32
    %118 = tpu.dynamic_rotate %3 by %c240_i32_84 dim 1 : vector<32x256xf32>, i32 -> vector<32x256xf32>
    %c7_85 = arith.constant 7 : index
    %c0_86 = arith.constant 0 : index
    %c0_87 = arith.constant 0 : index
    %119 = vector.load %arg5[%c7_85, %c0_86, %c0_87] : memref<9x128x8xf32, #tpu.memory_space<vmem>>, vector<1x128x8xf32>
    %120 = vector.shape_cast %119 : vector<1x128x8xf32> to vector<128x8xf32>
    %121 = vector.broadcast %116 : vector<1x256xf32> to vector<8x256xf32>
    %122 = arith.mulf %117, %121 : vector<8x256xf32>
    %cst_88 = arith.constant dense<0.000000e+00> : vector<128x256xf32>
    %123 = tpu.matmul %120, %122, %cst_88 {dimension_numbers = #tpu.dot_dimension_numbers<[1], [0], [0], [1], [0, 0, 1, 1], [], []>} : vector<128x8xf32>, vector<8x256xf32>, vector<128x256xf32> -> vector<128x256xf32>
    %124 = arith.addf %114, %123 : vector<128x256xf32>
    %c7_89 = arith.constant 7 : index
    %c0_90 = arith.constant 0 : index
    %c0_91 = arith.constant 0 : index
    %125 = vector.load %arg6[%c7_89, %c0_90, %c0_91] : memref<9x128x32xf32, #tpu.memory_space<vmem>>, vector<1x128x32xf32>
    %126 = vector.shape_cast %125 : vector<1x128x32xf32> to vector<128x32xf32>
    %127 = vector.broadcast %116 : vector<1x256xf32> to vector<32x256xf32>
    %128 = arith.mulf %118, %127 : vector<32x256xf32>
    %cst_92 = arith.constant dense<0.000000e+00> : vector<128x256xf32>
    %129 = tpu.matmul %126, %128, %cst_92 {dimension_numbers = #tpu.dot_dimension_numbers<[1], [0], [0], [1], [0, 0, 1, 1], [], []>} : vector<128x32xf32>, vector<32x256xf32>, vector<128x256xf32> -> vector<128x256xf32>
    %130 = arith.addf %124, %129 : vector<128x256xf32>
    %c8 = arith.constant 8 : index
    %c0_93 = arith.constant 0 : index
    %c0_94 = arith.constant 0 : index
    %131 = vector.load %arg7[%c8, %c0_93, %c0_94] : memref<9x1x256xf32, #tpu.memory_space<vmem>>, vector<1x1x256xf32>
    %132 = vector.shape_cast %131 : vector<1x1x256xf32> to vector<1x256xf32>
    %c239_i32 = arith.constant 239 : i32
    %133 = tpu.dynamic_rotate %1 by %c239_i32 dim 1 : vector<8x256xf32>, i32 -> vector<8x256xf32>
    %c239_i32_95 = arith.constant 239 : i32
    %134 = tpu.dynamic_rotate %3 by %c239_i32_95 dim 1 : vector<32x256xf32>, i32 -> vector<32x256xf32>
    %c8_96 = arith.constant 8 : index
    %c0_97 = arith.constant 0 : index
    %c0_98 = arith.constant 0 : index
    %135 = vector.load %arg5[%c8_96, %c0_97, %c0_98] : memref<9x128x8xf32, #tpu.memory_space<vmem>>, vector<1x128x8xf32>
    %136 = vector.shape_cast %135 : vector<1x128x8xf32> to vector<128x8xf32>
    %137 = vector.broadcast %132 : vector<1x256xf32> to vector<8x256xf32>
    %138 = arith.mulf %133, %137 : vector<8x256xf32>
    %cst_99 = arith.constant dense<0.000000e+00> : vector<128x256xf32>
    %139 = tpu.matmul %136, %138, %cst_99 {dimension_numbers = #tpu.dot_dimension_numbers<[1], [0], [0], [1], [0, 0, 1, 1], [], []>} : vector<128x8xf32>, vector<8x256xf32>, vector<128x256xf32> -> vector<128x256xf32>
    %140 = arith.addf %130, %139 : vector<128x256xf32>
    %c8_100 = arith.constant 8 : index
    %c0_101 = arith.constant 0 : index
    %c0_102 = arith.constant 0 : index
    %141 = vector.load %arg6[%c8_100, %c0_101, %c0_102] : memref<9x128x32xf32, #tpu.memory_space<vmem>>, vector<1x128x32xf32>
    %142 = vector.shape_cast %141 : vector<1x128x32xf32> to vector<128x32xf32>
    %143 = vector.broadcast %132 : vector<1x256xf32> to vector<32x256xf32>
    %144 = arith.mulf %134, %143 : vector<32x256xf32>
    %cst_103 = arith.constant dense<0.000000e+00> : vector<128x256xf32>
    %145 = tpu.matmul %142, %144, %cst_103 {dimension_numbers = #tpu.dot_dimension_numbers<[1], [0], [0], [1], [0, 0, 1, 1], [], []>} : vector<128x32xf32>, vector<32x256xf32>, vector<128x256xf32> -> vector<128x256xf32>
    %146 = arith.addf %140, %145 : vector<128x256xf32>
    %c0_104 = arith.constant 0 : index
    %c0_105 = arith.constant 0 : index
    %147 = vector.load %arg8[%c0_104, %c0_105] : memref<128x1xf32, #tpu.memory_space<vmem>>, vector<128x1xf32>
    %148 = vector.broadcast %147 : vector<128x1xf32> to vector<128x256xf32>
    %149 = arith.addf %146, %148 : vector<128x256xf32>
    %150 = vector.extract_strided_slice %149 {offsets = [0, 0], sizes = [32, 256], strides = [1, 1]} : vector<128x256xf32> to vector<32x256xf32>
    %151 = arith.negf %150 : vector<32x256xf32>
    %152 = math.exp %151 : vector<32x256xf32>
    %cst_106 = arith.constant 1.000000e+00 : f32
    %153 = vector.broadcast %cst_106 : f32 to vector<32x256xf32>
    %154 = arith.addf %153, %152 : vector<32x256xf32>
    %155 = arith.divf %153, %154 : vector<32x256xf32>
    %156 = vector.extract_strided_slice %149 {offsets = [32, 0], sizes = [32, 256], strides = [1, 1]} : vector<128x256xf32> to vector<32x256xf32>
    %157 = arith.negf %156 : vector<32x256xf32>
    %158 = math.exp %157 : vector<32x256xf32>
    %cst_107 = arith.constant 1.000000e+00 : f32
    %159 = vector.broadcast %cst_107 : f32 to vector<32x256xf32>
    %160 = arith.addf %159, %158 : vector<32x256xf32>
    %161 = arith.divf %159, %160 : vector<32x256xf32>
    %162 = vector.extract_strided_slice %149 {offsets = [64, 0], sizes = [32, 256], strides = [1, 1]} : vector<128x256xf32> to vector<32x256xf32>
    %163 = arith.negf %162 : vector<32x256xf32>
    %164 = math.exp %163 : vector<32x256xf32>
    %cst_108 = arith.constant 1.000000e+00 : f32
    %165 = vector.broadcast %cst_108 : f32 to vector<32x256xf32>
    %166 = arith.addf %165, %164 : vector<32x256xf32>
    %167 = arith.divf %165, %166 : vector<32x256xf32>
    %168 = vector.extract_strided_slice %149 {offsets = [96, 0], sizes = [32, 256], strides = [1, 1]} : vector<128x256xf32> to vector<32x256xf32>
    %169 = math.tanh %168 : vector<32x256xf32>
    %c0_109 = arith.constant 0 : index
    %c0_110 = arith.constant 0 : index
    %c0_111 = arith.constant 0 : index
    %170 = vector.load %arg4[%c0_109, %c0_110, %c0_111] : memref<1x32x256xf32, #tpu.memory_space<vmem>>, vector<1x32x256xf32>
    %171 = vector.shape_cast %170 : vector<1x32x256xf32> to vector<32x256xf32>
    %172 = arith.mulf %161, %171 : vector<32x256xf32>
    %173 = arith.mulf %155, %169 : vector<32x256xf32>
    %174 = arith.addf %172, %173 : vector<32x256xf32>
    %175 = math.tanh %174 : vector<32x256xf32>
    %176 = arith.mulf %167, %175 : vector<32x256xf32>
    %c0_112 = arith.constant 0 : index
    %c0_113 = arith.constant 0 : index
    %c0_114 = arith.constant 0 : index
    %177 = vector.load %arg9[%c0_112, %c0_113, %c0_114] : memref<1x32x256xf32, #tpu.memory_space<vmem>>, vector<1x32x256xf32>
    %178 = vector.shape_cast %177 : vector<1x32x256xf32> to vector<32x256xf32>
    %179 = vector.shape_cast %176 : vector<32x256xf32> to vector<1x32x256xf32>
    tpu.vector_store %arg9[%c0_112, %c0_113, %c0_114], %179 {strides = array<i32>} : memref<1x32x256xf32, #tpu.memory_space<vmem>>, vector<1x32x256xf32>,
    %c0_115 = arith.constant 0 : index
    %c0_116 = arith.constant 0 : index
    %c0_117 = arith.constant 0 : index
    %180 = vector.load %arg10[%c0_115, %c0_116, %c0_117] : memref<1x32x256xf32, #tpu.memory_space<vmem>>, vector<1x32x256xf32>
    %181 = vector.shape_cast %180 : vector<1x32x256xf32> to vector<32x256xf32>
    %182 = vector.shape_cast %174 : vector<32x256xf32> to vector<1x32x256xf32>
    tpu.vector_store %arg10[%c0_115, %c0_116, %c0_117], %182 {strides = array<i32>} : memref<1x32x256xf32, #tpu.memory_space<vmem>>, vector<1x32x256xf32>,
    return
  }
  func.func @transform_0(%arg0: i32, %arg1: i32) -> (i32, i32, i32) {
    %c0_i32 = arith.constant 0 : i32
    %c0_i32_0 = arith.constant 0 : i32
    %c0_i32_1 = arith.constant 0 : i32
    return %arg0, %c0_i32, %c0_i32_0 : i32, i32, i32
  }
  func.func @transform_1(%arg0: i32, %arg1: i32) -> (i32, i32, i32) {
    %c0_i32 = arith.constant 0 : i32
    %c0_i32_0 = arith.constant 0 : i32
    %c0_i32_1 = arith.constant 0 : i32
    return %arg0, %c0_i32, %c0_i32_0 : i32, i32, i32
  }
  func.func @transform_2(%arg0: i32, %arg1: i32) -> (i32, i32, i32) {
    %c0_i32 = arith.constant 0 : i32
    %c0_i32_0 = arith.constant 0 : i32
    return %arg0, %arg1, %c0_i32 : i32, i32, i32
  }
  func.func @transform_3(%arg0: i32, %arg1: i32) -> (i32, i32, i32) {
    %c0_i32 = arith.constant 0 : i32
    %c0_i32_0 = arith.constant 0 : i32
    %c0_i32_1 = arith.constant 0 : i32
    return %c0_i32, %arg1, %c0_i32_0 : i32, i32, i32
  }
  func.func @transform_4(%arg0: i32, %arg1: i32) -> (i32, i32, i32) {
    %c0_i32 = arith.constant 0 : i32
    %c0_i32_0 = arith.constant 0 : i32
    %c0_i32_1 = arith.constant 0 : i32
    return %c0_i32, %arg1, %c0_i32_0 : i32, i32, i32
  }
  func.func @transform_5(%arg0: i32, %arg1: i32) -> (i32, i32, i32) {
    %c0_i32 = arith.constant 0 : i32
    %c0_i32_0 = arith.constant 0 : i32
    %c0_i32_1 = arith.constant 0 : i32
    %c0_i32_2 = arith.constant 0 : i32
    return %c0_i32, %c0_i32_0, %c0_i32_1 : i32, i32, i32
  }
  func.func @transform_6(%arg0: i32, %arg1: i32) -> (i32, i32) {
    %c0_i32 = arith.constant 0 : i32
    %c0_i32_0 = arith.constant 0 : i32
    return %arg1, %c0_i32 : i32, i32
  }
  func.func @transform_7(%arg0: i32, %arg1: i32) -> (i32, i32, i32) {
    %c0_i32 = arith.constant 0 : i32
    %c0_i32_0 = arith.constant 0 : i32
    return %arg0, %arg1, %c0_i32 : i32, i32, i32
  }
  func.func @transform_8(%arg0: i32, %arg1: i32) -> (i32, i32, i32) {
    %c0_i32 = arith.constant 0 : i32
    %c0_i32_0 = arith.constant 0 : i32
    return %arg0, %arg1, %c0_i32 : i32, i32, i32
  }
}

</mosaic_0001>

<bundles_post_ra>
// kernel: tpu_custom_call.1
= control target key start
LH: loop header
LB: loop body
LE: loop exit
PB: predicated region body
PF: predicated region fallthrough
CT: control target
= control target key end

     0   :  { %s10443_s0 = inlined_call_operand.vmem [shape: f32[2,8,256], index: 0, kind: input, shape index: {}]   ;;  %s10444_s1 = inlined_call_operand.vmem [shape: f32[2,32,256], index: 1, kind: input, shape index: {}]   ;;  %s10445_s2 = inlined_call_operand.vmem [shape: f32[2,32,256], index: 2, kind: input, shape index: {}]   ;;  %s10446_s3 = inlined_call_operand.vmem [shape: f32[9,128,8], index: 3, kind: input, shape index: {}]   ;;  %s10447_s4 = inlined_call_operand.vmem [shape: f32[9,128,32], index: 4, kind: input, shape index: {}]   ;;  %s10448_s5 = inlined_call_operand.vmem [shape: f32[9,1,256], index: 5, kind: input, shape index: {}]   ;;  %s10449_s6 = inlined_call_operand.vmem [shape: f32[128,1], index: 6, kind: input, shape index: {}]   ;;  %s10450_s7 = inlined_call_operand.hbm [shape: f32[2,32,256], index: 7, kind: output, shape index: {0}]   ;;  %s10451_s8 = inlined_call_operand.hbm [shape: f32[2,32,256], index: 8, kind: output, shape index: {1}]  }
   0x1   :  { %10457 = sst [smem:[#allocation21_spill]] %s10443_s0 }
   0x2   :  { %14 = vsyncpa [#allocation3], 0 }
   0x3   :  { %16 = vsyncpa [#allocation3 + $0x1], 0 }
   0x4   :  { %17 = vsyncpa [#allocation5], 0 }
   0x5   :  { %19 = vsyncpa [#allocation5 + $0x1], 0  ;;  %s7681_s27 = smov 0   ;;  %s7683_s28 = smov 0  }
   0x6   :  { %s7685_s29 = smov 0   ;;  %s7687_s30 = smov 0  }
   0x7   :  { %s7689_s9 = smov 0   ;;  %s7691_s10 = smov 0  }
   0x8 LB: > { %s6075_s11 = sadd.s32 4294967295, %s7621_s10   ;;  %s6076_s12 = sadd.s32 4294967294, %s7621_s10   ;;  %s7621_s10 = sphi %s7691_s10, %s25_s10   ;;  %s7617_s9 = sphi %s7689_s9, %s10523_s9   ;;  %s7613_s30 = sphi %s7687_s30, %s10522_s30   ;;  %s7609_s29 = sphi %s7685_s29, %s10521_s29   ;;  %s7605_s28 = sphi %s7683_s28, %s10520_s28   ;;  %s7601_s27 = sphi %s7681_s27, %s10519_s27  }
   0x9   : > { %s37_s13 = sadd.s32 1, %s7617_s9  ;;  %s225_s14 = sadd.s32 1, %s7609_s29 }
   0xa   : > { %p39_p0 = scmp.ge.s32.totalorder %s37_s13, 2  ;;  %p235_p1 = scmp.ne.s32.totalorder %s7609_s29, %s7605_s28 }
   0xb   : > { %p236_p2 = scmp.eq.s32.totalorder %s6075_s11, 1  ;;  %p241_p3 = scmp.ne.s32.totalorder %s7605_s28, %s7601_s27 }
   0xc   : > { %s10525_s13 = smov (%p39_p0, %s37_s13), 0  ;;  %p242_p5 = scmp.eq.s32.totalorder %s6076_s12, 1 }
   0xd   : > { %p7721_p4 = por %p236_p2, %p235_p1  ;;  %s220_s16 = ssub.s32 %s7617_s9, %s10525_s13 }
   0xe   : > { %p6082_p6 = scmp.ge.s32.totalorder %s7621_s10, 1  ;;  %p223_p7 = scmp.eq.s32.totalorder %s220_s16, 0 }
   0xf   : > { %p7728_p8 = por %p242_p5, %p241_p3  ;;  %p348_p9 = scmp.lt.s32.totalorder %s7621_s10, 3 }
  0x10   : > { %s7734_s18 = scalar_select %p223_p7, %s7609_s29, %s225_s14  }
  0x11   : > { %p349_p10 = pnand %p6082_p6, %p348_p9 }
  0x13   : > { %352 = sbr.rel (%p349_p10) target bundleno = 1013 (0x3f5), region = 48 }
  0x1a   : > { %p417_p11 = scmp.lt.s32.totalorder %s7613_s30, 1  ;;  %v473_v0 = vlaneseq  ;;  %v10452_v1 = vmov 0.0   ;;  %v6318_v3 = vld [vmem:[%s10448_s5 + $0x8] sm:$0x3]  ;;  %s10460_s0 = sld [smem:[#allocation21_spill]]  ;;  %v6319_v24 = vld [vmem:[%s10446_s3 + $0x200] sm:$0xff] }
  0x1b   : > { %2829 = vmatprep.mubr.f32.mxu0 %v10452_v1  ;;  %668 = vmatprep.mubr.f32.mxu1 %v10452_v1  ;;  %s7624_s16 = smov 17   ;;  %vm765_vm0 = vcmask 64512   ;;  %v6320_v32 = vld [vmem:[%s10446_s3 + $0x208] sm:$0xff]  ;;  %v6321_v34 = vld [vmem:[%s10446_s3 + $0x210] sm:$0xff]  ;;  %s7625_s12 = smov 127   ;;  %v6322_v35 = vld [vmem:[%s10446_s3 + $0x218] sm:$0xff] }
  0x1c   : > { %s7740_s19 = scalar_select %p417_p11, %s7613_s30, 1  ;;  %v520_v2 = vshrl.u32 %v473_v0, 7  ;;  %v6323_v36 = vld [vmem:[%s10446_s3 + $0x220] sm:$0xff]  ;;  %v6324_v37 = vld [vmem:[%s10446_s3 + $0x228] sm:$0xff]  ;;  %v6325_v38 = vld [vmem:[%s10446_s3 + $0x230] sm:$0xff]  ;;  %vm555_vm1 = vcmask 261120  }
  0x1d   : > { %v6326_v39 = vld [vmem:[%s10446_s3 + $0x238] sm:$0xff]  ;;  %v6327_v40 = vld [vmem:[%s10446_s3 + $0x240] sm:$0xff]  ;;  %s10455_s11 = smov 16   ;;  %v6328_v41 = vld [vmem:[%s10446_s3 + $0x248] sm:$0xff]  ;;  %s7627_s24 = smov 113   ;;  %v7974_v49 = vand.u32 127, %v473_v0 }
  0x1e   : > { %s6676_s22 = sshll.u32 %s7740_s19, 6  ;;  %s6675_s23 = sshll.u32 %s7740_s19, 4  ;;  %v7748_v4 = vsub.s32 1, %v520_v2  ;;  %v7750_v5 = vsub.s32 0, %v520_v2  ;;  %v6329_v42 = vld [vmem:[%s10446_s3 + $0x250] sm:$0xff]  ;;  %v6330_v43 = vld [vmem:[%s10446_s3 + $0x258] sm:$0xff] }
  0x1f   : > { %s7757_s26 = scalar_lea.vmem %s10444_s1, %s6676_s22  ;;  %v6331_v44 = vld [vmem:[%s10446_s3 + $0x260] sm:$0xff]  ;;  %v6332_v45 = vld [vmem:[%s10446_s3 + $0x268] sm:$0xff]  ;;  %v6333_v46 = vld [vmem:[%s10446_s3 + $0x270] sm:$0xff]  ;;  %s7628_s21 = smov 15   ;;  %vm475_vm2 = vcmp.lt.s32.totalorder %v7974_v49, 17  ;;  %vm3230_vm3 = vcmp.lt.s32.totalorder %v7974_v49, 127 }
  0x20   : > { %v7760_v6 = vld [vmem:[%s7757_s26 + $0x8] sm:$0xff]  ;;  %v7763_v7 = vld [vmem:[%s7757_s26] sm:$0xff]  ;;  %s7768_s14 = scalar_lea.vmem %s10460_s0, %s6675_s23  ;;  %v2712_v8 = vrot.slane %v6318_v3, %v7748_v4  ;;  %v2708_v9 = vrot.slane %v6318_v3, %v7750_v5  ;;  %v7777_v10 = vld [vmem:[%s7757_s26 + $0x18] sm:$0xff]  ;;  %s7629_s25 = smov 112   ;;  %vm981_vm4 = vcmp.lt.s32.totalorder %v7974_v49, 16  ;;  %vm3800_vm5 = vcmp.lt.s32.totalorder %v7974_v49, 113 }
  0x21   : > { %486 = vrot.lane.b32.xlu1 %v7760_v6, %s7624_s16  ;;  %478 = vrot.lane.b32.xlu0 %v7763_v7, %s7624_s16  ;;  %v7780_v11 = vld [vmem:[%s7757_s26 + $0x10] sm:$0xff]  ;;  %v7783_v12 = vld [vmem:[%s7757_s26 + $0x38] sm:$0xff]  ;;  %vm1551_vm6 = vcmp.lt.s32.totalorder %v7974_v49, 15  ;;  %vm4370_vm7 = vcmp.lt.s32.totalorder %v7974_v49, 112  ;;  %s7631_s20 = smov 111   ;;  %vm2121_vm8 = vcmp.lt.s32.totalorder %v7974_v49, 1 }
  0x22   : > { %v7786_v13 = vld [vmem:[%s7757_s26 + $0x28] sm:$0xff]  ;;  %v2976_v14 = vmul.f32 %v2712_v8, %v7760_v6  ;;  %v2978_v15 = vmul.f32 %v2712_v8, %v7777_v10  ;;  %v2975_v16 = vmul.f32 %v2708_v9, %v7763_v7  ;;  %v2977_v17 = vmul.f32 %v2708_v9, %v7780_v11  ;;  %v7796_v19 = vld [vmem:[%s7768_s14] sm:$0xff]  ;;  %v7812_v26 = vld [vmem:[%s7757_s26 + $0x30] sm:$0xff]  ;;  %s7633_s23 = smov [#allocation4]  }
  0x23   : > { %v7793_v18 = vld [vmem:[%s7768_s14 + $0x8] sm:$0xff]  ;;  %v2980_v20 = vmul.f32 %v2712_v8, %v7786_v13  ;;  %v2982_v21 = vmul.f32 %v2712_v8, %v7783_v12  ;;  %v2715_v23 = vmul.f32 %v2708_v9, %v7796_v19  ;;  %v7815_v27 = vld [vmem:[%s7757_s26 + $0x20] sm:$0xff]  ;;  %v2981_v30 = vmul.f32 %v2708_v9, %v7812_v26  ;;  %v6334_v47 = vld [vmem:[%s10446_s3 + $0x278] sm:$0xff] }
  0x24   : > { %v2716_v22 = vmul.f32 %v2712_v8, %v7793_v18  ;;  %v7805_v25 = vpack.c.bf16 %v2978_v15, %v2976_v14  ;;  %v7817_v28 = vpack.c.bf16 %v2977_v17, %v2975_v16  ;;  %v2979_v29 = vmul.f32 %v2708_v9, %v7815_v27  ;;  %v6351_v48 = vld [vmem:[%s10447_s4 + $0x200] sm:$0xff]  ;;  %v6383_v14 = vld [vmem:[%s10448_s5 + $0xa] sm:$0x3] }
  0x25   : > { %488 = vrot.lane.b32.xlu1 %v7777_v10, %s7624_s16  ;;  %480 = vrot.lane.b32.xlu0 %v7780_v11, %s7624_s16  ;;  %v7821_v31 = vpack.c.bf16 %v2982_v21, %v2980_v20  ;;  %v468_v50 = vld [vmem:[%s10448_s5] sm:$0x3]  ;;  %v7995_v17 = vrot.slane %v6383_v14, %v7750_v5  ;;  %v7998_v20 = vrot.slane %v6383_v14, %v7748_v4  ;;  %vm4940_vm9 = vcmp.lt.s32.totalorder %v7974_v49, 111 }
  0x26   : > { %2765 = vmatprep.subr.mxu0 %v2716_v22  ;;  %v7834_v33 = vpack.c.bf16 %v2981_v30, %v2979_v29  ;;  %v522_v53 = vrot.slane %v468_v50, %v7750_v5  ;;  %v526_v54 = vrot.slane %v468_v50, %v7748_v4 }
  0x27   : > { %2766 = vmatpush1.msra.mxu0 %v2715_v23 }
  0x28   : > { %6335 = vmatmul.mubr.msk.f32.vlgmr.msra.gmra.mrb[0].mxu0 %vm765_vm0, %v6319_v24  ;;  %6713 = vmatprep.subr.bf16.mxu0 %v7805_v25 }
  0x29   : > { %484 = vrot.lane.b32.xlu1 %v7812_v26, %s7624_s16  ;;  %482 = vrot.lane.b32.xlu0 %v7815_v27, %s7624_s16 }
  0x2a   : > { %2835 = vmatprep.mubr.f32.mxu0 %v10452_v1  ;;  %6715 = vmatpush1.bf16.msra.mxu0 %v7817_v28 }
  0x2b   : > { %6717 = vmatprep.subr.bf16.mxu0 %v7821_v31 }
  0x2c   : > { %6336 = vmatmul.mubr.msk.f32.gmra.mrb[2].mxu0 %vm765_vm0, %v6320_v32 }
  0x2d   : > { %492 = vrot.lane.b32.xlu1 %v7783_v12, %s7624_s16  ;;  %490 = vrot.lane.b32.xlu0 %v7786_v13, %s7624_s16 }
  0x2e   : > { %2841 = vmatprep.mubr.f32.mxu0 %v10452_v1  ;;  %6719 = vmatpush1.bf16.msra.mxu0 %v7834_v33 }
  0x30   : > { %6337 = vmatmul.mubr.msk.f32.gmra.mrb[4].mxu0 %vm765_vm0, %v6321_v34 }
  0x31   : > { %3228 = vrot.lane.b32.xlu1 %v7793_v18, %s7625_s12  ;;  %3226 = vrot.lane.b32.xlu0 %v7796_v19, %s7625_s12 }
  0x32   : > { %2847 = vmatprep.mubr.f32.mxu0 %v10452_v1 }
  0x34   : > { %6338 = vmatmul.mubr.msk.f32.gmra.mrb[6].mxu0 %vm765_vm0, %v6322_v35 }
  0x35   : > { %471 = vrot.lane.b32.xlu1 %v7793_v18, %s7624_s16  ;;  %469 = vrot.lane.b32.xlu0 %v7796_v19, %s7624_s16  ;;  %s10290_s16 = scalar_lea.vmem %s10445_s2, %s6676_s22 }
  0x36   : > { %2853 = vmatprep.mubr.f32.mxu0 %v10452_v1 }
  0x38   : > { %6339 = vmatmul.mubr.msk.f32.gmra.mrb[8].mxu0 %vm765_vm0, %v6323_v36 }
  0x39   : > { %3235 = vrot.lane.b32.xlu1 %v7780_v11, %s7625_s12  ;;  %3233 = vrot.lane.b32.xlu0 %v7763_v7, %s7625_s12 }
  0x3a   : > { %2859 = vmatprep.mubr.f32.mxu0 %v10452_v1 }
  0x3c   : > { %6340 = vmatmul.mubr.msk.f32.gmra.mrb[10].mxu0 %vm765_vm0, %v6324_v37 }
  0x3d   : > { %3243 = vrot.lane.b32.xlu1 %v7777_v10, %s7625_s12  ;;  %3241 = vrot.lane.b32.xlu0 %v7760_v6, %s7625_s12 }
  0x3e   : > { %2865 = vmatprep.mubr.f32.mxu0 %v10452_v1 }
  0x40   : > { %6341 = vmatmul.mubr.msk.f32.gmra.mrb[12].mxu0 %vm765_vm0, %v6325_v38 }
  0x41   : > { %3239 = vrot.lane.b32.xlu1 %v7812_v26, %s7625_s12  ;;  %3237 = vrot.lane.b32.xlu0 %v7815_v27, %s7625_s12 }
  0x42   : > { %2871 = vmatprep.mubr.f32.mxu0 %v10452_v1 }
  0x44   : > { %6342 = vmatmul.mubr.msk.f32.gmra.mrb[14].mxu0 %vm765_vm0, %v6326_v39 }
  0x45   : > { %3247 = vrot.lane.b32.xlu1 %v7783_v12, %s7625_s12  ;;  %3245 = vrot.lane.b32.xlu0 %v7786_v13, %s7625_s12  ;;  %s10454_s12 = sshll.u32 %s7613_s30, 10 }
  0x46   : > { %2877 = vmatprep.mubr.f32.mxu0 %v10452_v1 }
  0x48   : > { %6343 = vmatmul.mubr.msk.f32.gmra.mrb[16].mxu0 %vm765_vm0, %v6327_v40 }
  0x49   : > { %979 = vrot.lane.b32.xlu1 %v7793_v18, %s10455_s11  ;;  %977 = vrot.lane.b32.xlu0 %v7796_v19, %s10455_s11 }
  0x4a   : > { %2883 = vmatprep.mubr.f32.mxu0 %v10452_v1 }
  0x4c   : > { %6344 = vmatmul.mubr.msk.f32.gmra.mrb[18].mxu0 %vm765_vm0, %v6328_v41 }
  0x4d   : > { %2889 = vmatprep.mubr.f32.mxu0 %v10452_v1  ;;  %986 = vrot.lane.b32.xlu1 %v7780_v11, %s10455_s11 }
  0x4e   : > { %984 = vrot.lane.b32.xlu0 %v7763_v7, %s10455_s11 }
  0x50   : > { %6345 = vmatmul.mubr.msk.f32.gmra.mrb[20].mxu0 %vm765_vm0, %v6329_v42 }
  0x51   : > { %2895 = vmatprep.mubr.f32.mxu0 %v10452_v1  ;;  %994 = vrot.lane.b32.xlu1 %v7777_v10, %s10455_s11 }
  0x52   : > { %992 = vrot.lane.b32.xlu0 %v7760_v6, %s10455_s11 }
  0x54   : > { %6346 = vmatmul.mubr.msk.f32.gmra.mrb[22].mxu0 %vm765_vm0, %v6330_v43  ;;  %v531_v43 = vld [vmem:[%s10447_s4] sm:$0xff] }
  0x55   : > { %2901 = vmatprep.mubr.f32.mxu0 %v10452_v1  ;;  %990 = vrot.lane.b32.xlu1 %v7812_v26, %s10455_s11 }
  0x56   : > { %988 = vrot.lane.b32.xlu0 %v7815_v27, %s10455_s11 }
  0x58   : > { %6347 = vmatmul.mubr.msk.f32.gmra.mrb[24].mxu0 %vm765_vm0, %v6331_v44  ;;  %v6384_v44 = vld [vmem:[%s10446_s3 + $0x280] sm:$0xff] }
  0x59   : > { %2907 = vmatprep.mubr.f32.mxu0 %v10452_v1  ;;  %998 = vrot.lane.b32.xlu1 %v7783_v12, %s10455_s11 }
  0x5a   : > { %996 = vrot.lane.b32.xlu0 %v7786_v13, %s10455_s11 }
  0x5c   : > { %6348 = vmatmul.mubr.msk.f32.gmra.mrb[26].mxu0 %vm765_vm0, %v6332_v45 }
  0x5d   : > { %2913 = vmatprep.mubr.f32.mxu0 %v10452_v1  ;;  %3798 = vrot.lane.b32.xlu1 %v7793_v18, %s7627_s24 }
  0x5e   : > { %3796 = vrot.lane.b32.xlu0 %v7796_v19, %s7627_s24 }
  0x60   : > { %6349 = vmatmul.mubr.msk.f32.gmra.mrb[28].mxu0 %vm765_vm0, %v6333_v46 }
  0x61   : > { %2919 = vmatprep.mubr.f32.mxu0 %v10452_v1  ;;  %3805 = vrot.lane.b32.xlu1 %v7780_v11, %s7627_s24 }
  0x62   : > { %3803 = vrot.lane.b32.xlu0 %v7763_v7, %s7627_s24 }
  0x64   : > { %6350 = vmatmul.mubr.msk.f32.gmra.mrb[30].mxu0 %vm765_vm0, %v6334_v47 }
  0x65   : > { %3095 = vmatprep.mubr.f32.mxu0 %v10452_v1  ;;  %3813 = vrot.lane.b32.xlu1 %v7777_v10, %s7627_s24 }
  0x66   : > { %3811 = vrot.lane.b32.xlu0 %v7760_v6, %s7627_s24 }
  0x68   : > { %6367 = vmatmul.mubr.msk.f32.vlgmr.msra.gmra.mrb[0].mxu0 %vm555_vm1, %v6351_v48 }
  0x69   : > { %3399 = vmatprep.mubr.f32.mxu0 %v10452_v1  ;;  %3809 = vrot.lane.b32.xlu1 %v7812_v26, %s7627_s24 }
  0x6a   : > { %3807 = vrot.lane.b32.xlu0 %v7815_v27, %s7627_s24 }
  0x6d   : > { %3817 = vrot.lane.b32.xlu1 %v7783_v12, %s7627_s24 }
  0x6e   : > { %3815 = vrot.lane.b32.xlu0 %v7786_v13, %s7627_s24  ;;  %s10339_s24 = scalar_lea.hbm %s10451_s8, %s10454_s12 }
  0x71   : > { %1549 = vrot.lane.b32.xlu1 %v7793_v18, %s7628_s21 }
  0x72   : > { %1547 = vrot.lane.b32.xlu0 %v7796_v19, %s7628_s21 }
  0x75   : > { %1556 = vrot.lane.b32.xlu1 %v7780_v11, %s7628_s21 }
  0x76   : > { %1554 = vrot.lane.b32.xlu0 %v7763_v7, %s7628_s21 }
  0x79   : > { %1564 = vrot.lane.b32.xlu1 %v7777_v10, %s7628_s21 }
  0x7a   : > { %1562 = vrot.lane.b32.xlu0 %v7760_v6, %s7628_s21 }
  0x7d   : > { %1560 = vrot.lane.b32.xlu1 %v7812_v26, %s7628_s21 }
  0x7e   : > { %1558 = vrot.lane.b32.xlu0 %v7815_v27, %s7628_s21 }
  0x81   : > { %1568 = vrot.lane.b32.xlu1 %v7783_v12, %s7628_s21 }
  0x82   : > { %1566 = vrot.lane.b32.xlu0 %v7786_v13, %s7628_s21 }
  0x85   : > { %4368 = vrot.lane.b32.xlu1 %v7793_v18, %s7629_s25 }
  0x86   : > { %4366 = vrot.lane.b32.xlu0 %v7796_v19, %s7629_s25 }
  0x89   : > { %4375 = vrot.lane.b32.xlu1 %v7780_v11, %s7629_s25 }
  0x8a   : > { %4373 = vrot.lane.b32.xlu0 %v7763_v7, %s7629_s25 }
  0x8d   : > { %4383 = vrot.lane.b32.xlu1 %v7777_v10, %s7629_s25 }
  0x8e   : > { %4381 = vrot.lane.b32.xlu0 %v7760_v6, %s7629_s25 }
  0x91   : > { %4379 = vrot.lane.b32.xlu1 %v7812_v26, %s7629_s25 }
  0x92   : > { %4377 = vrot.lane.b32.xlu0 %v7815_v27, %s7629_s25 }
  0x93   : > { %v487_v51 = vpop.permute.xlu1 %486  ;;  %v479_v52 = vpop.permute.xlu0 %478 }
  0x94   : > { %v494_v55 = vsel %vm475_vm2, %v479_v52, %v487_v51  ;;  %v498_v56 = vsel %vm475_vm2, %v487_v51, %v479_v52  ;;  %v532_v52 = vld [vmem:[%s10447_s4 + $0x8] sm:$0xff] }
  0x95   : > { %v547_v61 = vmul.f32 %v522_v53, %v498_v56  ;;  %v548_v63 = vmul.f32 %v526_v54, %v494_v55  ;;  %v6385_v55 = vld [vmem:[%s10446_s3 + $0x288] sm:$0xff]  ;;  %4387 = vrot.lane.b32.xlu1 %v7783_v12, %s7629_s25 }
  0x96   : > { %4385 = vrot.lane.b32.xlu0 %v7786_v13, %s7629_s25  ;;  %s7630_s25 = smov 1  }
  0x97   : > { %v489_v57 = vpop.permute.xlu1 %488  ;;  %v481_v58 = vpop.permute.xlu0 %480 }
  0x98   : > { %v495_v59 = vsel %vm475_vm2, %v481_v58, %v489_v57  ;;  %v499_v60 = vsel %vm475_vm2, %v489_v57, %v481_v58  ;;  %v6386_v57 = vld [vmem:[%s10446_s3 + $0x290] sm:$0xff] }
  0x99   : > { %v549_v62 = vmul.f32 %v522_v53, %v499_v60  ;;  %v550_v0 = vmul.f32 %v526_v54, %v495_v59  ;;  %2119 = vrot.lane.b32.xlu1 %v7793_v18, %s7630_s25  ;;  %v507_v18 = vld [vmem:[%s10446_s3 + $0x28] sm:$0xff] }
  0x9a   : > { %2117 = vrot.lane.b32.xlu0 %v7796_v19, %s7630_s25  ;;  %v6421_v19 = vld [vmem:[%s10447_s4 + $0x2a8] sm:$0xff] }
  0x9b   : > { %v485_v2 = vpop.permute.xlu1 %484  ;;  %v483_v3 = vpop.permute.xlu0 %482  ;;  %v6680_v8 = vpack.c.bf16 %v550_v0, %v548_v63  ;;  %v6682_v9 = vpack.c.bf16 %v549_v62, %v547_v61 }
  0x9d   : > { %6681 = vmatprep.subr.bf16.mxu1 %v6680_v8  ;;  %v534_v8 = vld [vmem:[%s10447_s4 + $0x18] sm:$0xff]  ;;  %2126 = vrot.lane.b32.xlu1 %v7780_v11, %s7630_s25  ;;  %v6422_v11 = vld [vmem:[%s10447_s4 + $0x2b0] sm:$0xff] }
  0x9e   : > { %6683 = vmatpush1.bf16.msra.mxu1 %v6682_v9  ;;  %v6387_v9 = vld [vmem:[%s10446_s3 + $0x298] sm:$0xff]  ;;  %2124 = vrot.lane.b32.xlu0 %v7763_v7, %s7630_s25  ;;  %v508_v7 = vld [vmem:[%s10446_s3 + $0x30] sm:$0xff] }
  0x9f   : > { %v493_v15 = vpop.permute.xlu1 %492  ;;  %v491_v16 = vpop.permute.xlu0 %490 }
  0xa0   : > { %v497_v21 = vsel %vm475_vm2, %v485_v2, %v493_v15  ;;  %v501_v22 = vsel %vm475_vm2, %v493_v15, %v485_v2  ;;  %v496_v23 = vsel %vm475_vm2, %v483_v3, %v491_v16  ;;  %v500_v24 = vsel %vm475_vm2, %v491_v16, %v483_v3 }
  0xa1   : > { %v553_v29 = vmul.f32 %v522_v53, %v501_v22  ;;  %v554_v30 = vmul.f32 %v526_v54, %v497_v21  ;;  %v551_v32 = vmul.f32 %v522_v53, %v500_v24  ;;  %v552_v34 = vmul.f32 %v526_v54, %v496_v23  ;;  %v6123_v23 = vld [vmem:[%s10448_s5 + $0x2] sm:$0x3]  ;;  %2134 = vrot.lane.b32.xlu1 %v7777_v10, %s7630_s25 }
  0xa2   : > { %v535_v24 = vld [vmem:[%s10447_s4 + $0x20] sm:$0xff]  ;;  %2132 = vrot.lane.b32.xlu0 %v7760_v6, %s7630_s25 }
  0xa3   : > { %v3229_v35 = vpop.permute.xlu1 %3228  ;;  %v3227_v36 = vpop.permute.xlu0 %3226  ;;  %v6684_v37 = vpack.c.bf16 %v554_v30, %v552_v34  ;;  %v6686_v38 = vpack.c.bf16 %v553_v29, %v551_v32  ;;  %v6388_v29 = vld [vmem:[%s10446_s3 + $0x2a0] sm:$0xff]  ;;  %v8086_v34 = vrot.slane %v6123_v23, %v7748_v4 }
  0xa4   : > { %v3231_v39 = vsel %vm3230_vm3, %v3227_v36, %v3229_v35  ;;  %v3232_v40 = vsel %vm3230_vm3, %v3229_v35, %v3227_v36 }
  0xa5   : > { %v3285_v41 = vmul.f32 %v7995_v17, %v3231_v39  ;;  %v3286_v42 = vmul.f32 %v7998_v20, %v3232_v40  ;;  %6685 = vmatprep.subr.bf16.mxu1 %v6684_v37  ;;  %2130 = vrot.lane.b32.xlu1 %v7812_v26, %s7630_s25  ;;  %v6423_v26 = vld [vmem:[%s10447_s4 + $0x2b8] sm:$0xff] }
  0xa6   : > { %6687 = vmatpush1.bf16.msra.mxu1 %v6686_v38  ;;  %2128 = vrot.lane.b32.xlu0 %v7815_v27, %s7630_s25 }
  0xa7   : > { %v472_v45 = vpop.permute.xlu1 %471  ;;  %v470_v46 = vpop.permute.xlu0 %469  ;;  %3335 = vmatprep.subr.mxu0 %v3286_v42  ;;  %v536_v42 = vld [vmem:[%s10447_s4 + $0x28] sm:$0xff] }
  0xa8   : > { %v476_v47 = vsel %vm475_vm2, %v470_v46, %v472_v45  ;;  %v477_v48 = vsel %vm475_vm2, %v472_v45, %v470_v46  ;;  %3336 = vmatpush1.msra.mxu0 %v3285_v41 }
  0xa9   : > { %v529_v50 = vmul.f32 %v522_v53, %v477_v48  ;;  %v530_v51 = vmul.f32 %v526_v54, %v476_v47  ;;  %6091 = vmatmul.mubr.msk.f32.vlgmr.msra.gmra.mrb[0].mxu1 %vm555_vm1, %v531_v43  ;;  %6400 = vmatmul.mubr.msk.f32.vlgmr.msra.gmra.mrb[0].mxu0 %vm765_vm0, %v6384_v44  ;;  %v533_v54 = vld [vmem:[%s10447_s4 + $0x10] sm:$0xff]  ;;  %v6389_v43 = vld [vmem:[%s10446_s3 + $0x2a8] sm:$0xff] }
  0xaa   : > { %674 = vmatprep.mubr.f32.mxu1 %v10452_v1  ;;  %3405 = vmatprep.mubr.f32.mxu0 %v10452_v1 }
  0xab   : > { %814 = vmatprep.subr.mxu1 %v530_v51  ;;  %v3236_v56 = vpop.permute.xlu1 %3235  ;;  %v3234_v53 = vpop.permute.xlu0 %3233  ;;  %v6390_v51 = vld [vmem:[%s10446_s3 + $0x2b0] sm:$0xff]  ;;  %2138 = vrot.lane.b32.xlu1 %v7783_v12, %s7630_s25  ;;  %v6424_v12 = vld [vmem:[%s10447_s4 + $0x2c0] sm:$0xff] }
  0xac   : > { %815 = vmatpush1.msra.mxu1 %v529_v50  ;;  %v537_v50 = vld [vmem:[%s10447_s4 + $0x30] sm:$0xff]  ;;  %2136 = vrot.lane.b32.xlu0 %v7786_v13, %s7630_s25  ;;  %s10294_s25 = sand.u32 1, %s7605_s28  }
  0xad   : > { %6092 = vmatmul.mubr.msk.f32.gmra.mrb[2].mxu1 %vm555_vm1, %v532_v52  ;;  %6401 = vmatmul.mubr.msk.f32.gmra.mrb[32].mxu0 %vm765_vm0, %v6385_v55  ;;  %s6083_s19 = sshll.u32 %s10294_s25, 6 }
  0xae   : > { %680 = vmatprep.mubr.f32.mxu1 %v10452_v1  ;;  %3411 = vmatprep.mubr.f32.mxu0 %v10452_v1  ;;  %s10313_s22 = scalar_lea.vmem [#allocation4], %s6083_s19 }
  0xaf   : > { %v3244_v58 = vpop.permute.xlu1 %3243  ;;  %v3242_v59 = vpop.permute.xlu0 %3241  ;;  %s5889_s21 = sshll.u32 %s10313_s22, 4  ;;  %s10341_s21 = int_to_ptr.vmem [resolvable:$true] %s5889_s21 }
  0xb0   : > { %v3250_v60 = vsel %vm3230_vm3, %v3236_v56, %v3244_v58  ;;  %v3254_v61 = vsel %vm3230_vm3, %v3244_v58, %v3236_v56  ;;  %v3249_v62 = vsel %vm3230_vm3, %v3234_v53, %v3242_v59  ;;  %v3253_v63 = vsel %vm3230_vm3, %v3242_v59, %v3234_v53  ;;  %v538_v56 = vld [vmem:[%s10447_s4 + $0x38] sm:$0xff] }
  0xb1   : > { %6093 = vmatmul.mubr.msk.f32.gmra.mrb[4].mxu1 %vm555_vm1, %v533_v54  ;;  %6402 = vmatmul.mubr.msk.f32.gmra.mrb[34].mxu0 %vm765_vm0, %v6386_v57  ;;  %v3547_v0 = vmul.f32 %v7995_v17, %v3250_v60  ;;  %v3548_v2 = vmul.f32 %v7998_v20, %v3254_v61  ;;  %v3545_v3 = vmul.f32 %v7995_v17, %v3249_v62  ;;  %v6391_v53 = vld [vmem:[%s10446_s3 + $0x2b8] sm:$0xff]  ;;  %v539_v61 = vld [vmem:[%s10447_s4 + $0x40] sm:$0xff] }
  0xb2   : > { %686 = vmatprep.mubr.f32.mxu1 %v10452_v1  ;;  %3417 = vmatprep.mubr.f32.mxu0 %v10452_v1  ;;  %v3546_v14 = vmul.f32 %v7998_v20, %v3253_v63  ;;  %v8153_v54 = vrot.slane %v6123_v23, %v7750_v5  ;;  %v6392_v62 = vld [vmem:[%s10446_s3 + $0x2c0] sm:$0xff] }
  0xb3   : > { %v3240_v15 = vpop.permute.xlu1 %3239  ;;  %v3238_v16 = vpop.permute.xlu0 %3237  ;;  %v6722_v21 = vpack.c.bf16 %v3547_v0, %v3545_v3 }
  0xb4   : > { %v6720_v22 = vpack.c.bf16 %v3548_v2, %v3546_v14  ;;  %v6393_v14 = vld [vmem:[%s10446_s3 + $0x2c8] sm:$0xff] }
  0xb5   : > { %6094 = vmatmul.mubr.msk.f32.gmra.mrb[6].mxu1 %vm555_vm1, %v534_v8  ;;  %6403 = vmatmul.mubr.msk.f32.gmra.mrb[36].mxu0 %vm765_vm0, %v6387_v9  ;;  %v540_v9 = vld [vmem:[%s10447_s4 + $0x48] sm:$0xff] }
  0xb6   : > { %692 = vmatprep.mubr.f32.mxu1 %v10452_v1  ;;  %3423 = vmatprep.mubr.f32.mxu0 %v10452_v1 }
  0xb7   : > { %6721 = vmatprep.subr.bf16.mxu0 %v6720_v22  ;;  %v3248_v30 = vpop.permute.xlu1 %3247  ;;  %v3246_v32 = vpop.permute.xlu0 %3245 }
  0xb8   : > { %6723 = vmatpush1.bf16.msra.mxu0 %v6722_v21  ;;  %v3252_v35 = vsel %vm3230_vm3, %v3240_v15, %v3248_v30  ;;  %v3256_v36 = vsel %vm3230_vm3, %v3248_v30, %v3240_v15  ;;  %v3251_v37 = vsel %vm3230_vm3, %v3238_v16, %v3246_v32  ;;  %v3255_v38 = vsel %vm3230_vm3, %v3246_v32, %v3238_v16  ;;  %v6448_v16 = vld [vmem:[%s10448_s5 + $0xc] sm:$0x3]  ;;  %v541_v32 = vld [vmem:[%s10447_s4 + $0x50] sm:$0xff] }
  0xb9   : > { %6095 = vmatmul.mubr.msk.f32.gmra.mrb[8].mxu1 %vm555_vm1, %v535_v24  ;;  %6404 = vmatmul.mubr.msk.f32.gmra.mrb[38].mxu0 %vm765_vm0, %v6388_v29  ;;  %v3551_v39 = vmul.f32 %v7995_v17, %v3252_v35  ;;  %v3552_v40 = vmul.f32 %v7998_v20, %v3256_v36  ;;  %v3549_v41 = vmul.f32 %v7995_v17, %v3251_v37  ;;  %v6394_v35 = vld [vmem:[%s10446_s3 + $0x2d0] sm:$0xff] }
  0xba   : > { %698 = vmatprep.mubr.f32.mxu1 %v10452_v1  ;;  %3429 = vmatprep.mubr.f32.mxu0 %v10452_v1  ;;  %v3550_v44 = vmul.f32 %v7998_v20, %v3255_v38  ;;  %v8233_v38 = vrot.slane %v6448_v16, %v7748_v4 }
  0xbb   : > { %v8113_v45 = vpop.permute.xlu1 %979  ;;  %v8115_v46 = vpop.permute.xlu0 %977  ;;  %v6726_v17 = vpack.c.bf16 %v3551_v39, %v3549_v41 }
  0xbc   : > { %v6724_v47 = vpack.c.bf16 %v3552_v40, %v3550_v44  ;;  %v982_v48 = vsel %vm981_vm4, %v8115_v46, %v8113_v45 }
  0xbd   : > { %6096 = vmatmul.mubr.msk.f32.gmra.mrb[10].mxu1 %vm555_vm1, %v536_v42  ;;  %6405 = vmatmul.mubr.msk.f32.gmra.mrb[40].mxu0 %vm765_vm0, %v6389_v43  ;;  %v1037_v20 = vmul.f32 %v8086_v34, %v982_v48 }
  0xbe   : > { %704 = vmatprep.mubr.f32.mxu1 %v10452_v1  ;;  %3435 = vmatprep.mubr.f32.mxu0 %v10452_v1 }
  0xbf   : > { %6725 = vmatprep.subr.bf16.mxu0 %v6724_v47  ;;  %1086 = vmatprep.subr.mxu1 %v1037_v20  ;;  %v8136_v52 = vpop.permute.xlu1 %986  ;;  %v6395_v47 = vld [vmem:[%s10446_s3 + $0x2d8] sm:$0xff] }
  0xc0   : > { %6727 = vmatpush1.bf16.msra.mxu0 %v6726_v17  ;;  %v8138_v55 = vpop.permute.xlu0 %984  ;;  %v542_v17 = vld [vmem:[%s10447_s4 + $0x58] sm:$0xff] }
  0xc1   : > { %6097 = vmatmul.mubr.msk.f32.gmra.mrb[12].mxu1 %vm555_vm1, %v537_v50  ;;  %6406 = vmatmul.mubr.msk.f32.gmra.mrb[42].mxu0 %vm765_vm0, %v6390_v51  ;;  %v543_v51 = vld [vmem:[%s10447_s4 + $0x60] sm:$0xff] }
  0xc2   : > { %710 = vmatprep.mubr.f32.mxu1 %v10452_v1  ;;  %3441 = vmatprep.mubr.f32.mxu0 %v10452_v1 }
  0xc3   : > { %v8155_v57 = vpop.permute.xlu1 %994 }
  0xc4   : > { %v1005_v58 = vsel %vm981_vm4, %v8155_v57, %v8136_v52  ;;  %v8163_v59 = vpop.permute.xlu0 %992 }
  0xc5   : > { %6098 = vmatmul.mubr.msk.f32.gmra.mrb[14].mxu1 %vm555_vm1, %v538_v56  ;;  %6407 = vmatmul.mubr.msk.f32.gmra.mrb[44].mxu0 %vm765_vm0, %v6391_v53  ;;  %v8170_v60 = vmul.f32 %v8153_v54, %v1005_v58  ;;  %v1004_v63 = vsel %vm981_vm4, %v8163_v59, %v8138_v55  ;;  %v6396_v56 = vld [vmem:[%s10446_s3 + $0x2e0] sm:$0xff]  ;;  %v8272_v53 = vrot.slane %v6448_v16, %v7750_v5 }
  0xc6   : > { %716 = vmatprep.mubr.f32.mxu1 %v10452_v1  ;;  %3447 = vmatprep.mubr.f32.mxu0 %v10452_v1  ;;  %v8185_v0 = vmul.f32 %v8153_v54, %v1004_v63 }
  0xc7   : > { %v991_v2 = vpop.permute.xlu1 %990 }
  0xc8   : > { %v989_v3 = vpop.permute.xlu0 %988  ;;  %v6690_v8 = vpack.c.bf16 %v8170_v60, %v8185_v0 }
  0xc9   : > { %6099 = vmatmul.mubr.msk.f32.gmra.mrb[16].mxu1 %vm555_vm1, %v539_v61  ;;  %6408 = vmatmul.mubr.msk.f32.gmra.mrb[46].mxu0 %vm765_vm0, %v6392_v62 }
  0xca   : > { %722 = vmatprep.mubr.f32.mxu1 %v10452_v1  ;;  %3453 = vmatprep.mubr.f32.mxu0 %v10452_v1 }
  0xcb   : > { %v999_v15 = vpop.permute.xlu1 %998 }
  0xcc   : > { %v1003_v21 = vsel %vm981_vm4, %v991_v2, %v999_v15  ;;  %v1007_v22 = vsel %vm981_vm4, %v999_v15, %v991_v2  ;;  %v997_v23 = vpop.permute.xlu0 %996 }
  0xcd   : > { %6100 = vmatmul.mubr.msk.f32.gmra.mrb[18].mxu1 %vm555_vm1, %v540_v9  ;;  %6409 = vmatmul.mubr.msk.f32.gmra.mrb[48].mxu0 %vm765_vm0, %v6393_v14  ;;  %v8211_v24 = vmul.f32 %v8153_v54, %v1007_v22  ;;  %v8214_v29 = vmul.f32 %v8086_v34, %v1003_v21  ;;  %v1002_v30 = vsel %vm981_vm4, %v989_v3, %v997_v23  ;;  %v6397_v9 = vld [vmem:[%s10446_s3 + $0x2e8] sm:$0xff]  ;;  %v545_v22 = vld [vmem:[%s10447_s4 + $0x70] sm:$0xff] }
  0xce   : > { %728 = vmatprep.mubr.f32.mxu1 %v10452_v1  ;;  %3459 = vmatprep.mubr.f32.mxu0 %v10452_v1  ;;  %v1006_v36 = vsel %vm981_vm4, %v997_v23, %v989_v3  ;;  %v8229_v37 = vmul.f32 %v8086_v34, %v1002_v30  ;;  %v544_v3 = vld [vmem:[%s10447_s4 + $0x68] sm:$0xff]  ;;  %v6398_v23 = vld [vmem:[%s10446_s3 + $0x2f0] sm:$0xff] }
  0xcf   : > { %v8236_v39 = vmul.f32 %v8153_v54, %v1006_v36  ;;  %v8238_v40 = vpop.permute.xlu1 %3798 }
  0xd0   : > { %v8240_v41 = vpop.permute.xlu0 %3796  ;;  %v6692_v42 = vpack.c.bf16 %v8214_v29, %v8229_v37 }
  0xd1   : > { %6101 = vmatmul.mubr.msk.f32.gmra.mrb[20].mxu1 %vm555_vm1, %v541_v32  ;;  %6410 = vmatmul.mubr.msk.f32.gmra.mrb[50].mxu0 %vm765_vm0, %v6394_v35  ;;  %v3802_v44 = vsel %vm3800_vm5, %v8238_v40, %v8240_v41  ;;  %v1001_v32 = vsel %vm981_vm4, %v8136_v52, %v8155_v57  ;;  %v1000_v35 = vsel %vm981_vm4, %v8138_v55, %v8163_v59  ;;  %v546_v57 = vld [vmem:[%s10447_s4 + $0x78] sm:$0xff] }
  0xd2   : > { %734 = vmatprep.mubr.f32.mxu1 %v10452_v1  ;;  %3465 = vmatprep.mubr.f32.mxu0 %v10452_v1  ;;  %v3856_v48 = vmul.f32 %v8233_v38, %v3802_v44  ;;  %v6399_v59 = vld [vmem:[%s10446_s3 + $0x2f8] sm:$0xff] }
  0xd3   : > { %v3806_v20 = vpop.permute.xlu1 %3805 }
  0xd4   : > { %3905 = vmatprep.subr.mxu0 %v3856_v48  ;;  %v3804_v50 = vpop.permute.xlu0 %3803 }
  0xd5   : > { %6102 = vmatmul.mubr.msk.f32.gmra.mrb[22].mxu1 %vm555_vm1, %v542_v17  ;;  %6411 = vmatmul.mubr.msk.f32.gmra.mrb[52].mxu0 %vm765_vm0, %v6395_v47 }
  0xd6   : > { %740 = vmatprep.mubr.f32.mxu1 %v10452_v1  ;;  %3471 = vmatprep.mubr.f32.mxu0 %v10452_v1 }
  0xd7   : > { %v3814_v58 = vpop.permute.xlu1 %3813 }
  0xd8   : > { %v3820_v61 = vsel %vm3800_vm5, %v3806_v20, %v3814_v58  ;;  %v3812_v62 = vpop.permute.xlu0 %3811 }
  0xd9   : > { %6103 = vmatmul.mubr.msk.f32.gmra.mrb[24].mxu1 %vm555_vm1, %v543_v51  ;;  %6412 = vmatmul.mubr.msk.f32.gmra.mrb[54].mxu0 %vm765_vm0, %v6396_v56  ;;  %v8279_v63 = vmul.f32 %v8272_v53, %v3820_v61  ;;  %v3819_v2 = vsel %vm3800_vm5, %v3804_v50, %v3812_v62  ;;  %v983_v56 = vsel %vm981_vm4, %v8113_v45, %v8115_v46 }
  0xda   : > { %746 = vmatprep.mubr.f32.mxu1 %v10452_v1  ;;  %3477 = vmatprep.mubr.f32.mxu0 %v10452_v1  ;;  %v8292_v14 = vmul.f32 %v8272_v53, %v3819_v2  ;;  %v1299_v61 = vmul.f32 %v8086_v34, %v1001_v32  ;;  %v1297_v2 = vmul.f32 %v8086_v34, %v1000_v35  ;;  %v6418_v35 = vld [vmem:[%s10447_s4 + $0x290] sm:$0xff] }
  0xdb   : > { %v3810_v15 = vpop.permute.xlu1 %3809  ;;  %v3801_v34 = vsel %vm3800_vm5, %v8240_v41, %v8238_v40  ;;  %v1036_v46 = vmul.f32 %v8153_v54, %v983_v56 }
  0xdc   : > { %v6730_v16 = vpack.c.bf16 %v8279_v63, %v8292_v14  ;;  %v3808_v21 = vpop.permute.xlu0 %3807  ;;  %v6126_v63 = vld [vmem:[%s10446_s3 + $0x90] sm:$0xff] }
  0xdd   : > { %6104 = vmatmul.mubr.msk.f32.gmra.mrb[26].mxu1 %vm555_vm1, %v544_v3  ;;  %6413 = vmatmul.mubr.msk.f32.gmra.mrb[56].mxu0 %vm765_vm0, %v6397_v9  ;;  %v3824_v9 = vsel %vm3800_vm5, %v3814_v58, %v3806_v20  ;;  %v502_v20 = vld [vmem:[%s10446_s3] sm:$0xff]  ;;  %v6688_v58 = vpack.c.bf16 %v1299_v61, %v1297_v2  ;;  %v511_v61 = vld [vmem:[%s10446_s3 + $0x48] sm:$0xff]  ;;  %v6451_v14 = vld [vmem:[%s10446_s3 + $0x310] sm:$0xff] }
  0xde   : > { %752 = vmatprep.mubr.f32.mxu1 %v10452_v1  ;;  %3483 = vmatprep.mubr.f32.mxu0 %v10452_v1  ;;  %v6425_v2 = vld [vmem:[%s10447_s4 + $0x2c8] sm:$0xff] }
  0xdf   : > { %v3818_v30 = vpop.permute.xlu1 %3817 }
  0xe0   : > { %v3822_v36 = vsel %vm3800_vm5, %v3810_v15, %v3818_v30  ;;  %v3826_v44 = vsel %vm3800_vm5, %v3818_v30, %v3810_v15  ;;  %v3816_v17 = vpop.permute.xlu0 %3815  ;;  %v3823_v15 = vsel %vm3800_vm5, %v3812_v62, %v3804_v50  ;;  %v6416_v50 = vld [vmem:[%s10447_s4 + $0x280] sm:$0xff]  ;;  %v4118_v62 = vmul.f32 %v8233_v38, %v3824_v9  ;;  %v503_v30 = vld [vmem:[%s10446_s3 + $0x8] sm:$0xff] }
  0xe1   : > { %6105 = vmatmul.mubr.msk.f32.gmra.mrb[28].mxu1 %vm555_vm1, %v545_v22  ;;  %6414 = vmatmul.mubr.msk.f32.gmra.mrb[58].mxu0 %vm765_vm0, %v6398_v23  ;;  %v8321_v47 = vmul.f32 %v8272_v53, %v3822_v36  ;;  %v8324_v52 = vmul.f32 %v8233_v38, %v3826_v44  ;;  %v3821_v55 = vsel %vm3800_vm5, %v3808_v21, %v3816_v17  ;;  %v505_v36 = vld [vmem:[%s10446_s3 + $0x18] sm:$0xff] }
  0xe2   : > { %758 = vmatprep.mubr.f32.mxu1 %v10452_v1  ;;  %3489 = vmatprep.mubr.f32.mxu0 %v10452_v1  ;;  %v3825_v48 = vsel %vm3800_vm5, %v3816_v17, %v3808_v21  ;;  %v8339_v51 = vmul.f32 %v8272_v53, %v3821_v55  ;;  %v4116_v54 = vmul.f32 %v8233_v38, %v3823_v15  ;;  %v6419_v44 = vld [vmem:[%s10447_s4 + $0x298] sm:$0xff]  ;;  %v506_v17 = vld [vmem:[%s10446_s3 + $0x20] sm:$0xff] }
  0xe3   : > { %v8348_v3 = vmul.f32 %v8233_v38, %v3825_v48  ;;  %v8374_v40 = vpop.permute.xlu1 %1549  ;;  %v3855_v23 = vmul.f32 %v8272_v53, %v3801_v34  ;;  %v6417_v38 = vld [vmem:[%s10447_s4 + $0x288] sm:$0xff]  ;;  %v504_v53 = vld [vmem:[%s10446_s3 + $0x10] sm:$0xff]  ;;  %v6420_v55 = vld [vmem:[%s10447_s4 + $0x2a0] sm:$0xff] }
  0xe4   : > { %v8376_v41 = vpop.permute.xlu0 %1547  ;;  %v6728_v32 = vpack.c.bf16 %v4118_v62, %v4116_v54  ;;  %v510_v48 = vld [vmem:[%s10446_s3 + $0x40] sm:$0xff]  ;;  %v512_v34 = vld [vmem:[%s10446_s3 + $0x50] sm:$0xff] }
  0xe5   : > { %6106 = vmatmul.mubr.msk.f32.gmra.mrb[30].mxu1 %vm555_vm1, %v546_v57  ;;  %6415 = vmatmul.mubr.msk.f32.gmra.mrb[60].mxu0 %vm765_vm0, %v6399_v59  ;;  %v8384_v22 = vsel %vm1551_vm6, %v8374_v40, %v8376_v41  ;;  %v509_v57 = vld [vmem:[%s10446_s3 + $0x38] sm:$0xff] }
  0xe6   : > { %878 = vmatprep.mubr.f32.mxu1 %v10452_v1  ;;  %3665 = vmatprep.mubr.f32.mxu0 %v10452_v1 }
  0xe8   : > { %v1555_v54 = vpop.permute.xlu0 %1554 }
  0xe9   : > { %6107 = vmatmul.mubr.msk.f32.vlgmr.msra.gmra.mrb[0].mxu1 %vm765_vm0, %v502_v20  ;;  %6432 = vmatmul.mubr.msk.f32.vlgmr.msra.gmra.mrb[0].mxu0 %vm555_vm1, %v6416_v50  ;;  %v1557_v20 = vpop.permute.xlu1 %1556 }
  0xea   : > { %1087 = vmatpush1.msra.mxu1 %v1036_v46  ;;  %884 = vmatprep.mubr.f32.mxu1 %v10452_v1  ;;  %v6426_v46 = vld [vmem:[%s10447_s4 + $0x2d0] sm:$0xff] }
  0xeb   : > { %3671 = vmatprep.mubr.f32.mxu0 %v10452_v1  ;;  %6689 = vmatprep.subr.bf16.mxu1 %v6688_v58  ;;  %v6188_v58 = vld [vmem:[%s10448_s5 + $0x4] sm:$0x3] }
  0xec   : > { %3906 = vmatpush1.msra.mxu0 %v3855_v23  ;;  %v513_v23 = vld [vmem:[%s10446_s3 + $0x58] sm:$0xff] }
  0xed   : > { %6108 = vmatmul.mubr.msk.f32.gmra.mrb[2].mxu1 %vm765_vm0, %v503_v30  ;;  %6433 = vmatmul.mubr.msk.f32.gmra.mrb[32].mxu0 %vm555_vm1, %v6417_v38  ;;  %v6427_v30 = vld [vmem:[%s10447_s4 + $0x2d8] sm:$0xff]  ;;  %v1565_v38 = vpop.permute.xlu1 %1564 }
  0xee   : > { %890 = vmatprep.mubr.f32.mxu1 %v10452_v1  ;;  %3677 = vmatprep.mubr.f32.mxu0 %v10452_v1 }
  0xef   : > { %6729 = vmatprep.subr.bf16.mxu0 %v6728_v32  ;;  %v8541_v32 = vrot.slane %v6188_v58, %v7750_v5 }
  0xf1   : > { %6109 = vmatmul.mubr.msk.f32.gmra.mrb[4].mxu1 %vm765_vm0, %v504_v53  ;;  %6434 = vmatmul.mubr.msk.f32.gmra.mrb[34].mxu0 %vm555_vm1, %v6418_v35  ;;  %v8544_v53 = vrot.slane %v6188_v58, %v7748_v4 }
  0xf2   : > { %896 = vmatprep.mubr.f32.mxu1 %v10452_v1  ;;  %3683 = vmatprep.mubr.f32.mxu0 %v10452_v1 }
  0xf5   : > { %6110 = vmatmul.mubr.msk.f32.gmra.mrb[6].mxu1 %vm765_vm0, %v505_v36  ;;  %6435 = vmatmul.mubr.msk.f32.gmra.mrb[36].mxu0 %vm555_vm1, %v6419_v44  ;;  %v1571_v36 = vsel %vm1551_vm6, %v1557_v20, %v1565_v38  ;;  %v1575_v44 = vsel %vm1551_vm6, %v1565_v38, %v1557_v20 }
  0xf6   : > { %902 = vmatprep.mubr.f32.mxu1 %v10452_v1  ;;  %3689 = vmatprep.mubr.f32.mxu0 %v10452_v1 }
  0xf9   : > { %6111 = vmatmul.mubr.msk.f32.gmra.mrb[8].mxu1 %vm765_vm0, %v506_v17  ;;  %6436 = vmatmul.mubr.msk.f32.gmra.mrb[38].mxu0 %vm555_vm1, %v6420_v55  ;;  %v8557_v55 = vmul.f32 %v8541_v32, %v1575_v44 }
  0xfa   : > { %908 = vmatprep.mubr.f32.mxu1 %v10452_v1  ;;  %3695 = vmatprep.mubr.f32.mxu0 %v10452_v1 }
  0xfd   : > { %6112 = vmatmul.mubr.msk.f32.gmra.mrb[10].mxu1 %vm765_vm0, %v507_v18  ;;  %6437 = vmatmul.mubr.msk.f32.gmra.mrb[40].mxu0 %vm555_vm1, %v6421_v19  ;;  %v8560_v18 = vmul.f32 %v8544_v53, %v1571_v36  ;;  %v1563_v19 = vpop.permute.xlu0 %1562 }
  0xfe   : > { %914 = vmatprep.mubr.f32.mxu1 %v10452_v1  ;;  %3701 = vmatprep.mubr.f32.mxu0 %v10452_v1 }
  0xff   : > { %v8459_v10 = vpop.f32.mrb[2].mxu0 }
 0x100   : > { %v8465_v6 = vpop.f32.mrb[3].mxu0 }
 0x101   : > { %6113 = vmatmul.mubr.msk.f32.gmra.mrb[12].mxu1 %vm765_vm0, %v508_v7  ;;  %6438 = vmatmul.mubr.msk.f32.gmra.mrb[42].mxu0 %vm555_vm1, %v6422_v11  ;;  %v514_v7 = vld [vmem:[%s10446_s3 + $0x60] sm:$0xff]  ;;  %v1559_v20 = vpop.permute.xlu0 %1558 }
 0x102   : > { %920 = vmatprep.mubr.f32.mxu1 %v10452_v1  ;;  %3707 = vmatprep.mubr.f32.mxu0 %v10452_v1  ;;  %v6428_v11 = vld [vmem:[%s10447_s4 + $0x2e0] sm:$0xff] }
 0x103   : > { %v8477_v59 = vpop.f32.mrb[4].mxu0 }
 0x104   : > { %v8483_v27 = vpop.f32.mrb[5].mxu0 }
 0x105   : > { %6114 = vmatmul.mubr.msk.f32.gmra.mrb[14].mxu1 %vm765_vm0, %v509_v57  ;;  %6439 = vmatmul.mubr.msk.f32.gmra.mrb[44].mxu0 %vm555_vm1, %v6423_v26  ;;  %v1570_v57 = vsel %vm1551_vm6, %v1555_v54, %v1563_v19  ;;  %v1574_v26 = vsel %vm1551_vm6, %v1563_v19, %v1555_v54  ;;  %v515_v54 = vld [vmem:[%s10446_s3 + $0x68] sm:$0xff] }
 0x106   : > { %926 = vmatprep.mubr.f32.mxu1 %v10452_v1  ;;  %3713 = vmatprep.mubr.f32.mxu0 %v10452_v1 }
 0x107   : > { %v8495_v56 = vpop.f32.mrb[6].mxu0 }
 0x108   : > { %v8497_v13 = vpop.f32.mrb[7].mxu0 }
 0x109   : > { %6115 = vmatmul.mubr.msk.f32.gmra.mrb[16].mxu1 %vm765_vm0, %v510_v48  ;;  %6440 = vmatmul.mubr.msk.f32.gmra.mrb[46].mxu0 %vm555_vm1, %v6424_v12  ;;  %v1561_v48 = vpop.permute.xlu1 %1560 }
 0x10a   : > { %932 = vmatprep.mubr.f32.mxu1 %v10452_v1  ;;  %3719 = vmatprep.mubr.f32.mxu0 %v10452_v1 }
 0x10b   : > { %v8509_v9 = vpop.f32.mrb[8].mxu0 }
 0x10c   : > { %v8511_v15 = vpop.f32.mrb[9].mxu0 }
 0x10d   : > { %6116 = vmatmul.mubr.msk.f32.gmra.mrb[18].mxu1 %vm765_vm0, %v511_v61  ;;  %6441 = vmatmul.mubr.msk.f32.gmra.mrb[48].mxu0 %vm555_vm1, %v6425_v2  ;;  %v8577_v61 = vmul.f32 %v8541_v32, %v1574_v26  ;;  %v8580_v2 = vmul.f32 %v8544_v53, %v1570_v57  ;;  %v1567_v57 = vpop.permute.xlu0 %1566  ;;  %v516_v26 = vld [vmem:[%s10446_s3 + $0x70] sm:$0xff] }
 0x10e   : > { %938 = vmatprep.mubr.f32.mxu1 %v10452_v1  ;;  %3725 = vmatprep.mubr.f32.mxu0 %v10452_v1 }
 0x10f   : > { %v8523_v50 = vpop.f32.mrb[10].mxu0 }
 0x110   : > { %v8528_v62 = vpop.f32.mrb[11].mxu0 }
 0x111   : > { %6117 = vmatmul.mubr.msk.f32.gmra.mrb[20].mxu1 %vm765_vm0, %v512_v34  ;;  %6442 = vmatmul.mubr.msk.f32.gmra.mrb[50].mxu0 %vm555_vm1, %v6426_v46  ;;  %v8680_v43 = vpop.permute.xlu0 %4366 }
 0x112   : > { %944 = vmatprep.mubr.f32.mxu1 %v10452_v1  ;;  %3731 = vmatprep.mubr.f32.mxu0 %v10452_v1 }
 0x113   : > { %v8546_v35 = vpop.f32.mrb[12].mxu0 }
 0x114   : > { %v8552_v17 = vpop.f32.mrb[13].mxu0 }
 0x115   : > { %6118 = vmatmul.mubr.msk.f32.gmra.mrb[22].mxu1 %vm765_vm0, %v513_v23  ;;  %6443 = vmatmul.mubr.msk.f32.gmra.mrb[52].mxu0 %vm555_vm1, %v6427_v30  ;;  %v6429_v23 = vld [vmem:[%s10447_s4 + $0x2e8] sm:$0xff]  ;;  %v1569_v30 = vpop.permute.xlu1 %1568 }
 0x116   : > { %950 = vmatprep.mubr.f32.mxu1 %v10452_v1  ;;  %3737 = vmatprep.mubr.f32.mxu0 %v10452_v1  ;;  %v1573_v36 = vsel %vm1551_vm6, %v1561_v48, %v1569_v30  ;;  %v1577_v44 = vsel %vm1551_vm6, %v1569_v30, %v1561_v48  ;;  %v6430_v48 = vld [vmem:[%s10447_s4 + $0x2f0] sm:$0xff]  ;;  %v1572_v30 = vsel %vm1551_vm6, %v1559_v20, %v1567_v57 }
 0x117   : > { %v8574_v12 = vpop.f32.mrb[14].mxu0 }
 0x118   : > { %v8582_v34 = vpop.f32.mrb[15].mxu0 }
 0x119   : > { %6119 = vmatmul.mubr.msk.f32.gmra.mrb[24].mxu1 %vm765_vm0, %v514_v7  ;;  %6444 = vmatmul.mubr.msk.f32.gmra.mrb[54].mxu0 %vm555_vm1, %v6428_v11  ;;  %v8607_v7 = vmul.f32 %v8541_v32, %v1577_v44  ;;  %v8610_v11 = vmul.f32 %v8544_v53, %v1573_v36  ;;  %v8632_v44 = vmul.f32 %v8544_v53, %v1572_v30  ;;  %v8677_v45 = vpop.permute.xlu1 %4368 }
 0x11a   : > { %956 = vmatprep.mubr.f32.mxu1 %v10452_v1  ;;  %3743 = vmatprep.mubr.f32.mxu0 %v10452_v1  ;;  %v4372_v29 = vsel %vm4370_vm7, %v8677_v45, %v8680_v43 }
 0x11b   : > { %v8598_v38 = vpop.f32.mrb[16].mxu0 }
 0x11c   : > { %v8604_v19 = vpop.f32.mrb[17].mxu0 }
 0x11d   : > { %6120 = vmatmul.mubr.msk.f32.gmra.mrb[26].mxu1 %vm765_vm0, %v515_v54  ;;  %6445 = vmatmul.mubr.msk.f32.gmra.mrb[56].mxu0 %vm555_vm1, %v6429_v23  ;;  %v1576_v54 = vsel %vm1551_vm6, %v1567_v57, %v1559_v20  ;;  %v517_v20 = vld [vmem:[%s10446_s3 + $0x78] sm:$0xff] }
 0x11e   : > { %962 = vmatprep.mubr.f32.mxu1 %v10452_v1  ;;  %3749 = vmatprep.mubr.f32.mxu0 %v10452_v1  ;;  %v8629_v36 = vmul.f32 %v8541_v32, %v1576_v54  ;;  %v6431_v57 = vld [vmem:[%s10447_s4 + $0x2f8] sm:$0xff]  ;;  %v6449_v54 = vld [vmem:[%s10446_s3 + $0x300] sm:$0xff] }
 0x11f   : > { %v8626_v23 = vpop.f32.mrb[18].mxu0 }
 0x120   : > { %v8634_v46 = vpop.f32.mrb[19].mxu0 }
 0x121   : > { %6121 = vmatmul.mubr.msk.f32.gmra.mrb[28].mxu1 %vm765_vm0, %v516_v26  ;;  %6446 = vmatmul.mubr.msk.f32.gmra.mrb[58].mxu0 %vm555_vm1, %v6430_v48  ;;  %v6124_v48 = vld [vmem:[%s10446_s3 + $0x80] sm:$0xff] }
 0x122   : > { %968 = vmatprep.mubr.f32.mxu1 %v10452_v1  ;;  %3755 = vmatprep.mubr.f32.mxu0 %v10452_v1 }
 0x123   : > { %v8648_v30 = vpop.f32.mrb[20].mxu0 }
 0x124   : > { %v8650_v26 = vpop.f32.mrb[21].mxu0 }
 0x125   : > { %6122 = vmatmul.mubr.msk.f32.gmra.mrb[30].mxu1 %vm765_vm0, %v517_v20  ;;  %6447 = vmatmul.mubr.msk.f32.gmra.mrb[60].mxu0 %vm555_vm1, %v6431_v57  ;;  %v8669_v20 = vld [vmem:[%s10448_s5 + $0xe] sm:$0x3]  ;;  %v1552_v57 = vsel %vm1551_vm6, %v8376_v41, %v8374_v40 }
 0x126   : > { %1150 = vmatprep.mubr.f32.mxu1 %v10452_v1  ;;  %3969 = vmatprep.mubr.f32.mxu0 %v10452_v1  ;;  %v6450_v40 = vld [vmem:[%s10446_s3 + $0x308] sm:$0xff]  ;;  %v8700_v60 = vrot.slane %v8669_v20, %v7748_v4 }
 0x127   : > { %v8662_v58 = vpop.f32.mrb[22].mxu0 }
 0x128   : > { %v8664_v21 = vpop.f32.mrb[23].mxu0 }
 0x129   : > { %6140 = vmatmul.mubr.msk.f32.vlgmr.msra.gmra.mrb[0].mxu1 %vm765_vm0, %v6124_v48  ;;  %6465 = vmatmul.mubr.msk.f32.vlgmr.msra.gmra.mrb[0].mxu0 %vm765_vm0, %v6449_v54  ;;  %v6125_v48 = vld [vmem:[%s10446_s3 + $0x88] sm:$0xff] }
 0x12a   : > { %6691 = vmatpush1.bf16.msra.mxu1 %v6690_v8  ;;  %1156 = vmatprep.mubr.f32.mxu1 %v10452_v1  ;;  %v1607_v8 = vmul.f32 %v8544_v53, %v1552_v57  ;;  %v10466_v53 = vpack.c.bf16 %v8321_v47, %v8339_v51  ;;  %v6452_v47 = vld [vmem:[%s10446_s3 + $0x318] sm:$0xff] }
 0x12b   : > { %6693 = vmatprep.subr.bf16.mxu1 %v6692_v42  ;;  %3975 = vmatprep.mubr.f32.mxu0 %v10452_v1  ;;  %v8702_v0 = vpop.f32.mrb[24].mxu0  ;;  %v10463_v42 = vpack.c.bf16 %v8211_v24, %v8236_v39  ;;  %v4426_v24 = vmul.f32 %v8700_v60, %v4372_v29 }
 0x12c   : > { %10461 = vst [vmem:[#allocation8_spill] sm:$0xff] %v8702_v0  ;;  %6731 = vmatpush1.bf16.msra.mxu0 %v6730_v16  ;;  %v8712_v37 = vpop.f32.mrb[25].mxu0  ;;  %v10464_v16 = vpack.c.bf16 %v8324_v52, %v8348_v3  ;;  %v6127_v52 = vld [vmem:[%s10446_s3 + $0x98] sm:$0xff]  ;;  %v7501_v3 = vld [vmem:[%s7768_s14 + $0x8] sm:$0xff] }
 0x12d   : > { %10462 = vst [vmem:[#allocation9_spill] sm:$0xff] %v8712_v37  ;;  %6141 = vmatmul.mubr.msk.f32.gmra.mrb[2].mxu1 %vm765_vm0, %v6125_v48  ;;  %6466 = vmatmul.mubr.msk.f32.gmra.mrb[32].mxu0 %vm765_vm0, %v6450_v40  ;;  %v7502_v48 = vld [vmem:[%s7768_s14] sm:$0xff]  ;;  %s7515_s14 = sshll.u32 %s7633_s23, 4  ;;  %s7516_s14 = int_to_ptr.vmem [resolvable:$false] %s7515_s14 }
 0x12e   : > { %6695 = vmatpush1.bf16.msra.mxu1 %v10463_v42  ;;  %1162 = vmatprep.mubr.f32.mxu1 %v10452_v1  ;;  %v6128_v40 = vld [vmem:[%s10446_s3 + $0xa0] sm:$0xff]  ;;  %v7503_v42 = vld [vmem:[%s7757_s26 + $0x10] sm:$0xff]  ;;  %s7517_s12 = scalar_lea.vmem %s7516_s14, 2048  ;;  %p7518_p1 = scmp.lt.s32.totalorder %s10341_s21, %s7516_s14 }
 0x12f   : > { %3981 = vmatprep.mubr.f32.mxu0 %v10452_v1  ;;  %6733 = vmatprep.subr.bf16.mxu0 %v10464_v16  ;;  %v8731_v39 = vpop.f32.mrb[26].mxu0  ;;  %v6129_v16 = vld [vmem:[%s10446_s3 + $0xa8] sm:$0xff] }
 0x130   : > { %10465 = vst [vmem:[#allocation10_spill] sm:$0xff] %v8731_v39  ;;  %6735 = vmatpush1.bf16.msra.mxu0 %v10466_v53  ;;  %1656 = vmatprep.subr.mxu1 %v1607_v8  ;;  %v8736_v54 = vpop.f32.mrb[27].mxu0  ;;  %v6453_v8 = vld [vmem:[%s10446_s3 + $0x320] sm:$0xff]  ;;  %v7505_v53 = vld [vmem:[%s7757_s26 + $0x18] sm:$0xff] }
 0x131   : > { %10467 = vst [vmem:[#allocation11_spill] sm:$0xff] %v8736_v54  ;;  %6142 = vmatmul.mubr.msk.f32.gmra.mrb[4].mxu1 %vm765_vm0, %v6126_v63  ;;  %6467 = vmatmul.mubr.msk.f32.gmra.mrb[34].mxu0 %vm765_vm0, %v6451_v14  ;;  %v7504_v14 = vld [vmem:[%s7757_s26] sm:$0xff] }
 0x132   : > { %1168 = vmatprep.mubr.f32.mxu1 %v10452_v1  ;;  %3987 = vmatprep.mubr.f32.mxu0 %v10452_v1 }
 0x133   : > { %4475 = vmatprep.subr.mxu0 %v4426_v24  ;;  %v8748_v51 = vpop.f32.mrb[28].mxu0  ;;  %4938 = vrot.lane.b32.xlu1 %v7501_v3, %s7631_s20  ;;  %v6454_v24 = vld [vmem:[%s10446_s3 + $0x328] sm:$0xff]  ;;  %v6455_v3 = vld [vmem:[%s10446_s3 + $0x330] sm:$0xff] }
 0x134   : > { %10468 = vst [vmem:[#allocation12_spill] sm:$0xff] %v8748_v51  ;;  %v8752_v57 = vpop.f32.mrb[29].mxu0  ;;  %4936 = vrot.lane.b32.xlu0 %v7502_v48, %s7631_s20  ;;  %v7507_v48 = vld [vmem:[%s7757_s26 + $0x30] sm:$0xff] }
 0x135   : > { %10469 = vst [vmem:[#allocation13_spill] sm:$0xff] %v8752_v57  ;;  %6143 = vmatmul.mubr.msk.f32.gmra.mrb[6].mxu1 %vm765_vm0, %v6127_v52  ;;  %6468 = vmatmul.mubr.msk.f32.gmra.mrb[36].mxu0 %vm765_vm0, %v6452_v47  ;;  %v7506_v52 = vld [vmem:[%s7757_s26 + $0x8] sm:$0xff]  ;;  %v6130_v47 = vld [vmem:[%s10446_s3 + $0xb0] sm:$0xff] }
 0x136   : > { %1174 = vmatprep.mubr.f32.mxu1 %v10452_v1  ;;  %3993 = vmatprep.mubr.f32.mxu0 %v10452_v1 }
 0x137   : > { %v8766_v29 = vpop.f32.mrb[30].mxu0  ;;  %4945 = vrot.lane.b32.xlu1 %v7503_v42, %s7631_s20  ;;  %v6456_v42 = vld [vmem:[%s10446_s3 + $0x338] sm:$0xff] }
 0x138   : > { %10470 = vst [vmem:[#allocation14_spill] sm:$0xff] %v8766_v29  ;;  %v8770_v63 = vpop.f32.mrb[31].mxu0  ;;  %4943 = vrot.lane.b32.xlu0 %v7504_v14, %s7631_s20  ;;  %v7509_v14 = vld [vmem:[%s7757_s26 + $0x38] sm:$0xff]  ;;  %v6463_v29 = vld [vmem:[%s10446_s3 + $0x370] sm:$0xff] }
 0x139   : > { %10471 = vst [vmem:[#allocation15_spill] sm:$0xff] %v8770_v63  ;;  %6144 = vmatmul.mubr.msk.f32.gmra.mrb[8].mxu1 %vm765_vm0, %v6128_v40  ;;  %6469 = vmatmul.mubr.msk.f32.gmra.mrb[38].mxu0 %vm765_vm0, %v6453_v8  ;;  %v7508_v40 = vld [vmem:[%s7757_s26 + $0x20] sm:$0xff]  ;;  %v6131_v8 = vld [vmem:[%s10446_s3 + $0xb8] sm:$0xff]  ;;  %v10472_v63 = vmov 0.0  }
 0x13a   : > { %1180 = vmatprep.mubr.f32.mxu1 %v10452_v1  ;;  %3999 = vmatprep.mubr.f32.mxu0 %v10452_v1 }
 0x13b   : > { %4953 = vrot.lane.b32.xlu1 %v7505_v53, %s7631_s20  ;;  %v6457_v53 = vld [vmem:[%s10446_s3 + $0x340] sm:$0xff] }
 0x13c   : > { %4951 = vrot.lane.b32.xlu0 %v7506_v52, %s7631_s20  ;;  %v6133_v52 = vld [vmem:[%s10446_s3 + $0xc8] sm:$0xff] }
 0x13d   : > { %6145 = vmatmul.mubr.msk.f32.gmra.mrb[10].mxu1 %vm765_vm0, %v6129_v16  ;;  %6470 = vmatmul.mubr.msk.f32.gmra.mrb[40].mxu0 %vm765_vm0, %v6454_v24  ;;  %v7510_v16 = vld [vmem:[%s7757_s26 + $0x28] sm:$0xff]  ;;  %v6132_v24 = vld [vmem:[%s10446_s3 + $0xc0] sm:$0xff]  ;;  %s10346_s26 = scalar_lea.vmem [#allocation2], %s6083_s19 }
 0x13e   : > { %1186 = vmatprep.mubr.f32.mxu1 %v10452_v1  ;;  %4005 = vmatprep.mubr.f32.mxu0 %v10452_v1 }
 0x13f   : > { %4949 = vrot.lane.b32.xlu1 %v7507_v48, %s7631_s20  ;;  %v6459_v48 = vld [vmem:[%s10446_s3 + $0x350] sm:$0xff] }
 0x140   : > { %4947 = vrot.lane.b32.xlu0 %v7508_v40, %s7631_s20  ;;  %v4376_v40 = vpop.permute.xlu1 %4375 }
 0x141   : > { %6146 = vmatmul.mubr.msk.f32.gmra.mrb[12].mxu1 %vm765_vm0, %v6130_v47  ;;  %6471 = vmatmul.mubr.msk.f32.gmra.mrb[42].mxu0 %vm765_vm0, %v6455_v3  ;;  %v6458_v47 = vld [vmem:[%s10446_s3 + $0x348] sm:$0xff]  ;;  %v6134_v3 = vld [vmem:[%s10446_s3 + $0xd0] sm:$0xff] }
 0x142   : > { %1192 = vmatprep.mubr.f32.mxu1 %v10452_v1  ;;  %4011 = vmatprep.mubr.f32.mxu0 %v10452_v1 }
 0x143   : > { %4957 = vrot.lane.b32.xlu1 %v7509_v14, %s7631_s20  ;;  %v6460_v14 = vld [vmem:[%s10446_s3 + $0x358] sm:$0xff] }
 0x144   : > { %4955 = vrot.lane.b32.xlu0 %v7510_v16, %s7631_s20  ;;  %v4418_v16 = vrot.slane %v8669_v20, %v7750_v5 }
 0x145   : > { %6147 = vmatmul.mubr.msk.f32.gmra.mrb[14].mxu1 %vm765_vm0, %v6131_v8  ;;  %6472 = vmatmul.mubr.msk.f32.gmra.mrb[44].mxu0 %vm765_vm0, %v6456_v42  ;;  %v4374_v8 = vpop.permute.xlu0 %4373  ;;  %v6135_v42 = vld [vmem:[%s10446_s3 + $0xd8] sm:$0xff] }
 0x146   : > { %1198 = vmatprep.mubr.f32.mxu1 %v10452_v1  ;;  %4017 = vmatprep.mubr.f32.mxu0 %v10452_v1 }
 0x149   : > { %6148 = vmatmul.mubr.msk.f32.gmra.mrb[16].mxu1 %vm765_vm0, %v6132_v24  ;;  %6473 = vmatmul.mubr.msk.f32.gmra.mrb[46].mxu0 %vm765_vm0, %v6457_v53  ;;  %v4384_v24 = vpop.permute.xlu1 %4383  ;;  %v4382_v53 = vpop.permute.xlu0 %4381 }
 0x14a   : > { %1204 = vmatprep.mubr.f32.mxu1 %v10452_v1  ;;  %4023 = vmatprep.mubr.f32.mxu0 %v10452_v1  ;;  %v4389_v20 = vsel %vm4370_vm7, %v4374_v8, %v4382_v53 }
 0x14d   : > { %6149 = vmatmul.mubr.msk.f32.gmra.mrb[18].mxu1 %vm765_vm0, %v6133_v52  ;;  %6474 = vmatmul.mubr.msk.f32.gmra.mrb[48].mxu0 %vm765_vm0, %v6458_v47  ;;  %v6136_v52 = vld [vmem:[%s10446_s3 + $0xe0] sm:$0xff]  ;;  %v4380_v41 = vpop.permute.xlu1 %4379 }
 0x14e   : > { %1210 = vmatprep.mubr.f32.mxu1 %v10452_v1  ;;  %4029 = vmatprep.mubr.f32.mxu0 %v10452_v1  ;;  %v6461_v47 = vld [vmem:[%s10446_s3 + $0x360] sm:$0xff] }
 0x151   : > { %6150 = vmatmul.mubr.msk.f32.gmra.mrb[20].mxu1 %vm765_vm0, %v6134_v3  ;;  %6475 = vmatmul.mubr.msk.f32.gmra.mrb[50].mxu0 %vm765_vm0, %v6459_v48  ;;  %v4390_v3 = vsel %vm4370_vm7, %v4376_v40, %v4384_v24 }
 0x152   : > { %1216 = vmatprep.mubr.f32.mxu1 %v10452_v1  ;;  %4035 = vmatprep.mubr.f32.mxu0 %v10452_v1  ;;  %v8872_v48 = vmul.f32 %v4418_v16, %v4390_v3  ;;  %v6137_v3 = vld [vmem:[%s10446_s3 + $0xe8] sm:$0xff] }
 0x155   : > { %6151 = vmatmul.mubr.msk.f32.gmra.mrb[22].mxu1 %vm765_vm0, %v6135_v42  ;;  %6476 = vmatmul.mubr.msk.f32.gmra.mrb[52].mxu0 %vm765_vm0, %v6460_v14  ;;  %v8874_v42 = vmul.f32 %v4418_v16, %v4389_v20  ;;  %v6462_v20 = vld [vmem:[%s10446_s3 + $0x368] sm:$0xff]  ;;  %v6138_v14 = vld [vmem:[%s10446_s3 + $0xf0] sm:$0xff] }
 0x156   : > { %1222 = vmatprep.mubr.f32.mxu1 %v10452_v1  ;;  %4041 = vmatprep.mubr.f32.mxu0 %v10452_v1  ;;  %v4378_v1 = vpop.permute.xlu0 %4377 }
 0x159   : > { %6152 = vmatmul.mubr.msk.f32.gmra.mrb[24].mxu1 %vm765_vm0, %v6136_v52  ;;  %6477 = vmatmul.mubr.msk.f32.gmra.mrb[54].mxu0 %vm765_vm0, %v6461_v47  ;;  %v4388_v52 = vpop.permute.xlu1 %4387 }
 0x15a   : > { %1228 = vmatprep.mubr.f32.mxu1 %v10472_v63  ;;  %4047 = vmatprep.mubr.f32.mxu0 %v10472_v63  ;;  %v4386_v47 = vpop.permute.xlu0 %4385  ;;  %v4392_v57 = vsel %vm4370_vm7, %v4380_v41, %v4388_v52 }
 0x15b   : > { %v8904_v51 = vmul.f32 %v4418_v16, %v4392_v57  ;;  %v4395_v39 = vsel %vm4370_vm7, %v4386_v47, %v4378_v1 }
 0x15c   : > { %v8914_v0 = vmul.f32 %v8700_v60, %v4395_v39  ;;  %v6464_v39 = vld [vmem:[%s10446_s3 + $0x378] sm:$0xff] }
 0x15d   : > { %6153 = vmatmul.mubr.msk.f32.gmra.mrb[26].mxu1 %vm765_vm0, %v6137_v3  ;;  %6478 = vmatmul.mubr.msk.f32.gmra.mrb[56].mxu0 %vm765_vm0, %v6462_v20  ;;  %v4396_v3 = vsel %vm4370_vm7, %v4388_v52, %v4380_v41  ;;  %v4391_v20 = vsel %vm4370_vm7, %v4378_v1, %v4386_v47  ;;  %v6139_v1 = vld [vmem:[%s10446_s3 + $0xf8] sm:$0xff]  ;;  %v4371_v52 = vsel %vm4370_vm7, %v8680_v43, %v8677_v45 }
 0x15e   : > { %1234 = vmatprep.mubr.f32.mxu1 %v10472_v63  ;;  %4053 = vmatprep.mubr.f32.mxu0 %v10472_v63  ;;  %v8907_v54 = vmul.f32 %v8700_v60, %v4396_v3  ;;  %v8911_v37 = vmul.f32 %v4418_v16, %v4391_v20  ;;  %v1606_v47 = vmul.f32 %v8541_v32, %v8384_v22  ;;  %v8953_v43 = vpop.permute.xlu0 %2117  ;;  %v6157_v3 = vld [vmem:[%s10447_s4 + $0x88] sm:$0xff] }
 0x160   : > { %v6742_v41 = vpack.c.bf16 %v8904_v51, %v8911_v37  ;;  %v6740_v57 = vpack.c.bf16 %v8907_v54, %v8914_v0  ;;  %v6193_v0 = vld [vmem:[%s10446_s3 + $0x120] sm:$0xff]  ;;  %v6194_v54 = vld [vmem:[%s10446_s3 + $0x128] sm:$0xff] }
 0x161   : > { %6154 = vmatmul.mubr.msk.f32.gmra.mrb[28].mxu1 %vm765_vm0, %v6138_v14  ;;  %6479 = vmatmul.mubr.msk.f32.gmra.mrb[58].mxu0 %vm765_vm0, %v6463_v29  ;;  %v4394_v29 = vsel %vm4370_vm7, %v4384_v24, %v4376_v40  ;;  %v4393_v14 = vsel %vm4370_vm7, %v4382_v53, %v4374_v8  ;;  %v6156_v40 = vld [vmem:[%s10447_s4 + $0x80] sm:$0xff]  ;;  %v8951_v24 = vpop.permute.xlu1 %2119  ;;  %v4425_v53 = vmul.f32 %v4418_v16, %v4371_v52  ;;  %v6161_v52 = vld [vmem:[%s10447_s4 + $0xa8] sm:$0xff] }
 0x162   : > { %1240 = vmatprep.mubr.f32.mxu1 %v10472_v63  ;;  %4059 = vmatprep.mubr.f32.mxu0 %v10472_v63  ;;  %v6481_v8 = vld [vmem:[%s10447_s4 + $0x300] sm:$0xff]  ;;  %v4688_v45 = vmul.f32 %v8700_v60, %v4394_v29  ;;  %v4686_v22 = vmul.f32 %v8700_v60, %v4393_v14  ;;  %v8961_v32 = vsel %vm2121_vm8, %v8951_v24, %v8953_v43  ;;  %v6482_v60 = vld [vmem:[%s10447_s4 + $0x308] sm:$0xff] }
 0x163   : > { %v10473_v16 = vpack.c.bf16 %v8560_v18, %v8580_v2  ;;  %v6159_v18 = vld [vmem:[%s10447_s4 + $0x98] sm:$0xff]  ;;  %v6160_v29 = vld [vmem:[%s10447_s4 + $0xa0] sm:$0xff]  ;;  %v6519_v51 = vld [vmem:[%s10446_s3 + $0x3a8] sm:$0xff] }
 0x164   : > { %v6736_v20 = vpack.c.bf16 %v4688_v45, %v4686_v22  ;;  %v6484_v2 = vld [vmem:[%s10447_s4 + $0x318] sm:$0xff]  ;;  %v6485_v14 = vld [vmem:[%s10447_s4 + $0x320] sm:$0xff] }
 0x165   : > { %6155 = vmatmul.mubr.msk.f32.gmra.mrb[30].mxu1 %vm765_vm0, %v6139_v1  ;;  %6480 = vmatmul.mubr.msk.f32.gmra.mrb[60].mxu0 %vm765_vm0, %v6464_v39  ;;  %v6158_v1 = vld [vmem:[%s10447_s4 + $0x90] sm:$0xff]  ;;  %v6163_v45 = vld [vmem:[%s10447_s4 + $0xb8] sm:$0xff]  ;;  %v6518_v37 = vld [vmem:[%s10446_s3 + $0x3a0] sm:$0xff] }
 0x166   : > { %1416 = vmatprep.mubr.f32.mxu1 %v10472_v63  ;;  %4235 = vmatprep.mubr.f32.mxu0 %v10472_v63  ;;  %v6483_v39 = vld [vmem:[%s10447_s4 + $0x310] sm:$0xff]  ;;  %v6488_v22 = vld [vmem:[%s10447_s4 + $0x338] sm:$0xff] }
 0x169   : > { %6172 = vmatmul.mubr.msk.f32.vlgmr.msra.gmra.mrb[0].mxu1 %vm555_vm1, %v6156_v40  ;;  %6497 = vmatmul.mubr.msk.f32.vlgmr.msra.gmra.mrb[0].mxu0 %vm555_vm1, %v6481_v8  ;;  %v6162_v40 = vld [vmem:[%s10447_s4 + $0xb0] sm:$0xff] }
 0x16a   : > { %1657 = vmatpush1.msra.mxu1 %v1606_v47  ;;  %1422 = vmatprep.mubr.f32.mxu1 %v10472_v63  ;;  %v6486_v47 = vld [vmem:[%s10447_s4 + $0x328] sm:$0xff]  ;;  %v6487_v8 = vld [vmem:[%s10447_s4 + $0x330] sm:$0xff] }
 0x16b   : > { %4241 = vmatprep.mubr.f32.mxu0 %v10472_v63  ;;  %6697 = vmatprep.subr.bf16.mxu1 %v10473_v16  ;;  %v6490_v16 = vld [vmem:[%s10447_s4 + $0x348] sm:$0xff] }
 0x16c   : > { %4476 = vmatpush1.msra.mxu0 %v4425_v53  ;;  %v6164_v53 = vld [vmem:[%s10447_s4 + $0xc0] sm:$0xff] }
 0x16d   : > { %6173 = vmatmul.mubr.msk.f32.gmra.mrb[2].mxu1 %vm555_vm1, %v6157_v3  ;;  %6498 = vmatmul.mubr.msk.f32.gmra.mrb[32].mxu0 %vm555_vm1, %v6482_v60  ;;  %v6489_v3 = vld [vmem:[%s10447_s4 + $0x340] sm:$0xff]  ;;  %v6165_v60 = vld [vmem:[%s10447_s4 + $0xc8] sm:$0xff] }
 0x16e   : > { %1428 = vmatprep.mubr.f32.mxu1 %v10472_v63  ;;  %4247 = vmatprep.mubr.f32.mxu0 %v10472_v63 }
 0x16f   : > { %6737 = vmatprep.subr.bf16.mxu0 %v6736_v20  ;;  %v6166_v20 = vld [vmem:[%s10447_s4 + $0xd0] sm:$0xff] }
 0x171   : > { %6174 = vmatmul.mubr.msk.f32.gmra.mrb[4].mxu1 %vm555_vm1, %v6158_v1  ;;  %6499 = vmatmul.mubr.msk.f32.gmra.mrb[34].mxu0 %vm555_vm1, %v6483_v39  ;;  %v6491_v1 = vld [vmem:[%s10447_s4 + $0x350] sm:$0xff]  ;;  %v2127_v39 = vpop.permute.xlu1 %2126 }
 0x172   : > { %1434 = vmatprep.mubr.f32.mxu1 %v10472_v63  ;;  %4253 = vmatprep.mubr.f32.mxu0 %v10472_v63 }
 0x175   : > { %6175 = vmatmul.mubr.msk.f32.gmra.mrb[6].mxu1 %vm555_vm1, %v6159_v18  ;;  %6500 = vmatmul.mubr.msk.f32.gmra.mrb[36].mxu0 %vm555_vm1, %v6484_v2  ;;  %v6253_v18 = vld [vmem:[%s10448_s5 + $0x6] sm:$0x3]  ;;  %v2125_v2 = vpop.permute.xlu0 %2124 }
 0x176   : > { %1440 = vmatprep.mubr.f32.mxu1 %v10472_v63  ;;  %4259 = vmatprep.mubr.f32.mxu0 %v10472_v63 }
 0x179   : > { %6176 = vmatmul.mubr.msk.f32.gmra.mrb[8].mxu1 %vm555_vm1, %v6160_v29  ;;  %6501 = vmatmul.mubr.msk.f32.gmra.mrb[38].mxu0 %vm555_vm1, %v6485_v14  ;;  %v6167_v29 = vld [vmem:[%s10447_s4 + $0xd8] sm:$0xff] }
 0x17a   : > { %1446 = vmatprep.mubr.f32.mxu1 %v10472_v63  ;;  %4265 = vmatprep.mubr.f32.mxu0 %v10472_v63  ;;  %v6492_v14 = vld [vmem:[%s10447_s4 + $0x358] sm:$0xff] }
 0x17d   : > { %6177 = vmatmul.mubr.msk.f32.gmra.mrb[10].mxu1 %vm555_vm1, %v6161_v52  ;;  %6502 = vmatmul.mubr.msk.f32.gmra.mrb[40].mxu0 %vm555_vm1, %v6486_v47  ;;  %v2135_v52 = vpop.permute.xlu1 %2134  ;;  %v9080_v47 = vrot.slane %v6253_v18, %v7750_v5 }
 0x17e   : > { %1452 = vmatprep.mubr.f32.mxu1 %v10472_v63  ;;  %4271 = vmatprep.mubr.f32.mxu0 %v10472_v63 }
 0x181   : > { %6178 = vmatmul.mubr.msk.f32.gmra.mrb[12].mxu1 %vm555_vm1, %v6162_v40  ;;  %6503 = vmatmul.mubr.msk.f32.gmra.mrb[42].mxu0 %vm555_vm1, %v6487_v8  ;;  %v9083_v40 = vrot.slane %v6253_v18, %v7748_v4  ;;  %v2141_v8 = vsel %vm2121_vm8, %v2127_v39, %v2135_v52 }
 0x182   : > { %1458 = vmatprep.mubr.f32.mxu1 %v10472_v63  ;;  %4277 = vmatprep.mubr.f32.mxu0 %v10472_v63 }
 0x185   : > { %6179 = vmatmul.mubr.msk.f32.gmra.mrb[14].mxu1 %vm555_vm1, %v6163_v45  ;;  %6504 = vmatmul.mubr.msk.f32.gmra.mrb[44].mxu0 %vm555_vm1, %v6488_v22  ;;  %v2145_v45 = vsel %vm2121_vm8, %v2135_v52, %v2127_v39  ;;  %v2131_v39 = vpop.permute.xlu1 %2130 }
 0x186   : > { %1464 = vmatprep.mubr.f32.mxu1 %v10472_v63  ;;  %4283 = vmatprep.mubr.f32.mxu0 %v10472_v63  ;;  %v9092_v22 = vmul.f32 %v9080_v47, %v2145_v45  ;;  %v6494_v45 = vld [vmem:[%s10447_s4 + $0x368] sm:$0xff] }
 0x189   : > { %6180 = vmatmul.mubr.msk.f32.gmra.mrb[16].mxu1 %vm555_vm1, %v6164_v53  ;;  %6505 = vmatmul.mubr.msk.f32.gmra.mrb[46].mxu0 %vm555_vm1, %v6489_v3  ;;  %v9095_v53 = vmul.f32 %v9083_v40, %v2141_v8  ;;  %v2133_v3 = vpop.permute.xlu0 %2132  ;;  %v6170_v8 = vld [vmem:[%s10447_s4 + $0xf0] sm:$0xff] }
 0x18a   : > { %1470 = vmatprep.mubr.f32.mxu1 %v10472_v63  ;;  %4289 = vmatprep.mubr.f32.mxu0 %v10472_v63 }
 0x18d   : > { %6181 = vmatmul.mubr.msk.f32.gmra.mrb[18].mxu1 %vm555_vm1, %v6165_v60  ;;  %6506 = vmatmul.mubr.msk.f32.gmra.mrb[48].mxu0 %vm555_vm1, %v6490_v16  ;;  %v6168_v60 = vld [vmem:[%s10447_s4 + $0xe0] sm:$0xff]  ;;  %v2129_v52 = vpop.permute.xlu0 %2128 }
 0x18e   : > { %1476 = vmatprep.mubr.f32.mxu1 %v10472_v63  ;;  %4295 = vmatprep.mubr.f32.mxu0 %v10472_v63  ;;  %v6493_v16 = vld [vmem:[%s10447_s4 + $0x360] sm:$0xff] }
 0x191   : > { %6182 = vmatmul.mubr.msk.f32.gmra.mrb[20].mxu1 %vm555_vm1, %v6166_v20  ;;  %6507 = vmatmul.mubr.msk.f32.gmra.mrb[50].mxu0 %vm555_vm1, %v6491_v1  ;;  %v2140_v20 = vsel %vm2121_vm8, %v2125_v2, %v2133_v3  ;;  %v2144_v1 = vsel %vm2121_vm8, %v2133_v3, %v2125_v2  ;;  %v6169_v2 = vld [vmem:[%s10447_s4 + $0xe8] sm:$0xff]  ;;  %v2139_v3 = vpop.permute.xlu1 %2138 }
 0x192   : > { %1482 = vmatprep.mubr.f32.mxu1 %v10472_v63  ;;  %4301 = vmatprep.mubr.f32.mxu0 %v10472_v63  ;;  %v9110_v18 = vmul.f32 %v9080_v47, %v2144_v1 }
 0x195   : > { %6183 = vmatmul.mubr.msk.f32.gmra.mrb[22].mxu1 %vm555_vm1, %v6167_v29  ;;  %6508 = vmatmul.mubr.msk.f32.gmra.mrb[52].mxu0 %vm555_vm1, %v6492_v14  ;;  %v9113_v29 = vmul.f32 %v9083_v40, %v2140_v20  ;;  %v2137_v14 = vpop.permute.xlu0 %2136 }
 0x196   : > { %1488 = vmatprep.mubr.f32.mxu1 %v10472_v63  ;;  %4307 = vmatprep.mubr.f32.mxu0 %v10472_v63 }
 0x199   : > { %6184 = vmatmul.mubr.msk.f32.gmra.mrb[24].mxu1 %vm555_vm1, %v6168_v60  ;;  %6509 = vmatmul.mubr.msk.f32.gmra.mrb[54].mxu0 %vm555_vm1, %v6493_v16  ;;  %v2143_v60 = vsel %vm2121_vm8, %v2131_v39, %v2139_v3  ;;  %v2147_v16 = vsel %vm2121_vm8, %v2139_v3, %v2131_v39  ;;  %v6495_v39 = vld [vmem:[%s10447_s4 + $0x370] sm:$0xff]  ;;  %v2142_v3 = vsel %vm2121_vm8, %v2129_v52, %v2137_v14 }
 0x19a   : > { %1494 = vmatprep.mubr.f32.mxu1 %v10472_v63  ;;  %4313 = vmatprep.mubr.f32.mxu0 %v10472_v63  ;;  %v9134_v20 = vmul.f32 %v9080_v47, %v2147_v16  ;;  %v9137_v1 = vmul.f32 %v9083_v40, %v2143_v60  ;;  %v9157_v60 = vmul.f32 %v9083_v40, %v2142_v3  ;;  %v9184_v3 = vld [vmem:[%s10448_s5 + $0x10] sm:$0x3] }
 0x19b   : > { %v10474_v16 = vpack.c.bf16 %v8557_v55, %v8577_v61  ;;  %v9215_v55 = vrot.slane %v9184_v3, %v7748_v4  ;;  %v10476_v61 = vpack.c.bf16 %v8872_v48, %v8874_v42  ;;  %v6191_v4 = vld [vmem:[%s10446_s3 + $0x110] sm:$0xff] }
 0x19c   : > { %v6195_v42 = vld [vmem:[%s10446_s3 + $0x130] sm:$0xff] }
 0x19d   : > { %6185 = vmatmul.mubr.msk.f32.gmra.mrb[26].mxu1 %vm555_vm1, %v6169_v2  ;;  %6510 = vmatmul.mubr.msk.f32.gmra.mrb[56].mxu0 %vm555_vm1, %v6494_v45  ;;  %v2146_v2 = vsel %vm2121_vm8, %v2137_v14, %v2129_v52  ;;  %v6171_v14 = vld [vmem:[%s10447_s4 + $0xf8] sm:$0xff] }
 0x19e   : > { %1500 = vmatprep.mubr.f32.mxu1 %v10472_v63  ;;  %4319 = vmatprep.mubr.f32.mxu0 %v10472_v63  ;;  %v9154_v45 = vmul.f32 %v9080_v47, %v2146_v2  ;;  %v6496_v52 = vld [vmem:[%s10447_s4 + $0x378] sm:$0xff]  ;;  %v2122_v2 = vsel %vm2121_vm8, %v8953_v43, %v8951_v24  ;;  %v6515_v24 = vld [vmem:[%s10446_s3 + $0x388] sm:$0xff] }
 0x1a1   : > { %6186 = vmatmul.mubr.msk.f32.gmra.mrb[28].mxu1 %vm555_vm1, %v6170_v8  ;;  %6511 = vmatmul.mubr.msk.f32.gmra.mrb[58].mxu0 %vm555_vm1, %v6495_v39  ;;  %v6189_v8 = vld [vmem:[%s10446_s3 + $0x100] sm:$0xff] }
 0x1a2   : > { %1506 = vmatprep.mubr.f32.mxu1 %v10472_v63  ;;  %4325 = vmatprep.mubr.f32.mxu0 %v10472_v63  ;;  %v6514_v39 = vld [vmem:[%s10446_s3 + $0x380] sm:$0xff] }
 0x1a5   : > { %6187 = vmatmul.mubr.msk.f32.gmra.mrb[30].mxu1 %vm555_vm1, %v6171_v14  ;;  %6512 = vmatmul.mubr.msk.f32.gmra.mrb[60].mxu0 %vm555_vm1, %v6496_v52  ;;  %v9192_v14 = vpop.permute.xlu1 %4938 }
 0x1a6   : > { %1720 = vmatprep.mubr.f32.mxu1 %v10472_v63  ;;  %4539 = vmatprep.mubr.f32.mxu0 %v10472_v63  ;;  %v9195_v52 = vpop.permute.xlu0 %4936 }
 0x1a7   : > { %v4942_v43 = vsel %vm4940_vm9, %v9192_v14, %v9195_v52 }
 0x1a8   : > { %v4996_v48 = vmul.f32 %v9215_v55, %v4942_v43  ;;  %v6523_v43 = vld [vmem:[%s10446_s3 + $0x3c8] sm:$0xff] }
 0x1a9   : > { %6205 = vmatmul.mubr.msk.f32.vlgmr.msra.gmra.mrb[0].mxu1 %vm765_vm0, %v6189_v8  ;;  %6530 = vmatmul.mubr.msk.f32.vlgmr.msra.gmra.mrb[0].mxu0 %vm765_vm0, %v6514_v39  ;;  %v6190_v8 = vld [vmem:[%s10446_s3 + $0x108] sm:$0xff]  ;;  %v10475_v39 = vpack.c.bf16 %v8610_v11, %v8632_v44  ;;  %v10477_v11 = vpack.c.bf16 %v8607_v7, %v8629_v36  ;;  %v6516_v44 = vld [vmem:[%s10446_s3 + $0x390] sm:$0xff]  ;;  %v6192_v7 = vld [vmem:[%s10446_s3 + $0x118] sm:$0xff] }
 0x1aa   : > { %6699 = vmatpush1.bf16.msra.mxu1 %v10474_v16  ;;  %1726 = vmatprep.mubr.f32.mxu1 %v10472_v63  ;;  %v2177_v16 = vmul.f32 %v9083_v40, %v2122_v2  ;;  %v6517_v36 = vld [vmem:[%s10446_s3 + $0x398] sm:$0xff]  ;;  %v6197_v2 = vld [vmem:[%s10446_s3 + $0x140] sm:$0xff] }
 0x1ab   : > { %6701 = vmatprep.subr.bf16.mxu1 %v10475_v39  ;;  %4545 = vmatprep.mubr.f32.mxu0 %v10472_v63  ;;  %v6521_v40 = vld [vmem:[%s10446_s3 + $0x3b8] sm:$0xff]  ;;  %v6199_v39 = vld [vmem:[%s10446_s3 + $0x150] sm:$0xff] }
 0x1ac   : > { %6739 = vmatpush1.bf16.msra.mxu0 %v10476_v61  ;;  %v6524_v61 = vld [vmem:[%s10446_s3 + $0x3d0] sm:$0xff] }
 0x1ad   : > { %6206 = vmatmul.mubr.msk.f32.gmra.mrb[2].mxu1 %vm765_vm0, %v6190_v8  ;;  %6531 = vmatmul.mubr.msk.f32.gmra.mrb[32].mxu0 %vm765_vm0, %v6515_v24  ;;  %v6522_v8 = vld [vmem:[%s10446_s3 + $0x3c0] sm:$0xff]  ;;  %v6198_v24 = vld [vmem:[%s10446_s3 + $0x148] sm:$0xff] }
 0x1ae   : > { %6703 = vmatpush1.bf16.msra.mxu1 %v10477_v11  ;;  %1732 = vmatprep.mubr.f32.mxu1 %v10472_v63  ;;  %v4944_v11 = vpop.permute.xlu0 %4943 }
 0x1af   : > { %4551 = vmatprep.mubr.f32.mxu0 %v10472_v63  ;;  %6741 = vmatprep.subr.bf16.mxu0 %v6740_v57  ;;  %v6196_v57 = vld [vmem:[%s10446_s3 + $0x138] sm:$0xff] }
 0x1b0   : > { %6743 = vmatpush1.bf16.msra.mxu0 %v6742_v41  ;;  %2226 = vmatprep.subr.mxu1 %v2177_v16  ;;  %v6520_v41 = vld [vmem:[%s10446_s3 + $0x3b0] sm:$0xff]  ;;  %v4946_v16 = vpop.permute.xlu1 %4945 }
 0x1b1   : > { %6207 = vmatmul.mubr.msk.f32.gmra.mrb[4].mxu1 %vm765_vm0, %v6191_v4  ;;  %6532 = vmatmul.mubr.msk.f32.gmra.mrb[34].mxu0 %vm765_vm0, %v6516_v44  ;;  %v6200_v4 = vld [vmem:[%s10446_s3 + $0x158] sm:$0xff] }
 0x1b2   : > { %1738 = vmatprep.mubr.f32.mxu1 %v10472_v63  ;;  %4557 = vmatprep.mubr.f32.mxu0 %v10472_v63  ;;  %v6525_v44 = vld [vmem:[%s10446_s3 + $0x3d8] sm:$0xff] }
 0x1b3   : > { %5045 = vmatprep.subr.mxu0 %v4996_v48  ;;  %v4988_v48 = vrot.slane %v9184_v3, %v7750_v5 }
 0x1b5   : > { %6208 = vmatmul.mubr.msk.f32.gmra.mrb[6].mxu1 %vm765_vm0, %v6192_v7  ;;  %6533 = vmatmul.mubr.msk.f32.gmra.mrb[36].mxu0 %vm765_vm0, %v6517_v36  ;;  %v4954_v7 = vpop.permute.xlu1 %4953  ;;  %v4952_v36 = vpop.permute.xlu0 %4951 }
 0x1b6   : > { %1744 = vmatprep.mubr.f32.mxu1 %v10472_v63  ;;  %4563 = vmatprep.mubr.f32.mxu0 %v10472_v63  ;;  %v4959_v5 = vsel %vm4940_vm9, %v4944_v11, %v4952_v36 }
 0x1b9   : > { %6209 = vmatmul.mubr.msk.f32.gmra.mrb[8].mxu1 %vm765_vm0, %v6193_v0  ;;  %6534 = vmatmul.mubr.msk.f32.gmra.mrb[38].mxu0 %vm765_vm0, %v6518_v37  ;;  %v6201_v0 = vld [vmem:[%s10446_s3 + $0x160] sm:$0xff] }
 0x1ba   : > { %1750 = vmatprep.mubr.f32.mxu1 %v10472_v63  ;;  %4569 = vmatprep.mubr.f32.mxu0 %v10472_v63  ;;  %v6526_v37 = vld [vmem:[%s10446_s3 + $0x3e0] sm:$0xff] }
 0x1bd   : > { %6210 = vmatmul.mubr.msk.f32.gmra.mrb[10].mxu1 %vm765_vm0, %v6194_v54  ;;  %6535 = vmatmul.mubr.msk.f32.gmra.mrb[40].mxu0 %vm765_vm0, %v6519_v51  ;;  %v4960_v54 = vsel %vm4940_vm9, %v4946_v16, %v4954_v7  ;;  %v9353_v51 = vmul.f32 %v4988_v48, %v4959_v5 }
 0x1be   : > { %1756 = vmatprep.mubr.f32.mxu1 %v10472_v63  ;;  %4575 = vmatprep.mubr.f32.mxu0 %v10472_v63  ;;  %v9351_v3 = vmul.f32 %v4988_v48, %v4960_v54 }
 0x1c1   : > { %6211 = vmatmul.mubr.msk.f32.gmra.mrb[12].mxu1 %vm765_vm0, %v6195_v42  ;;  %6536 = vmatmul.mubr.msk.f32.gmra.mrb[42].mxu0 %vm765_vm0, %v6520_v41  ;;  %v6746_v42 = vpack.c.bf16 %v9351_v3, %v9353_v51  ;;  %v4950_v41 = vpop.permute.xlu1 %4949  ;;  %v6259_v3 = vld [vmem:[%s10446_s3 + $0x1a8] sm:$0xff] }
 0x1c2   : > { %1762 = vmatprep.mubr.f32.mxu1 %v10472_v63  ;;  %4581 = vmatprep.mubr.f32.mxu0 %v10472_v63  ;;  %v6584_v51 = vld [vmem:[%s10446_s3 + $0x428] sm:$0xff] }
 0x1c5   : > { %6212 = vmatmul.mubr.msk.f32.gmra.mrb[14].mxu1 %vm765_vm0, %v6196_v57  ;;  %6537 = vmatmul.mubr.msk.f32.gmra.mrb[44].mxu0 %vm765_vm0, %v6521_v40  ;;  %v4948_v57 = vpop.permute.xlu0 %4947  ;;  %v6202_v40 = vld [vmem:[%s10446_s3 + $0x168] sm:$0xff] }
 0x1c6   : > { %1768 = vmatprep.mubr.f32.mxu1 %v10472_v63  ;;  %4587 = vmatprep.mubr.f32.mxu0 %v10472_v63 }
 0x1c9   : > { %6213 = vmatmul.mubr.msk.f32.gmra.mrb[16].mxu1 %vm765_vm0, %v6197_v2  ;;  %6538 = vmatmul.mubr.msk.f32.gmra.mrb[46].mxu0 %vm765_vm0, %v6522_v8  ;;  %v6527_v2 = vld [vmem:[%s10446_s3 + $0x3e8] sm:$0xff]  ;;  %v4958_v8 = vpop.permute.xlu1 %4957 }
 0x1ca   : > { %1774 = vmatprep.mubr.f32.mxu1 %v10472_v63  ;;  %4593 = vmatprep.mubr.f32.mxu0 %v10472_v63 }
 0x1cd   : > { %6214 = vmatmul.mubr.msk.f32.gmra.mrb[18].mxu1 %vm765_vm0, %v6198_v24  ;;  %6539 = vmatmul.mubr.msk.f32.gmra.mrb[48].mxu0 %vm765_vm0, %v6523_v43  ;;  %v4956_v24 = vpop.permute.xlu0 %4955  ;;  %v6203_v43 = vld [vmem:[%s10446_s3 + $0x170] sm:$0xff] }
 0x1ce   : > { %1780 = vmatprep.mubr.f32.mxu1 %v10472_v63  ;;  %4599 = vmatprep.mubr.f32.mxu0 %v10472_v63  ;;  %v4965_v54 = vsel %vm4940_vm9, %v4956_v24, %v4948_v57 }
 0x1d1   : > { %6215 = vmatmul.mubr.msk.f32.gmra.mrb[20].mxu1 %vm765_vm0, %v6199_v39  ;;  %6540 = vmatmul.mubr.msk.f32.gmra.mrb[50].mxu0 %vm765_vm0, %v6524_v61  ;;  %v6528_v39 = vld [vmem:[%s10446_s3 + $0x3f0] sm:$0xff]  ;;  %v4962_v61 = vsel %vm4940_vm9, %v4950_v41, %v4958_v8 }
 0x1d2   : > { %1786 = vmatprep.mubr.f32.mxu1 %v10472_v63  ;;  %4605 = vmatprep.mubr.f32.mxu0 %v10472_v63 }
 0x1d5   : > { %6216 = vmatmul.mubr.msk.f32.gmra.mrb[22].mxu1 %vm765_vm0, %v6200_v4  ;;  %6541 = vmatmul.mubr.msk.f32.gmra.mrb[52].mxu0 %vm765_vm0, %v6525_v44  ;;  %v4966_v4 = vsel %vm4940_vm9, %v4958_v8, %v4950_v41  ;;  %v4961_v44 = vsel %vm4940_vm9, %v4948_v57, %v4956_v24  ;;  %v6204_v57 = vld [vmem:[%s10446_s3 + $0x178] sm:$0xff]  ;;  %v4964_v24 = vsel %vm4940_vm9, %v4954_v7, %v4946_v16  ;;  %v6221_v16 = vld [vmem:[%s10447_s4 + $0x100] sm:$0xff] }
 0x1d6   : > { %1792 = vmatprep.mubr.f32.mxu1 %v10472_v63  ;;  %4611 = vmatprep.mubr.f32.mxu0 %v10472_v63  ;;  %v9390_v5 = vmul.f32 %v4988_v48, %v4961_v44  ;;  %v5258_v7 = vmul.f32 %v9215_v55, %v4964_v24  ;;  %v6550_v44 = vld [vmem:[%s10447_s4 + $0x3a0] sm:$0xff]  ;;  %v6552_v24 = vld [vmem:[%s10447_s4 + $0x3b0] sm:$0xff] }
 0x1d9   : > { %6217 = vmatmul.mubr.msk.f32.gmra.mrb[24].mxu1 %vm765_vm0, %v6201_v0  ;;  %6542 = vmatmul.mubr.msk.f32.gmra.mrb[54].mxu0 %vm765_vm0, %v6526_v37  ;;  %v9383_v0 = vmul.f32 %v4988_v48, %v4962_v61  ;;  %v9386_v37 = vmul.f32 %v9215_v55, %v4966_v4  ;;  %v2176_v61 = vmul.f32 %v9080_v47, %v8961_v32  ;;  %v6222_v32 = vld [vmem:[%s10447_s4 + $0x108] sm:$0xff]  ;;  %v6225_v4 = vld [vmem:[%s10447_s4 + $0x120] sm:$0xff] }
 0x1da   : > { %1798 = vmatprep.mubr.f32.mxu1 %v10472_v63  ;;  %4617 = vmatprep.mubr.f32.mxu0 %v10472_v63  ;;  %v6547_v47 = vld [vmem:[%s10447_s4 + $0x388] sm:$0xff] }
 0x1db   : > { %v6750_v41 = vpack.c.bf16 %v9383_v0, %v9390_v5  ;;  %v6260_v0 = vld [vmem:[%s10446_s3 + $0x1b0] sm:$0xff]  ;;  %v7632_v5 = vmov 0  }
 0x1dc   : > { %7371 = vset.pattern.permute.xlu0 %v7632_v5  ;;  %7372 = vset.pattern.permute.xlu1 %v7632_v5  ;;  %v5516_v5 = vld [vmem:[%s10449_s6 + $0x60] sm:$0xff] }
 0x1dd   : > { %6218 = vmatmul.mubr.msk.f32.gmra.mrb[26].mxu1 %vm765_vm0, %v6202_v40  ;;  %6543 = vmatmul.mubr.msk.f32.gmra.mrb[56].mxu0 %vm765_vm0, %v6527_v2  ;;  %v9393_v40 = vmul.f32 %v9215_v55, %v4965_v54  ;;  %v6529_v2 = vld [vmem:[%s10446_s3 + $0x3f8] sm:$0xff]  ;;  %v6226_v54 = vld [vmem:[%s10447_s4 + $0x128] sm:$0xff] }
 0x1de   : > { %1804 = vmatprep.mubr.f32.mxu1 %v10472_v63  ;;  %4623 = vmatprep.mubr.f32.mxu0 %v10472_v63 }
 0x1df   : > { %v6748_v8 = vpack.c.bf16 %v9386_v37, %v9393_v40  ;;  %v6585_v37 = vld [vmem:[%s10446_s3 + $0x430] sm:$0xff]  ;;  %v6261_v40 = vld [vmem:[%s10446_s3 + $0x1b8] sm:$0xff] }
 0x1e1   : > { %6219 = vmatmul.mubr.msk.f32.gmra.mrb[28].mxu1 %vm765_vm0, %v6203_v43  ;;  %6544 = vmatmul.mubr.msk.f32.gmra.mrb[58].mxu0 %vm765_vm0, %v6528_v39  ;;  %v4963_v43 = vsel %vm4940_vm9, %v4952_v36, %v4944_v11  ;;  %v4941_v39 = vsel %vm4940_vm9, %v9195_v52, %v9192_v14  ;;  %v6546_v11 = vld [vmem:[%s10447_s4 + $0x380] sm:$0xff]  ;;  %v10478_v52 = vpack.c.bf16 %v9095_v53, %v9113_v29  ;;  %v6548_v36 = vld [vmem:[%s10447_s4 + $0x390] sm:$0xff]  ;;  %v6224_v53 = vld [vmem:[%s10447_s4 + $0x118] sm:$0xff] }
 0x1e2   : > { %1810 = vmatprep.mubr.f32.mxu1 %v10472_v63  ;;  %4629 = vmatprep.mubr.f32.mxu0 %v10472_v63  ;;  %v5256_v49 = vmul.f32 %v9215_v55, %v4963_v43  ;;  %v4995_v14 = vmul.f32 %v4988_v48, %v4941_v39  ;;  %v6223_v48 = vld [vmem:[%s10447_s4 + $0x110] sm:$0xff]  ;;  %v6549_v29 = vld [vmem:[%s10447_s4 + $0x398] sm:$0xff] }
 0x1e3   : > { %v6228_v43 = vld [vmem:[%s10447_s4 + $0x138] sm:$0xff] }
 0x1e4   : > { %v6744_v55 = vpack.c.bf16 %v5258_v7, %v5256_v49  ;;  %v6553_v39 = vld [vmem:[%s10447_s4 + $0x3b8] sm:$0xff]  ;;  %v6555_v7 = vld [vmem:[%s10447_s4 + $0x3c8] sm:$0xff]  ;;  %v6231_v49 = vld [vmem:[%s10447_s4 + $0x150] sm:$0xff] }
 0x1e5   : > { %6220 = vmatmul.mubr.msk.f32.gmra.mrb[30].mxu1 %vm765_vm0, %v6204_v57  ;;  %6545 = vmatmul.mubr.msk.f32.gmra.mrb[60].mxu0 %vm765_vm0, %v6529_v2  ;;  %v6551_v57 = vld [vmem:[%s10447_s4 + $0x3a8] sm:$0xff]  ;;  %v6227_v2 = vld [vmem:[%s10447_s4 + $0x130] sm:$0xff] }
 0x1e6   : > { %1986 = vmatprep.mubr.f32.mxu1 %v10472_v63  ;;  %4805 = vmatprep.mubr.f32.mxu0 %v10472_v63 }
 0x1e9   : > { %6237 = vmatmul.mubr.msk.f32.vlgmr.msra.gmra.mrb[0].mxu1 %vm555_vm1, %v6221_v16  ;;  %6562 = vmatmul.mubr.msk.f32.vlgmr.msra.gmra.mrb[0].mxu0 %vm555_vm1, %v6546_v11  ;;  %v6554_v16 = vld [vmem:[%s10447_s4 + $0x3c0] sm:$0xff]  ;;  %v6230_v11 = vld [vmem:[%s10447_s4 + $0x148] sm:$0xff] }
 0x1ea   : > { %2227 = vmatpush1.msra.mxu1 %v2176_v61  ;;  %1992 = vmatprep.mubr.f32.mxu1 %v10472_v63  ;;  %v6229_v61 = vld [vmem:[%s10447_s4 + $0x140] sm:$0xff] }
 0x1eb   : > { %4811 = vmatprep.mubr.f32.mxu0 %v10472_v63  ;;  %6705 = vmatprep.subr.bf16.mxu1 %v10478_v52  ;;  %v6233_v52 = vld [vmem:[%s10447_s4 + $0x160] sm:$0xff] }
 0x1ec   : > { %5046 = vmatpush1.msra.mxu0 %v4995_v14  ;;  %v6556_v14 = vld [vmem:[%s10447_s4 + $0x3d0] sm:$0xff] }
 0x1ed   : > { %6238 = vmatmul.mubr.msk.f32.gmra.mrb[2].mxu1 %vm555_vm1, %v6222_v32  ;;  %6563 = vmatmul.mubr.msk.f32.gmra.mrb[32].mxu0 %vm555_vm1, %v6547_v47  ;;  %v6232_v32 = vld [vmem:[%s10447_s4 + $0x158] sm:$0xff] }
 0x1ee   : > { %1998 = vmatprep.mubr.f32.mxu1 %v10472_v63  ;;  %4817 = vmatprep.mubr.f32.mxu0 %v10472_v63  ;;  %v6557_v47 = vld [vmem:[%s10447_s4 + $0x3d8] sm:$0xff] }
 0x1ef   : > { %6745 = vmatprep.subr.bf16.mxu0 %v6744_v55  ;;  %v6558_v55 = vld [vmem:[%s10447_s4 + $0x3e0] sm:$0xff] }
 0x1f1   : > { %6239 = vmatmul.mubr.msk.f32.gmra.mrb[4].mxu1 %vm555_vm1, %v6223_v48  ;;  %6564 = vmatmul.mubr.msk.f32.gmra.mrb[34].mxu0 %vm555_vm1, %v6548_v36  ;;  %v6234_v48 = vld [vmem:[%s10447_s4 + $0x168] sm:$0xff] }
 0x1f2   : > { %2004 = vmatprep.mubr.f32.mxu1 %v10472_v63  ;;  %4823 = vmatprep.mubr.f32.mxu0 %v10472_v63  ;;  %v6559_v36 = vld [vmem:[%s10447_s4 + $0x3e8] sm:$0xff] }
 0x1f5   : > { %6240 = vmatmul.mubr.msk.f32.gmra.mrb[6].mxu1 %vm555_vm1, %v6224_v53  ;;  %6565 = vmatmul.mubr.msk.f32.gmra.mrb[36].mxu0 %vm555_vm1, %v6549_v29  ;;  %v6235_v53 = vld [vmem:[%s10447_s4 + $0x170] sm:$0xff] }
 0x1f6   : > { %2010 = vmatprep.mubr.f32.mxu1 %v10472_v63  ;;  %4829 = vmatprep.mubr.f32.mxu0 %v10472_v63  ;;  %v6560_v29 = vld [vmem:[%s10447_s4 + $0x3f0] sm:$0xff] }
 0x1f9   : > { %6241 = vmatmul.mubr.msk.f32.gmra.mrb[8].mxu1 %vm555_vm1, %v6225_v4  ;;  %6566 = vmatmul.mubr.msk.f32.gmra.mrb[38].mxu0 %vm555_vm1, %v6550_v44  ;;  %v6236_v4 = vld [vmem:[%s10447_s4 + $0x178] sm:$0xff] }
 0x1fa   : > { %2016 = vmatprep.mubr.f32.mxu1 %v10472_v63  ;;  %4835 = vmatprep.mubr.f32.mxu0 %v10472_v63  ;;  %v6561_v44 = vld [vmem:[%s10447_s4 + $0x3f8] sm:$0xff] }
 0x1fd   : > { %6242 = vmatmul.mubr.msk.f32.gmra.mrb[10].mxu1 %vm555_vm1, %v6226_v54  ;;  %6567 = vmatmul.mubr.msk.f32.gmra.mrb[40].mxu0 %vm555_vm1, %v6551_v57  ;;  %v6254_v54 = vld [vmem:[%s10446_s3 + $0x180] sm:$0xff] }
 0x1fe   : > { %2022 = vmatprep.mubr.f32.mxu1 %v10472_v63  ;;  %4841 = vmatprep.mubr.f32.mxu0 %v10472_v63  ;;  %v6579_v57 = vld [vmem:[%s10446_s3 + $0x400] sm:$0xff] }
 0x201   : > { %6243 = vmatmul.mubr.msk.f32.gmra.mrb[12].mxu1 %vm555_vm1, %v6227_v2  ;;  %6568 = vmatmul.mubr.msk.f32.gmra.mrb[42].mxu0 %vm555_vm1, %v6552_v24  ;;  %v10479_v2 = vpack.c.bf16 %v9092_v22, %v9110_v18  ;;  %v6255_v24 = vld [vmem:[%s10446_s3 + $0x188] sm:$0xff]  ;;  %v10481_v22 = vpack.c.bf16 %v9134_v20, %v9154_v45  ;;  %v6256_v18 = vld [vmem:[%s10446_s3 + $0x190] sm:$0xff]  ;;  %v6257_v20 = vld [vmem:[%s10446_s3 + $0x198] sm:$0xff] }
 0x202   : > { %2028 = vmatprep.mubr.f32.mxu1 %v10472_v63  ;;  %4847 = vmatprep.mubr.f32.mxu0 %v10472_v63  ;;  %v6582_v45 = vld [vmem:[%s10446_s3 + $0x418] sm:$0xff] }
 0x205   : > { %6244 = vmatmul.mubr.msk.f32.gmra.mrb[14].mxu1 %vm555_vm1, %v6228_v43  ;;  %6569 = vmatmul.mubr.msk.f32.gmra.mrb[44].mxu0 %vm555_vm1, %v6553_v39  ;;  %v6580_v43 = vld [vmem:[%s10446_s3 + $0x408] sm:$0xff]  ;;  %v10480_v39 = vpack.c.bf16 %v9137_v1, %v9157_v60  ;;  %v6581_v1 = vld [vmem:[%s10446_s3 + $0x410] sm:$0xff]  ;;  %v6583_v60 = vld [vmem:[%s10446_s3 + $0x420] sm:$0xff] }
 0x206   : > { %2034 = vmatprep.mubr.f32.mxu1 %v10472_v63  ;;  %4853 = vmatprep.mubr.f32.mxu0 %v10472_v63 }
 0x209   : > { %6245 = vmatmul.mubr.msk.f32.gmra.mrb[16].mxu1 %vm555_vm1, %v6229_v61  ;;  %6570 = vmatmul.mubr.msk.f32.gmra.mrb[46].mxu0 %vm555_vm1, %v6554_v16  ;;  %v6587_v61 = vld [vmem:[%s10446_s3 + $0x440] sm:$0xff]  ;;  %v6263_v16 = vld [vmem:[%s10446_s3 + $0x1c8] sm:$0xff] }
 0x20a   : > { %2040 = vmatprep.mubr.f32.mxu1 %v10472_v63  ;;  %4859 = vmatprep.mubr.f32.mxu0 %v10472_v63 }
 0x20d   : > { %6246 = vmatmul.mubr.msk.f32.gmra.mrb[18].mxu1 %vm555_vm1, %v6230_v11  ;;  %6571 = vmatmul.mubr.msk.f32.gmra.mrb[48].mxu0 %vm555_vm1, %v6555_v7  ;;  %v6588_v11 = vld [vmem:[%s10446_s3 + $0x448] sm:$0xff]  ;;  %v6264_v7 = vld [vmem:[%s10446_s3 + $0x1d0] sm:$0xff] }
 0x20e   : > { %2046 = vmatprep.mubr.f32.mxu1 %v10472_v63  ;;  %4865 = vmatprep.mubr.f32.mxu0 %v10472_v63 }
 0x211   : > { %6247 = vmatmul.mubr.msk.f32.gmra.mrb[20].mxu1 %vm555_vm1, %v6231_v49  ;;  %6572 = vmatmul.mubr.msk.f32.gmra.mrb[50].mxu0 %vm555_vm1, %v6556_v14  ;;  %v6589_v49 = vld [vmem:[%s10446_s3 + $0x450] sm:$0xff]  ;;  %v6265_v14 = vld [vmem:[%s10446_s3 + $0x1d8] sm:$0xff] }
 0x212   : > { %2052 = vmatprep.mubr.f32.mxu1 %v10472_v63  ;;  %4871 = vmatprep.mubr.f32.mxu0 %v10472_v63 }
 0x215   : > { %6248 = vmatmul.mubr.msk.f32.gmra.mrb[22].mxu1 %vm555_vm1, %v6232_v32  ;;  %6573 = vmatmul.mubr.msk.f32.gmra.mrb[52].mxu0 %vm555_vm1, %v6557_v47  ;;  %v6590_v32 = vld [vmem:[%s10446_s3 + $0x458] sm:$0xff]  ;;  %v6266_v47 = vld [vmem:[%s10446_s3 + $0x1e0] sm:$0xff] }
 0x216   : > { %2058 = vmatprep.mubr.f32.mxu1 %v10472_v63  ;;  %4877 = vmatprep.mubr.f32.mxu0 %v10472_v63 }
 0x219   : > { %6249 = vmatmul.mubr.msk.f32.gmra.mrb[24].mxu1 %vm555_vm1, %v6233_v52  ;;  %6574 = vmatmul.mubr.msk.f32.gmra.mrb[54].mxu0 %vm555_vm1, %v6558_v55  ;;  %v6591_v52 = vld [vmem:[%s10446_s3 + $0x460] sm:$0xff]  ;;  %v6267_v55 = vld [vmem:[%s10446_s3 + $0x1e8] sm:$0xff] }
 0x21a   : > { %2064 = vmatprep.mubr.f32.mxu1 %v10472_v63  ;;  %4883 = vmatprep.mubr.f32.mxu0 %v10472_v63 }
 0x21d   : > { %6250 = vmatmul.mubr.msk.f32.gmra.mrb[26].mxu1 %vm555_vm1, %v6234_v48  ;;  %6575 = vmatmul.mubr.msk.f32.gmra.mrb[56].mxu0 %vm555_vm1, %v6559_v36  ;;  %v6592_v48 = vld [vmem:[%s10446_s3 + $0x468] sm:$0xff]  ;;  %v6268_v36 = vld [vmem:[%s10446_s3 + $0x1f0] sm:$0xff] }
 0x21e   : > { %2070 = vmatprep.mubr.f32.mxu1 %v10472_v63  ;;  %4889 = vmatprep.mubr.f32.mxu0 %v10472_v63 }
 0x221   : > { %6251 = vmatmul.mubr.msk.f32.gmra.mrb[28].mxu1 %vm555_vm1, %v6235_v53  ;;  %6576 = vmatmul.mubr.msk.f32.gmra.mrb[58].mxu0 %vm555_vm1, %v6560_v29  ;;  %v6593_v53 = vld [vmem:[%s10446_s3 + $0x470] sm:$0xff]  ;;  %v5505_v29 = vld [vmem:[%s10449_s6 + $0x8] sm:$0xff] }
 0x222   : > { %2076 = vmatprep.mubr.f32.mxu1 %v10472_v63  ;;  %4895 = vmatprep.mubr.f32.mxu0 %v10472_v63 }
 0x223   : > { %5527 = vperm.xlu1 %7372, %v5505_v29   ;;  %v6298_v29 = vld [vmem:[%s10447_s4 + $0x1e0] sm:$0xff] }
 0x225   : > { %6252 = vmatmul.mubr.msk.f32.gmra.mrb[30].mxu1 %vm555_vm1, %v6236_v4  ;;  %6577 = vmatmul.mubr.msk.f32.gmra.mrb[60].mxu0 %vm555_vm1, %v6561_v44  ;;  %v5507_v4 = vld [vmem:[%s10449_s6 + $0x18] sm:$0xff] }
 0x226   : > { %2290 = vmatprep.mubr.f32.mxu1 %v10472_v63  ;;  %5109 = vmatprep.mubr.f32.mxu0 %v10472_v63  ;;  %v6269_v44 = vld [vmem:[%s10446_s3 + $0x1f8] sm:$0xff] }
 0x229   : > { %6270 = vmatmul.mubr.msk.f32.vlgmr.msra.gmra.mrb[0].mxu1 %vm765_vm0, %v6254_v54  ;;  %6595 = vmatmul.mubr.msk.f32.vlgmr.msra.gmra.mrb[0].mxu0 %vm765_vm0, %v6579_v57  ;;  %v6594_v54 = vld [vmem:[%s10446_s3 + $0x478] sm:$0xff]  ;;  %v5506_v57 = vld [vmem:[%s10449_s6 + $0x10] sm:$0xff] }
 0x22a   : > { %6707 = vmatpush1.bf16.msra.mxu1 %v10479_v2  ;;  %2296 = vmatprep.mubr.f32.mxu1 %v10472_v63  ;;  %v5509_v2 = vld [vmem:[%s10449_s6 + $0x28] sm:$0xff] }
 0x22b   : > { %6709 = vmatprep.subr.bf16.mxu1 %v10480_v39  ;;  %5115 = vmatprep.mubr.f32.mxu0 %v10472_v63  ;;  %v5508_v39 = vld [vmem:[%s10449_s6 + $0x20] sm:$0xff] }
 0x22c   : > { %6747 = vmatpush1.bf16.msra.mxu0 %v6746_v42  ;;  %v5504_v42 = vld [vmem:[%s10449_s6] sm:$0xff]  ;;  %5532 = vperm.xlu1 %7372, %v5506_v57   ;;  %v6300_v57 = vld [vmem:[%s10447_s4 + $0x1f0] sm:$0xff] }
 0x22d   : > { %6271 = vmatmul.mubr.msk.f32.gmra.mrb[2].mxu1 %vm765_vm0, %v6255_v24  ;;  %6596 = vmatmul.mubr.msk.f32.gmra.mrb[32].mxu0 %vm765_vm0, %v6580_v43  ;;  %v6286_v24 = vld [vmem:[%s10447_s4 + $0x180] sm:$0xff] }
 0x22e   : > { %6711 = vmatpush1.bf16.msra.mxu1 %v10481_v22  ;;  %2302 = vmatprep.mubr.f32.mxu1 %v10472_v63  ;;  %v6611_v43 = vld [vmem:[%s10447_s4 + $0x400] sm:$0xff]  ;;  %v5511_v22 = vld [vmem:[%s10449_s6 + $0x38] sm:$0xff] }
 0x22f   : > { %5121 = vmatprep.mubr.f32.mxu0 %v10472_v63  ;;  %6749 = vmatprep.subr.bf16.mxu0 %v6748_v8  ;;  %v6262_v8 = vld [vmem:[%s10446_s3 + $0x1c0] sm:$0xff] }
 0x230   : > { %6751 = vmatpush1.bf16.msra.mxu0 %v6750_v41  ;;  %6752 = vmatprep.subr.bf16.mxu1 %v7805_v25  ;;  %v6258_v25 = vld [vmem:[%s10446_s3 + $0x1a0] sm:$0xff]  ;;  %v6586_v41 = vld [vmem:[%s10446_s3 + $0x438] sm:$0xff] }
 0x231   : > { %6272 = vmatmul.mubr.msk.f32.gmra.mrb[4].mxu1 %vm765_vm0, %v6256_v18  ;;  %6597 = vmatmul.mubr.msk.f32.gmra.mrb[34].mxu0 %vm765_vm0, %v6581_v1  ;;  %v6287_v18 = vld [vmem:[%s10447_s4 + $0x188] sm:$0xff] }
 0x232   : > { %2308 = vmatprep.mubr.f32.mxu1 %v10472_v63  ;;  %5127 = vmatprep.mubr.f32.mxu0 %v10472_v63  ;;  %v6612_v1 = vld [vmem:[%s10447_s4 + $0x408] sm:$0xff] }
 0x233   : > { %5522 = vperm.xlu0 %7371, %v5504_v42   ;;  %5542 = vperm.xlu1 %7372, %v5508_v39   ;;  %v5517_v42 = vld [vmem:[%s10449_s6 + $0x68] sm:$0xff] }
 0x234   : > { %v6352_v39 = vld [vmem:[%s10447_s4 + $0x208] sm:$0xff] }
 0x235   : > { %6273 = vmatmul.mubr.msk.f32.gmra.mrb[6].mxu1 %vm765_vm0, %v6257_v20  ;;  %6598 = vmatmul.mubr.msk.f32.gmra.mrb[36].mxu0 %vm765_vm0, %v6582_v45  ;;  %v5513_v20 = vld [vmem:[%s10449_s6 + $0x48] sm:$0xff]  ;;  %v6613_v45 = vld [vmem:[%s10447_s4 + $0x410] sm:$0xff] }
 0x236   : > { %2314 = vmatprep.mubr.f32.mxu1 %v10472_v63  ;;  %5133 = vmatprep.mubr.f32.mxu0 %v10472_v63 }
 0x237   : > { %5537 = vperm.xlu0 %7371, %v5507_v4   ;;  %v6623_v4 = vld [vmem:[%s10447_s4 + $0x460] sm:$0xff] }
 0x239   : > { %6274 = vmatmul.mubr.msk.f32.gmra.mrb[8].mxu1 %vm765_vm0, %v6258_v25  ;;  %6599 = vmatmul.mubr.msk.f32.gmra.mrb[38].mxu0 %vm765_vm0, %v6583_v60  ;;  %v5512_v25 = vld [vmem:[%s10449_s6 + $0x40] sm:$0xff]  ;;  %v5515_v60 = vld [vmem:[%s10449_s6 + $0x58] sm:$0xff] }
 0x23a   : > { %2320 = vmatprep.mubr.f32.mxu1 %v10472_v63  ;;  %5139 = vmatprep.mubr.f32.mxu0 %v10472_v63 }
 0x23b   : > { %5547 = vperm.xlu0 %7371, %v5509_v2   ;;  %v6625_v2 = vld [vmem:[%s10447_s4 + $0x470] sm:$0xff] }
 0x23d   : > { %6275 = vmatmul.mubr.msk.f32.gmra.mrb[10].mxu1 %vm765_vm0, %v6259_v3  ;;  %6600 = vmatmul.mubr.msk.f32.gmra.mrb[40].mxu0 %vm765_vm0, %v6584_v51  ;;  %v6614_v3 = vld [vmem:[%s10447_s4 + $0x418] sm:$0xff]  ;;  %v5514_v51 = vld [vmem:[%s10449_s6 + $0x50] sm:$0xff] }
 0x23e   : > { %2326 = vmatprep.mubr.f32.mxu1 %v10472_v63  ;;  %5145 = vmatprep.mubr.f32.mxu0 %v10472_v63 }
 0x23f   : > { %5557 = vperm.xlu0 %7371, %v5511_v22   ;;  %v6353_v22 = vld [vmem:[%s10447_s4 + $0x210] sm:$0xff] }
 0x241   : > { %6276 = vmatmul.mubr.msk.f32.gmra.mrb[12].mxu1 %vm765_vm0, %v6260_v0  ;;  %6601 = vmatmul.mubr.msk.f32.gmra.mrb[42].mxu0 %vm765_vm0, %v6585_v37  ;;  %v6290_v0 = vld [vmem:[%s10447_s4 + $0x1a0] sm:$0xff] }
 0x242   : > { %2332 = vmatprep.mubr.f32.mxu1 %v10472_v63  ;;  %5151 = vmatprep.mubr.f32.mxu0 %v10472_v63  ;;  %v6615_v37 = vld [vmem:[%s10447_s4 + $0x420] sm:$0xff] }
 0x243   : > { %5567 = vperm.xlu0 %7371, %v5513_v20   ;;  %v6357_v20 = vld [vmem:[%s10447_s4 + $0x230] sm:$0xff] }
 0x245   : > { %6277 = vmatmul.mubr.msk.f32.gmra.mrb[14].mxu1 %vm765_vm0, %v6261_v40  ;;  %6602 = vmatmul.mubr.msk.f32.gmra.mrb[44].mxu0 %vm765_vm0, %v6586_v41  ;;  %v5519_v40 = vld [vmem:[%s10449_s6 + $0x78] sm:$0xff]  ;;  %v6291_v41 = vld [vmem:[%s10447_s4 + $0x1a8] sm:$0xff] }
 0x246   : > { %2338 = vmatprep.mubr.f32.mxu1 %v10472_v63  ;;  %5157 = vmatprep.mubr.f32.mxu0 %v10472_v63 }
 0x247   : > { %5577 = vperm.xlu0 %7371, %v5515_v60   ;;  %v6361_v60 = vld [vmem:[%s10447_s4 + $0x250] sm:$0xff] }
 0x249   : > { %6278 = vmatmul.mubr.msk.f32.gmra.mrb[16].mxu1 %vm765_vm0, %v6262_v8  ;;  %6603 = vmatmul.mubr.msk.f32.gmra.mrb[46].mxu0 %vm765_vm0, %v6587_v61  ;;  %v6616_v8 = vld [vmem:[%s10447_s4 + $0x428] sm:$0xff]  ;;  %v5518_v61 = vld [vmem:[%s10449_s6 + $0x70] sm:$0xff] }
 0x24a   : > { %2344 = vmatprep.mubr.f32.mxu1 %v10472_v63  ;;  %5163 = vmatprep.mubr.f32.mxu0 %v10472_v63 }
 0x24b   : > { %5587 = vperm.xlu0 %7371, %v5517_v42   ;;  %v6365_v42 = vld [vmem:[%s10447_s4 + $0x270] sm:$0xff] }
 0x24d   : > { %6279 = vmatmul.mubr.msk.f32.gmra.mrb[18].mxu1 %vm765_vm0, %v6263_v16  ;;  %6604 = vmatmul.mubr.msk.f32.gmra.mrb[48].mxu0 %vm765_vm0, %v6588_v11  ;;  %v6292_v16 = vld [vmem:[%s10447_s4 + $0x1b0] sm:$0xff] }
 0x24e   : > { %2350 = vmatprep.mubr.f32.mxu1 %v10472_v63  ;;  %5169 = vmatprep.mubr.f32.mxu0 %v10472_v63  ;;  %v6617_v11 = vld [vmem:[%s10447_s4 + $0x430] sm:$0xff] }
 0x24f   : > { %5597 = vperm.xlu0 %7371, %v5519_v40  }
 0x251   : > { %6280 = vmatmul.mubr.msk.f32.gmra.mrb[20].mxu1 %vm765_vm0, %v6264_v7  ;;  %6605 = vmatmul.mubr.msk.f32.gmra.mrb[50].mxu0 %vm765_vm0, %v6589_v49  ;;  %v6293_v7 = vld [vmem:[%s10447_s4 + $0x1b8] sm:$0xff] }
 0x252   : > { %2356 = vmatprep.mubr.f32.mxu1 %v10472_v63  ;;  %5175 = vmatprep.mubr.f32.mxu0 %v10472_v63  ;;  %v6618_v49 = vld [vmem:[%s10447_s4 + $0x438] sm:$0xff] }
 0x255   : > { %6281 = vmatmul.mubr.msk.f32.gmra.mrb[22].mxu1 %vm765_vm0, %v6265_v14  ;;  %6606 = vmatmul.mubr.msk.f32.gmra.mrb[52].mxu0 %vm765_vm0, %v6590_v32  ;;  %v6294_v14 = vld [vmem:[%s10447_s4 + $0x1c0] sm:$0xff] }
 0x256   : > { %2362 = vmatprep.mubr.f32.mxu1 %v10472_v63  ;;  %5181 = vmatprep.mubr.f32.mxu0 %v10472_v63  ;;  %v6619_v32 = vld [vmem:[%s10447_s4 + $0x440] sm:$0xff] }
 0x259   : > { %6282 = vmatmul.mubr.msk.f32.gmra.mrb[24].mxu1 %vm765_vm0, %v6266_v47  ;;  %6607 = vmatmul.mubr.msk.f32.gmra.mrb[54].mxu0 %vm765_vm0, %v6591_v52  ;;  %v6295_v47 = vld [vmem:[%s10447_s4 + $0x1c8] sm:$0xff] }
 0x25a   : > { %2368 = vmatprep.mubr.f32.mxu1 %v10472_v63  ;;  %5187 = vmatprep.mubr.f32.mxu0 %v10472_v63  ;;  %v6620_v52 = vld [vmem:[%s10447_s4 + $0x448] sm:$0xff] }
 0x25d   : > { %6283 = vmatmul.mubr.msk.f32.gmra.mrb[26].mxu1 %vm765_vm0, %v6267_v55  ;;  %6608 = vmatmul.mubr.msk.f32.gmra.mrb[56].mxu0 %vm765_vm0, %v6592_v48  ;;  %v6296_v55 = vld [vmem:[%s10447_s4 + $0x1d0] sm:$0xff] }
 0x25e   : > { %2374 = vmatprep.mubr.f32.mxu1 %v10472_v63  ;;  %5193 = vmatprep.mubr.f32.mxu0 %v10472_v63  ;;  %v6621_v48 = vld [vmem:[%s10447_s4 + $0x450] sm:$0xff] }
 0x261   : > { %6284 = vmatmul.mubr.msk.f32.gmra.mrb[28].mxu1 %vm765_vm0, %v6268_v36  ;;  %6609 = vmatmul.mubr.msk.f32.gmra.mrb[58].mxu0 %vm765_vm0, %v6593_v53  ;;  %v6297_v36 = vld [vmem:[%s10447_s4 + $0x1d8] sm:$0xff] }
 0x262   : > { %2380 = vmatprep.mubr.f32.mxu1 %v10472_v63  ;;  %5199 = vmatprep.mubr.f32.mxu0 %v10472_v63  ;;  %v6622_v53 = vld [vmem:[%s10447_s4 + $0x458] sm:$0xff] }
 0x265   : > { %6285 = vmatmul.mubr.msk.f32.gmra.mrb[30].mxu1 %vm765_vm0, %v6269_v44  ;;  %6610 = vmatmul.mubr.msk.f32.gmra.mrb[60].mxu0 %vm765_vm0, %v6594_v54  ;;  %v6299_v44 = vld [vmem:[%s10447_s4 + $0x1e8] sm:$0xff] }
 0x266   : > { %2556 = vmatprep.mubr.f32.mxu1 %v10472_v63  ;;  %5375 = vmatprep.mubr.f32.mxu0 %v10472_v63  ;;  %v6624_v54 = vld [vmem:[%s10447_s4 + $0x468] sm:$0xff] }
 0x269   : > { %6302 = vmatmul.mubr.msk.f32.vlgmr.msra.gmra.mrb[0].mxu1 %vm555_vm1, %v6286_v24  ;;  %6627 = vmatmul.mubr.msk.f32.vlgmr.msra.gmra.mrb[0].mxu0 %vm555_vm1, %v6611_v43  ;;  %v6301_v24 = vld [vmem:[%s10447_s4 + $0x1f8] sm:$0xff] }
 0x26a   : > { %2562 = vmatprep.mubr.f32.mxu1 %v10472_v63  ;;  %6754 = vmatpush1.bf16.msra.mxu1 %v7817_v28  ;;  %v5510_v28 = vld [vmem:[%s10449_s6 + $0x30] sm:$0xff]  ;;  %v6626_v43 = vld [vmem:[%s10447_s4 + $0x478] sm:$0xff] }
 0x26b   : > { %5381 = vmatprep.mubr.f32.mxu0 %v10472_v63  ;;  %6753 = vmatprep.subr.bf16.mxu1 %v7821_v31  ;;  %v6288_v31 = vld [vmem:[%s10447_s4 + $0x190] sm:$0xff] }
 0x26c   : > { %5552 = vperm.xlu1 %7372, %v5510_v28   ;;  %v6356_v28 = vld [vmem:[%s10447_s4 + $0x228] sm:$0xff] }
 0x26d   : > { %6303 = vmatmul.mubr.msk.f32.gmra.mrb[2].mxu1 %vm555_vm1, %v6287_v18  ;;  %6628 = vmatmul.mubr.msk.f32.gmra.mrb[32].mxu0 %vm555_vm1, %v6612_v1  ;;  %v6354_v18 = vld [vmem:[%s10447_s4 + $0x218] sm:$0xff]  ;;  %v6355_v1 = vld [vmem:[%s10447_s4 + $0x220] sm:$0xff] }
 0x26e   : > { %2568 = vmatprep.mubr.f32.mxu1 %v10472_v63  ;;  %5387 = vmatprep.mubr.f32.mxu0 %v10472_v63 }
 0x26f   : > { %6755 = vmatpush1.bf16.msra.mxu1 %v7834_v33  ;;  %v6289_v33 = vld [vmem:[%s10447_s4 + $0x198] sm:$0xff] }
 0x270   : > { %5562 = vperm.xlu1 %7372, %v5512_v25   ;;  %v6360_v25 = vld [vmem:[%s10447_s4 + $0x248] sm:$0xff] }
 0x271   : > { %6304 = vmatmul.mubr.msk.f32.gmra.mrb[4].mxu1 %vm555_vm1, %v6288_v31  ;;  %6629 = vmatmul.mubr.msk.f32.gmra.mrb[34].mxu0 %vm555_vm1, %v6613_v45  ;;  %v6358_v31 = vld [vmem:[%s10447_s4 + $0x238] sm:$0xff]  ;;  %v6359_v45 = vld [vmem:[%s10447_s4 + $0x240] sm:$0xff] }
 0x272   : > { %2574 = vmatprep.mubr.f32.mxu1 %v10472_v63  ;;  %5393 = vmatprep.mubr.f32.mxu0 %v10472_v63 }
 0x274   : > { %5572 = vperm.xlu1 %7372, %v5514_v51   ;;  %v6364_v51 = vld [vmem:[%s10447_s4 + $0x268] sm:$0xff] }
 0x275   : > { %6305 = vmatmul.mubr.msk.f32.gmra.mrb[6].mxu1 %vm555_vm1, %v6289_v33  ;;  %6630 = vmatmul.mubr.msk.f32.gmra.mrb[36].mxu0 %vm555_vm1, %v6614_v3  ;;  %v6362_v33 = vld [vmem:[%s10447_s4 + $0x258] sm:$0xff]  ;;  %v6363_v3 = vld [vmem:[%s10447_s4 + $0x260] sm:$0xff] }
 0x276   : > { %2580 = vmatprep.mubr.f32.mxu1 %v10472_v63  ;;  %5399 = vmatprep.mubr.f32.mxu0 %v10472_v63 }
 0x278   : > { %5582 = vperm.xlu1 %7372, %v5516_v5  }
 0x279   : > { %6306 = vmatmul.mubr.msk.f32.gmra.mrb[8].mxu1 %vm555_vm1, %v6290_v0  ;;  %6631 = vmatmul.mubr.msk.f32.gmra.mrb[38].mxu0 %vm555_vm1, %v6615_v37  ;;  %v6366_v0 = vld [vmem:[%s10447_s4 + $0x278] sm:$0xff] }
 0x27a   : > { %2586 = vmatprep.mubr.f32.mxu1 %v10472_v63  ;;  %5405 = vmatprep.mubr.f32.mxu0 %v10472_v63 }
 0x27c   : > { %5592 = vperm.xlu1 %7372, %v5518_v61  }
 0x27d   : > { %6307 = vmatmul.mubr.msk.f32.gmra.mrb[10].mxu1 %vm555_vm1, %v6291_v41  ;;  %6632 = vmatmul.mubr.msk.f32.gmra.mrb[40].mxu0 %vm555_vm1, %v6616_v8 }
 0x27e   : > { %2592 = vmatprep.mubr.f32.mxu1 %v10472_v63  ;;  %5411 = vmatprep.mubr.f32.mxu0 %v10472_v63 }
 0x281   : > { %6308 = vmatmul.mubr.msk.f32.gmra.mrb[12].mxu1 %vm555_vm1, %v6292_v16  ;;  %6633 = vmatmul.mubr.msk.f32.gmra.mrb[42].mxu0 %vm555_vm1, %v6617_v11 }
 0x282   : > { %2598 = vmatprep.mubr.f32.mxu1 %v10472_v63  ;;  %5417 = vmatprep.mubr.f32.mxu0 %v10472_v63 }
 0x285   : > { %6309 = vmatmul.mubr.msk.f32.gmra.mrb[14].mxu1 %vm555_vm1, %v6293_v7  ;;  %6634 = vmatmul.mubr.msk.f32.gmra.mrb[44].mxu0 %vm555_vm1, %v6618_v49 }
 0x286   : > { %2604 = vmatprep.mubr.f32.mxu1 %v10472_v63  ;;  %5423 = vmatprep.mubr.f32.mxu0 %v10472_v63 }
 0x289   : > { %6310 = vmatmul.mubr.msk.f32.gmra.mrb[16].mxu1 %vm555_vm1, %v6294_v14  ;;  %6635 = vmatmul.mubr.msk.f32.gmra.mrb[46].mxu0 %vm555_vm1, %v6619_v32 }
 0x28a   : > { %2610 = vmatprep.mubr.f32.mxu1 %v10472_v63  ;;  %5429 = vmatprep.mubr.f32.mxu0 %v10472_v63 }
 0x28d   : > { %6311 = vmatmul.mubr.msk.f32.gmra.mrb[18].mxu1 %vm555_vm1, %v6295_v47  ;;  %6636 = vmatmul.mubr.msk.f32.gmra.mrb[48].mxu0 %vm555_vm1, %v6620_v52 }
 0x28e   : > { %2616 = vmatprep.mubr.f32.mxu1 %v10472_v63  ;;  %5435 = vmatprep.mubr.f32.mxu0 %v10472_v63 }
 0x291   : > { %6312 = vmatmul.mubr.msk.f32.gmra.mrb[20].mxu1 %vm555_vm1, %v6296_v55  ;;  %6637 = vmatmul.mubr.msk.f32.gmra.mrb[50].mxu0 %vm555_vm1, %v6621_v48 }
 0x292   : > { %2622 = vmatprep.mubr.f32.mxu1 %v10472_v63  ;;  %5441 = vmatprep.mubr.f32.mxu0 %v10472_v63 }
 0x295   : > { %6313 = vmatmul.mubr.msk.f32.gmra.mrb[22].mxu1 %vm555_vm1, %v6297_v36  ;;  %6638 = vmatmul.mubr.msk.f32.gmra.mrb[52].mxu0 %vm555_vm1, %v6622_v53 }
 0x296   : > { %2628 = vmatprep.mubr.f32.mxu1 %v10472_v63  ;;  %5447 = vmatprep.mubr.f32.mxu0 %v10472_v63 }
 0x299   : > { %6314 = vmatmul.mubr.msk.f32.gmra.mrb[24].mxu1 %vm555_vm1, %v6298_v29  ;;  %6639 = vmatmul.mubr.msk.f32.gmra.mrb[54].mxu0 %vm555_vm1, %v6623_v4 }
 0x29a   : > { %2634 = vmatprep.mubr.f32.mxu1 %v10472_v63  ;;  %5453 = vmatprep.mubr.f32.mxu0 %v10472_v63 }
 0x29d   : > { %6315 = vmatmul.mubr.msk.f32.gmra.mrb[26].mxu1 %vm555_vm1, %v6299_v44  ;;  %6640 = vmatmul.mubr.msk.f32.gmra.mrb[56].mxu0 %vm555_vm1, %v6624_v54 }
 0x29e   : > { %2640 = vmatprep.mubr.f32.mxu1 %v10472_v63  ;;  %5459 = vmatprep.mubr.f32.mxu0 %v10472_v63 }
 0x2a1   : > { %6316 = vmatmul.mubr.msk.f32.gmra.mrb[28].mxu1 %vm555_vm1, %v6300_v57  ;;  %6641 = vmatmul.mubr.msk.f32.gmra.mrb[58].mxu0 %vm555_vm1, %v6625_v2 }
 0x2a2   : > { %2646 = vmatprep.mubr.f32.mxu1 %v10472_v63  ;;  %5465 = vmatprep.mubr.f32.mxu0 %v10472_v63 }
 0x2a5   : > { %6317 = vmatmul.mubr.msk.f32.gmra.mrb[30].mxu1 %vm555_vm1, %v6301_v24  ;;  %6642 = vmatmul.mubr.msk.f32.gmra.mrb[60].mxu0 %vm555_vm1, %v6626_v43 }
 0x2a6   : > { %3101 = vmatprep.mubr.f32.mxu1 %v10472_v63 }
 0x2a9   : > { %6368 = vmatmul.mubr.msk.f32.vlgmr.msra.gmra.mrb[32].mxu1 %vm555_vm1, %v6352_v39 }
 0x2aa   : > { %3107 = vmatprep.mubr.f32.mxu1 %v10472_v63 }
 0x2ad   : > { %6369 = vmatmul.mubr.msk.f32.gmra.mrb[34].mxu1 %vm555_vm1, %v6353_v22 }
 0x2ae   : > { %3113 = vmatprep.mubr.f32.mxu1 %v10472_v63 }
 0x2b1   : > { %6370 = vmatmul.mubr.msk.f32.gmra.mrb[36].mxu1 %vm555_vm1, %v6354_v18 }
 0x2b2   : > { %3119 = vmatprep.mubr.f32.mxu1 %v10472_v63 }
 0x2b5   : > { %6371 = vmatmul.mubr.msk.f32.gmra.mrb[38].mxu1 %vm555_vm1, %v6355_v1 }
 0x2b6   : > { %3125 = vmatprep.mubr.f32.mxu1 %v10472_v63 }
 0x2b9   : > { %6372 = vmatmul.mubr.msk.f32.gmra.mrb[40].mxu1 %vm555_vm1, %v6356_v28 }
 0x2ba   : > { %3131 = vmatprep.mubr.f32.mxu1 %v10472_v63 }
 0x2bd   : > { %6373 = vmatmul.mubr.msk.f32.gmra.mrb[42].mxu1 %vm555_vm1, %v6357_v20 }
 0x2be   : > { %3137 = vmatprep.mubr.f32.mxu1 %v10472_v63 }
 0x2c1   : > { %6374 = vmatmul.mubr.msk.f32.gmra.mrb[44].mxu1 %vm555_vm1, %v6358_v31 }
 0x2c2   : > { %3143 = vmatprep.mubr.f32.mxu1 %v10472_v63 }
 0x2c5   : > { %6375 = vmatmul.mubr.msk.f32.gmra.mrb[46].mxu1 %vm555_vm1, %v6359_v45 }
 0x2c6   : > { %3149 = vmatprep.mubr.f32.mxu1 %v10472_v63 }
 0x2c9   : > { %6376 = vmatmul.mubr.msk.f32.gmra.mrb[48].mxu1 %vm555_vm1, %v6360_v25 }
 0x2ca   : > { %3155 = vmatprep.mubr.f32.mxu1 %v10472_v63 }
 0x2cd   : > { %6377 = vmatmul.mubr.msk.f32.gmra.mrb[50].mxu1 %vm555_vm1, %v6361_v60 }
 0x2ce   : > { %3161 = vmatprep.mubr.f32.mxu1 %v10472_v63 }
 0x2d1   : > { %6378 = vmatmul.mubr.msk.f32.gmra.mrb[52].mxu1 %vm555_vm1, %v6362_v33 }
 0x2d2   : > { %3167 = vmatprep.mubr.f32.mxu1 %v10472_v63 }
 0x2d5   : > { %6379 = vmatmul.mubr.msk.f32.gmra.mrb[54].mxu1 %vm555_vm1, %v6363_v3 }
 0x2d6   : > { %3173 = vmatprep.mubr.f32.mxu1 %v10472_v63 }
 0x2d9   : > { %6380 = vmatmul.mubr.msk.f32.gmra.mrb[56].mxu1 %vm555_vm1, %v6364_v51 }
 0x2da   : > { %3179 = vmatprep.mubr.f32.mxu1 %v10472_v63 }
 0x2dd   : > { %6381 = vmatmul.mubr.msk.f32.gmra.mrb[58].mxu1 %vm555_vm1, %v6365_v42 }
 0x2de   : > { %3185 = vmatprep.mubr.f32.mxu1 %v10472_v63 }
 0x2e1   : > { %6382 = vmatmul.mubr.msk.f32.gmra.mrb[60].mxu1 %vm555_vm1, %v6366_v0 }
 0x33c   : > { %v2558_v37 = vpop.f32.mrb[0].mxu1  ;;  %v5377_v5 = vpop.f32.mrb[0].mxu0 }
 0x33d   : > { %v10051_v40 = vadd.f32 %v5377_v5, %v2558_v37  ;;  %v2560_v41 = vpop.f32.mrb[1].mxu1  ;;  %v5379_v8 = vpop.f32.mrb[1].mxu0 }
 0x33e   : > { %v10053_v61 = vadd.f32 %v5379_v8, %v2560_v41 }
 0x340   : > { %v2564_v16 = vpop.f32.mrb[2].mxu1  ;;  %v10055_v11 = vpop.f32.mrb[32].mxu0 }
 0x341   : > { %v10058_v7 = vadd.f32 %v8459_v10, %v2564_v16  ;;  %v2566_v63 = vpop.f32.mrb[3].mxu1  ;;  %v10060_v49 = vpop.f32.mrb[33].mxu0 }
 0x342   : > { %v10063_v14 = vadd.f32 %v8465_v6, %v2566_v63 }
 0x344   : > { %v2570_v32 = vpop.f32.mrb[4].mxu1  ;;  %v10065_v47 = vpop.f32.mrb[34].mxu0 }
 0x345   : > { %v10068_v52 = vadd.f32 %v8477_v59, %v2570_v32  ;;  %v2572_v55 = vpop.f32.mrb[5].mxu1  ;;  %v10070_v48 = vpop.f32.mrb[35].mxu0 }
 0x346   : > { %v10073_v36 = vadd.f32 %v8483_v27, %v2572_v55 }
 0x348   : > { %v2576_v10 = vpop.f32.mrb[6].mxu1  ;;  %v10075_v53 = vpop.f32.mrb[36].mxu0 }
 0x349   : > { %v10078_v29 = vadd.f32 %v8495_v56, %v2576_v10  ;;  %v2578_v6 = vpop.f32.mrb[7].mxu1  ;;  %v10080_v4 = vpop.f32.mrb[37].mxu0 }
 0x34a   : > { %v10083_v44 = vadd.f32 %v8497_v13, %v2578_v6 }
 0x34c   : > { %v2582_v59 = vpop.f32.mrb[8].mxu1  ;;  %v10085_v54 = vpop.f32.mrb[38].mxu0 }
 0x34d   : > { %v10088_v57 = vadd.f32 %v8509_v9, %v2582_v59  ;;  %v2584_v27 = vpop.f32.mrb[9].mxu1  ;;  %v10090_v2 = vpop.f32.mrb[39].mxu0 }
 0x34e   : > { %v10093_v24 = vadd.f32 %v8511_v15, %v2584_v27 }
 0x350   : > { %v2588_v56 = vpop.f32.mrb[10].mxu1  ;;  %v10095_v43 = vpop.f32.mrb[40].mxu0 }
 0x351   : > { %v10098_v39 = vadd.f32 %v8523_v50, %v2588_v56  ;;  %v2590_v13 = vpop.f32.mrb[11].mxu1  ;;  %v10100_v22 = vpop.f32.mrb[41].mxu0 }
 0x352   : > { %v10103_v18 = vadd.f32 %v8528_v62, %v2590_v13  ;;  %v10482_v13 = vld [vmem:[#allocation8_spill] sm:$0xff] }
 0x354   : > { %v2594_v9 = vpop.f32.mrb[12].mxu1  ;;  %v10105_v1 = vpop.f32.mrb[42].mxu0 }
 0x355   : > { %v10108_v28 = vadd.f32 %v8546_v35, %v2594_v9  ;;  %v2596_v15 = vpop.f32.mrb[13].mxu1  ;;  %v10110_v20 = vpop.f32.mrb[43].mxu0 }
 0x356   : > { %v10113_v31 = vadd.f32 %v8552_v17, %v2596_v15 }
 0x358   : > { %v2600_v50 = vpop.f32.mrb[14].mxu1  ;;  %v10115_v45 = vpop.f32.mrb[44].mxu0 }
 0x359   : > { %v10118_v25 = vadd.f32 %v8574_v12, %v2600_v50  ;;  %v2602_v62 = vpop.f32.mrb[15].mxu1  ;;  %v10120_v60 = vpop.f32.mrb[45].mxu0  ;;  %v10484_v50 = vld [vmem:[#allocation9_spill] sm:$0xff] }
 0x35a   : > { %v10123_v33 = vadd.f32 %v8582_v34, %v2602_v62 }
 0x35c   : > { %v2606_v35 = vpop.f32.mrb[16].mxu1  ;;  %v10125_v3 = vpop.f32.mrb[46].mxu0 }
 0x35d   : > { %v10128_v51 = vadd.f32 %v8598_v38, %v2606_v35  ;;  %v2608_v17 = vpop.f32.mrb[17].mxu1  ;;  %v10130_v42 = vpop.f32.mrb[47].mxu0 }
 0x35e   : > { %v10133_v0 = vadd.f32 %v8604_v19, %v2608_v17  ;;  %v10486_v17 = vld [vmem:[#allocation10_spill] sm:$0xff] }
 0x360   : > { %v2612_v12 = vpop.f32.mrb[18].mxu1  ;;  %v10135_v37 = vpop.f32.mrb[48].mxu0 }
 0x361   : > { %v10138_v5 = vadd.f32 %v8626_v23, %v2612_v12  ;;  %v2614_v34 = vpop.f32.mrb[19].mxu1  ;;  %v10140_v41 = vpop.f32.mrb[49].mxu0 }
 0x362   : > { %v10143_v8 = vadd.f32 %v8634_v46, %v2614_v34 }
 0x364   : > { %v2618_v38 = vpop.f32.mrb[20].mxu1  ;;  %v10145_v16 = vpop.f32.mrb[50].mxu0 }
 0x365   : > { %v10148_v63 = vadd.f32 %v8648_v30, %v2618_v38  ;;  %v2620_v19 = vpop.f32.mrb[21].mxu1  ;;  %v10150_v32 = vpop.f32.mrb[51].mxu0  ;;  %v10489_v38 = vld [vmem:[#allocation11_spill] sm:$0xff] }
 0x366   : > { %v10153_v55 = vadd.f32 %v8650_v26, %v2620_v19 }
 0x368   : > { %v2624_v23 = vpop.f32.mrb[22].mxu1  ;;  %v10155_v10 = vpop.f32.mrb[52].mxu0 }
 0x369   : > { %v10158_v6 = vadd.f32 %v8662_v58, %v2624_v23  ;;  %v2626_v46 = vpop.f32.mrb[23].mxu1  ;;  %v10160_v59 = vpop.f32.mrb[53].mxu0 }
 0x36a   : > { %v10163_v27 = vadd.f32 %v8664_v21, %v2626_v46 }
 0x36c   : > { %v2630_v30 = vpop.f32.mrb[24].mxu1  ;;  %v10165_v56 = vpop.f32.mrb[54].mxu0 }
 0x36d   : > { %v10168_v9 = vadd.f32 %v10482_v13, %v2630_v30  ;;  %v2632_v26 = vpop.f32.mrb[25].mxu1  ;;  %v10170_v15 = vpop.f32.mrb[55].mxu0  ;;  %v10492_v30 = vld [vmem:[#allocation12_spill] sm:$0xff] }
 0x36e   : > { %10483 = vst [vmem:[#allocation8_spill] sm:$0xff] %v10170_v15  ;;  %v10173_v62 = vadd.f32 %v10484_v50, %v2632_v26  ;;  %v10495_v15 = vld [vmem:[#allocation13_spill] sm:$0xff] }
 0x370   : > { %v2636_v58 = vpop.f32.mrb[26].mxu1  ;;  %v10175_v35 = vpop.f32.mrb[56].mxu0 }
 0x371   : > { %10485 = vst [vmem:[#allocation9_spill] sm:$0xff] %v10175_v35  ;;  %v10178_v12 = vadd.f32 %v10486_v17, %v2636_v58  ;;  %v2638_v21 = vpop.f32.mrb[27].mxu1  ;;  %v10180_v34 = vpop.f32.mrb[57].mxu0 }
 0x372   : > { %10488 = vst [vmem:[#allocation16_spill] sm:$0xff] %v10180_v34  ;;  %v10183_v19 = vadd.f32 %v10489_v38, %v2638_v21 }
 0x373   : > { %10487 = vst [vmem:[#allocation10_spill] sm:$0xff] %v10178_v12  ;;  %v10498_v12 = vld [vmem:[#allocation14_spill] sm:$0xff] }
 0x374   : > { %10490 = vst [vmem:[#allocation11_spill] sm:$0xff] %v10183_v19  ;;  %v2642_v23 = vpop.f32.mrb[28].mxu1  ;;  %v10185_v46 = vpop.f32.mrb[58].mxu0  ;;  %v10501_v19 = vld [vmem:[#allocation15_spill] sm:$0xff] }
 0x375   : > { %10491 = vst [vmem:[#allocation17_spill] sm:$0xff] %v10185_v46  ;;  %v10188_v13 = vadd.f32 %v10492_v30, %v2642_v23  ;;  %v2644_v26 = vpop.f32.mrb[29].mxu1  ;;  %v10190_v50 = vpop.f32.mrb[59].mxu0 }
 0x376   : > { %10494 = vst [vmem:[#allocation18_spill] sm:$0xff] %v10190_v50  ;;  %v10193_v35 = vadd.f32 %v10495_v15, %v2644_v26  ;;  %v5523_v50 = vpop.permute.xlu0 %5522 }
 0x377   : > { %10493 = vst [vmem:[#allocation12_spill] sm:$0xff] %v10188_v13 }
 0x378   : > { %10496 = vst [vmem:[#allocation13_spill] sm:$0xff] %v10193_v35  ;;  %v2648_v58 = vpop.f32.mrb[30].mxu1  ;;  %v10195_v17 = vpop.f32.mrb[60].mxu0 }
 0x379   : > { %10497 = vst [vmem:[#allocation19_spill] sm:$0xff] %v10195_v17  ;;  %v10198_v34 = vadd.f32 %v10498_v12, %v2648_v58  ;;  %v2650_v21 = vpop.f32.mrb[31].mxu1  ;;  %v10200_v38 = vpop.f32.mrb[61].mxu0  ;;  %v5600_v58 = vadd.f32 %v10051_v40, %v5523_v50 }
 0x37a   : > { %10500 = vst [vmem:[#allocation20_spill] sm:$0xff] %v10200_v38  ;;  %v10203_v46 = vadd.f32 %v10501_v19, %v2650_v21  ;;  %v5528_v35 = vpop.permute.xlu1 %5527 }
 0x37b   : > { %10499 = vst [vmem:[#allocation14_spill] sm:$0xff] %v10198_v34 }
 0x37c   : > { %10502 = vst [vmem:[#allocation15_spill] sm:$0xff] %v10203_v46  ;;  %v3103_v23 = vpop.f32.mrb[32].mxu1 }
 0x37d   : > { %v6759_v30 = vadd.f32 %v10058_v7, %v3103_v23  ;;  %v3105_v13 = vpop.f32.mrb[33].mxu1  ;;  %v5601_v7 = vadd.f32 %v10053_v61, %v5523_v50 }
 0x37e   : > { %v6762_v15 = vadd.f32 %v10063_v14, %v3105_v13  ;;  %v6643_v13 = vmul.f32 -1.442695, %v5600_v58 }
 0x37f   : > { %v6760_v26 = vadd.f32 %v6759_v30, %v10055_v11 }
 0x380   : > { %v6763_v17 = vadd.f32 %v6762_v15, %v10060_v49  ;;  %v3109_v12 = vpop.f32.mrb[34].mxu1  ;;  %v5533_v15 = vpop.permute.xlu1 %5532  ;;  %7373 = vpow2.f32 %v6643_v13 }
 0x381   : > { %v6765_v38 = vadd.f32 %v10068_v52, %v3109_v12  ;;  %v3111_v34 = vpop.f32.mrb[35].mxu1  ;;  %v5602_v11 = vadd.f32 %v6760_v26, %v5528_v35  ;;  %v6644_v12 = vmul.f32 -1.442695, %v5601_v7  ;;  %v5538_v26 = vpop.permute.xlu0 %5537 }
 0x382   : > { %v6768_v19 = vadd.f32 %v10073_v36, %v3111_v34  ;;  %v5603_v46 = vadd.f32 %v6763_v17, %v5528_v35 }
 0x383   : > { %v6766_v21 = vadd.f32 %v6765_v38, %v10065_v47  ;;  %v6645_v61 = vmul.f32 -1.442695, %v5602_v11  ;;  %7375 = vpow2.f32 %v6644_v12 }
 0x384   : > { %v6769_v23 = vadd.f32 %v6768_v19, %v10070_v48  ;;  %v3115_v14 = vpop.f32.mrb[36].mxu1 }
 0x385   : > { %v6771_v49 = vadd.f32 %v10078_v29, %v3115_v14  ;;  %v3117_v30 = vpop.f32.mrb[37].mxu1  ;;  %v5604_v34 = vadd.f32 %v6766_v21, %v5533_v15  ;;  %7377 = vpow2.f32 %v6645_v61 }
 0x386   : > { %v6774_v40 = vadd.f32 %v10083_v44, %v3117_v30  ;;  %v5605_v38 = vadd.f32 %v6769_v23, %v5533_v15 }
 0x387   : > { %v6772_v52 = vadd.f32 %v6771_v49, %v10075_v53  ;;  %v6646_v53 = vmul.f32 -1.442695, %v5603_v46  ;;  %v6647_v7 = vmul.f32 -1.442695, %v5604_v34  ;;  %v5548_v49 = vpop.permute.xlu0 %5547 }
 0x388   : > { %v6775_v36 = vadd.f32 %v6774_v40, %v10080_v4  ;;  %v3121_v47 = vpop.f32.mrb[38].mxu1  ;;  %v5543_v4 = vpop.permute.xlu1 %5542  ;;  %v6648_v23 = vmul.f32 -1.442695, %v5605_v38 }
 0x389   : > { %v6777_v48 = vadd.f32 %v10088_v57, %v3121_v47  ;;  %v3123_v50 = vpop.f32.mrb[39].mxu1  ;;  %v5606_v44 = vadd.f32 %v6772_v52, %v5538_v26  ;;  %7379 = vpow2.f32 %v6646_v53 }
 0x38a   : > { %v6780_v29 = vadd.f32 %v10093_v24, %v3123_v50  ;;  %v5607_v19 = vadd.f32 %v6775_v36, %v5538_v26  ;;  %7381 = vpow2.f32 %v6647_v7 }
 0x38b   : > { %v6778_v58 = vadd.f32 %v6777_v48, %v10085_v54  ;;  %v6649_v24 = vmul.f32 -1.442695, %v5606_v44  ;;  %7383 = vpow2.f32 %v6648_v23 }
 0x38c   : > { %v6781_v35 = vadd.f32 %v6780_v29, %v10090_v2  ;;  %v3127_v17 = vpop.f32.mrb[40].mxu1  ;;  %v6650_v46 = vmul.f32 -1.442695, %v5607_v19  ;;  %v5553_v34 = vpop.permute.xlu1 %5552 }
 0x38d   : > { %v5608_v21 = vadd.f32 %v6778_v58, %v5543_v4  ;;  %v6783_v57 = vadd.f32 %v10098_v39, %v3127_v17  ;;  %v3129_v14 = vpop.f32.mrb[41].mxu1  ;;  %7385 = vpow2.f32 %v6649_v24 }
 0x38e   : > { %v6786_v13 = vadd.f32 %v10103_v18, %v3129_v14  ;;  %v5609_v11 = vadd.f32 %v6781_v35, %v5543_v4  ;;  %v7374_v18 = vpop.eup %7373  ;;  %7387 = vpow2.f32 %v6650_v46  ;;  %v5558_v35 = vpop.permute.xlu0 %5557 }
 0x38f   : > { %v6784_v54 = vadd.f32 %v6783_v57, %v10095_v43  ;;  %v6651_v15 = vmul.f32 -1.442695, %v5608_v21  ;;  %v7376_v26 = vpop.eup %7375  ;;  %v5656_v29 = vadd.f32 1.0, %v7374_v18 }
 0x390   : > { %v6787_v2 = vadd.f32 %v6786_v13, %v10100_v22  ;;  %v3133_v30 = vpop.f32.mrb[42].mxu1  ;;  %v6652_v36 = vmul.f32 -1.442695, %v5609_v11  ;;  %v7378_v58 = vpop.eup %7377  ;;  %v5657_v17 = vadd.f32 1.0, %v7376_v26 }
 0x391   : > { %v5610_v40 = vadd.f32 %v6784_v54, %v5548_v49  ;;  %v6789_v52 = vadd.f32 %v10108_v28, %v3133_v30  ;;  %v3135_v39 = vpop.f32.mrb[43].mxu1  ;;  %7389 = vpow2.f32 %v6651_v15 }
 0x392   : > { %v6792_v12 = vadd.f32 %v10113_v31, %v3135_v39  ;;  %v5611_v47 = vadd.f32 %v6787_v2, %v5548_v49  ;;  %7391 = vpow2.f32 %v6652_v36 }
 0x393   : > { %v6790_v43 = vadd.f32 %v6789_v52, %v10105_v1  ;;  %v6653_v61 = vmul.f32 -1.442695, %v5610_v40  ;;  %v7380_v57 = vpop.eup %7379 }
 0x394   : > { %v6793_v22 = vadd.f32 %v6792_v12, %v10110_v20  ;;  %v3139_v48 = vpop.f32.mrb[44].mxu1  ;;  %v6654_v44 = vmul.f32 -1.442695, %v5611_v47  ;;  %v7382_v23 = vpop.eup %7381 }
 0x395   : > { %v5612_v50 = vadd.f32 %v6790_v43, %v5553_v34  ;;  %v6795_v28 = vadd.f32 %v10118_v25, %v3139_v48  ;;  %v3141_v38 = vpop.f32.mrb[45].mxu1  ;;  %7393 = vpow2.f32 %v6653_v61  ;;  %v7384_v24 = vpop.eup %7383 }
 0x396   : > { %v6798_v31 = vadd.f32 %v10123_v33, %v3141_v38  ;;  %v5613_v53 = vadd.f32 %v6793_v22, %v5553_v34  ;;  %7395 = vrcp.f32 %v5656_v29  ;;  %v5658_v33 = vadd.f32 1.0, %v7378_v58  ;;  %v5563_v47 = vpop.permute.xlu1 %5562  ;;  %v5568_v58 = vpop.permute.xlu0 %5567 }
 0x397   : > { %v6796_v1 = vadd.f32 %v6795_v28, %v10115_v45  ;;  %v6655_v19 = vmul.f32 -1.442695, %v5612_v50  ;;  %7397 = vpow2.f32 %v6654_v44  ;;  %v7386_v46 = vpop.eup %7385  ;;  %v5661_v52 = vadd.f32 1.0, %v7384_v24 }
 0x398   : > { %v6799_v20 = vadd.f32 %v6798_v31, %v10120_v60  ;;  %v3145_v4 = vpop.f32.mrb[46].mxu1  ;;  %v6656_v13 = vmul.f32 -1.442695, %v5613_v53  ;;  %v7388_v30 = vpop.eup %7387  ;;  %v5662_v12 = vadd.f32 1.0, %v7386_v46 }
 0x399   : > { %v5614_v7 = vadd.f32 %v6796_v1, %v5558_v35  ;;  %v6801_v25 = vadd.f32 %v10128_v51, %v3145_v4  ;;  %v3147_v21 = vpop.f32.mrb[47].mxu1  ;;  %7399 = vpow2.f32 %v6655_v19  ;;  %v5659_v51 = vadd.f32 1.0, %v7380_v57 }
 0x39a   : > { %v6804_v14 = vadd.f32 %v10133_v0, %v3147_v21  ;;  %7401 = vrcp.f32 %v5657_v17  ;;  %v5660_v0 = vadd.f32 1.0, %v7382_v23 }
 0x39b   : > { %v6802_v45 = vadd.f32 %v6801_v25, %v10125_v3  ;;  %v6657_v11 = vmul.f32 -1.442695, %v5614_v7  ;;  %7403 = vrcp.f32 %v5658_v33  ;;  %v7390_v40 = vpop.eup %7389  ;;  %v5615_v3 = vadd.f32 %v6799_v20, %v5558_v35  ;;  %v5573_v20 = vpop.permute.xlu1 %5572 }
 0x39c   : > { %v6805_v60 = vadd.f32 %v6804_v14, %v10130_v42  ;;  %v3151_v54 = vpop.f32.mrb[48].mxu1  ;;  %7405 = vpow2.f32 %v6656_v13  ;;  %v7392_v36 = vpop.eup %7391 }
 0x39d   : > { %v6807_v49 = vadd.f32 %v10138_v5, %v3151_v54  ;;  %v3153_v2 = vpop.f32.mrb[49].mxu1  ;;  %7407 = vpow2.f32 %v6657_v11  ;;  %v5663_v5 = vadd.f32 1.0, %v7388_v30  ;;  %v5616_v22 = vadd.f32 %v6802_v45, %v5563_v47 }
 0x39e   : > { %v6810_v15 = vadd.f32 %v10143_v8, %v3153_v2  ;;  %7409 = vrcp.f32 %v5659_v51  ;;  %v5704_v8 = vadd.f32 1.0, %v7390_v40  ;;  %v5617_v50 = vadd.f32 %v6805_v60, %v5563_v47  ;;  %v10503_v51 = vld [vmem:[#allocation8_spill] sm:$0xff] }
 0x39f   : > { %v6808_v39 = vadd.f32 %v6807_v49, %v10135_v37  ;;  %v7394_v34 = vpop.eup %7393  ;;  %7411 = vrcp.f32 %v5660_v0  ;;  %v6658_v37 = vmul.f32 -1.442695, %v5615_v3  ;;  %v5705_v38 = vadd.f32 1.0, %v7392_v36  ;;  %v10506_v36 = vld [vmem:[#allocation9_spill] sm:$0xff] }
 0x3a0   : > { %v6811_v42 = vadd.f32 %v6810_v15, %v10140_v41  ;;  %v3157_v18 = vpop.f32.mrb[50].mxu1  ;;  %7413 = vrcp.f32 %v5661_v52  ;;  %v10246_v41 = vpop.eup %7395  ;;  %v5706_v31 = vadd.f32 1.0, %v7394_v34  ;;  %v6659_v1 = vmul.f32 -1.442695, %v5616_v22  ;;  %v10504_v15 = vld [vmem:[#allocation10_spill] sm:$0xff]  ;;  %v10507_v34 = vld [vmem:[#allocation16_spill] sm:$0xff] }
 0x3a1   : > { %v6813_v43 = vadd.f32 %v10148_v63, %v3157_v18  ;;  %v3159_v61 = vpop.f32.mrb[51].mxu1  ;;  %7415 = vrcp.f32 %v5662_v12  ;;  %v7398_v63 = vpop.eup %7397  ;;  %v5618_v19 = vadd.f32 %v6808_v39, %v5568_v58  ;;  %v6660_v4 = vmul.f32 -1.442695, %v5617_v50  ;;  %v10505_v39 = vld [vmem:[#allocation11_spill] sm:$0xff] }
 0x3a2   : > { %v6816_v48 = vadd.f32 %v10153_v55, %v3159_v61  ;;  %7417 = vrcp.f32 %v5663_v5  ;;  %v5707_v25 = vadd.f32 1.0, %v7398_v63 }
 0x3a3   : > { %v6814_v28 = vadd.f32 %v6813_v43, %v10145_v16  ;;  %v7400_v55 = vpop.eup %7399  ;;  %7419 = vrcp.f32 %v5704_v8  ;;  %v6661_v13 = vmul.f32 -1.442695, %v5618_v19 }
 0x3a4   : > { %v6817_v26 = vadd.f32 %v6816_v48, %v10150_v32  ;;  %v3163_v29 = vpop.f32.mrb[52].mxu1  ;;  %v10251_v35 = vpop.eup %7401  ;;  %7421 = vpow2.f32 %v6658_v37  ;;  %v5619_v32 = vadd.f32 %v6811_v42, %v5568_v58  ;;  %v5708_v33 = vadd.f32 1.0, %v7400_v55  ;;  %v10509_v58 = vld [vmem:[#allocation13_spill] sm:$0xff] }
 0x3a5   : > { %v6819_v44 = vadd.f32 %v10158_v6, %v3163_v29  ;;  %v3165_v53 = vpop.f32.mrb[53].mxu1  ;;  %v10254_v7 = vpop.eup %7403  ;;  %7423 = vrcp.f32 %v5705_v38  ;;  %v5620_v46 = vadd.f32 %v6814_v28, %v5573_v20  ;;  %v10508_v28 = vld [vmem:[#allocation12_spill] sm:$0xff] }
 0x3a6   : > { %v6822_v16 = vadd.f32 %v10163_v27, %v3165_v53  ;;  %v7406_v57 = vpop.eup %7405  ;;  %7425 = vrcp.f32 %v5706_v31  ;;  %v6662_v11 = vmul.f32 -1.442695, %v5619_v32  ;;  %v5621_v0 = vadd.f32 %v6817_v26, %v5573_v20  ;;  %v10511_v32 = vld [vmem:[#allocation18_spill] sm:$0xff] }
 0x3a7   : > { %v6820_v17 = vadd.f32 %v6819_v44, %v10155_v10  ;;  %v7408_v23 = vpop.eup %7407  ;;  %7427 = vpow2.f32 %v6659_v1  ;;  %v5578_v10 = vpop.permute.xlu0 %5577  ;;  %v5709_v54 = vadd.f32 1.0, %v7406_v57  ;;  %v6663_v43 = vmul.f32 -1.442695, %v5620_v46  ;;  %v10510_v1 = vld [vmem:[#allocation17_spill] sm:$0xff]  ;;  %v10512_v57 = vld [vmem:[#allocation14_spill] sm:$0xff] }
 0x3a8   : > { %v6823_v6 = vadd.f32 %v6822_v16, %v10160_v59  ;;  %v3169_v21 = vpop.f32.mrb[54].mxu1  ;;  %v10259_v24 = vpop.eup %7409  ;;  %7429 = vpow2.f32 %v6660_v4  ;;  %v5710_v30 = vadd.f32 1.0, %v7408_v23  ;;  %v6664_v50 = vmul.f32 -1.442695, %v5621_v0 }
 0x3a9   : > { %v6825_v27 = vadd.f32 %v10168_v9, %v3169_v21  ;;  %v3171_v14 = vpop.f32.mrb[55].mxu1  ;;  %v10262_v59 = vpop.eup %7411  ;;  %7431 = vrcp.f32 %v5707_v25  ;;  %v5622_v61 = vadd.f32 %v6820_v17, %v5578_v10 }
 0x3aa   : > { %v6828_v45 = vadd.f32 %v10173_v62, %v3171_v14  ;;  %v10265_v2 = vpop.eup %7413  ;;  %7433 = vrcp.f32 %v5708_v33  ;;  %v5583_v62 = vpop.permute.xlu1 %5582  ;;  %v5623_v63 = vadd.f32 %v6823_v6, %v5578_v10 }
 0x3ab   : > { %v6826_v60 = vadd.f32 %v6825_v27, %v10165_v56  ;;  %v10268_v3 = vpop.eup %7415  ;;  %7435 = vpow2.f32 %v6661_v13  ;;  %v5588_v37 = vpop.permute.xlu0 %5587  ;;  %v6665_v4 = vmul.f32 -1.442695, %v5622_v61  ;;  %v10513_v13 = vld [vmem:[#allocation15_spill] sm:$0xff] }
 0x3ac   : > { %v6829_v9 = vadd.f32 %v6828_v45, %v10503_v51  ;;  %v3175_v49 = vpop.f32.mrb[56].mxu1  ;;  %v10271_v42 = vpop.eup %7417  ;;  %7437 = vpow2.f32 %v6662_v11  ;;  %v6666_v23 = vmul.f32 -1.442695, %v5623_v63 }
 0x3ad   : > { %v6831_v40 = vadd.f32 %v10504_v15, %v3175_v49  ;;  %v3177_v52 = vpop.f32.mrb[57].mxu1  ;;  %v5624_v56 = vadd.f32 %v6826_v60, %v5583_v62  ;;  %v10274_v47 = vpop.eup %7419  ;;  %7439 = vrcp.f32 %v5709_v54  ;;  %v10514_v60 = vld [vmem:[#allocation19_spill] sm:$0xff] }
 0x3ae   : > { %v6834_v12 = vadd.f32 %v10505_v39, %v3177_v52  ;;  %v5625_v18 = vadd.f32 %v6829_v9, %v5583_v62  ;;  %v7422_v48 = vpop.eup %7421  ;;  %7441 = vrcp.f32 %v5710_v30  ;;  %v5593_v20 = vpop.permute.xlu1 %5592  ;;  %v10515_v9 = vld [vmem:[#allocation20_spill] sm:$0xff]  ;;  %v5785_v39 = vld [vmem:[%s10290_s16 + $0x8] sm:$0xff] }
 0x3af   : > { %v6832_v5 = vadd.f32 %v6831_v40, %v10506_v36  ;;  %v7424_v29 = vpop.eup %7423  ;;  %7443 = vtanh.f32 %v5624_v56  ;;  %v5711_v11 = vadd.f32 1.0, %v7422_v48  ;;  %v5598_v62 = vpop.permute.xlu0 %5597  ;;  %v5784_v40 = vld [vmem:[%s10290_s16] sm:$0xff] }
 0x3b0   : > { %v6835_v8 = vadd.f32 %v6834_v12, %v10507_v34  ;;  %v3181_v22 = vpop.f32.mrb[58].mxu1  ;;  %v10279_v53 = vpop.eup %7425  ;;  %7445 = vtanh.f32 %v5625_v18 }
 0x3b1   : > { %v6837_v38 = vadd.f32 %v10508_v28, %v3181_v22  ;;  %v3183_v26 = vpop.f32.mrb[59].mxu1  ;;  %v5626_v31 = vadd.f32 %v6832_v5, %v5588_v37  ;;  %v7428_v16 = vpop.eup %7427  ;;  %7447 = vpow2.f32 %v6663_v43  ;;  %v5792_v43 = vmul.f32 %v10274_v47, %v5784_v40  ;;  %v5786_v22 = vld [vmem:[%s10290_s16 + $0x10] sm:$0xff] }
 0x3b2   : > { %v6840_v44 = vadd.f32 %v10509_v58, %v3183_v26  ;;  %v5627_v55 = vadd.f32 %v6835_v8, %v5588_v37  ;;  %v7430_v21 = vpop.eup %7429  ;;  %7449 = vpow2.f32 %v6664_v50  ;;  %v5752_v51 = vadd.f32 1.0, %v7428_v16  ;;  %v5787_v50 = vld [vmem:[%s10290_s16 + $0x18] sm:$0xff]  ;;  %v5788_v58 = vld [vmem:[%s10290_s16 + $0x20] sm:$0xff] }
 0x3b3   : > { %v6838_v19 = vadd.f32 %v6837_v38, %v10510_v1  ;;  %v7432_v14 = vpop.eup %7431  ;;  %7451 = vtanh.f32 %v5626_v31  ;;  %v5753_v36 = vadd.f32 1.0, %v7430_v21  ;;  %v5793_v8 = vmul.f32 %v7424_v29, %v5785_v39  ;;  %v5790_v21 = vld [vmem:[%s10290_s16 + $0x30] sm:$0xff] }
 0x3b4   : > { %v6841_v17 = vadd.f32 %v6840_v44, %v10511_v32  ;;  %v3187_v25 = vpop.f32.mrb[60].mxu1  ;;  %v7434_v10 = vpop.eup %7433  ;;  %7453 = vtanh.f32 %v5627_v55  ;;  %v5795_v44 = vmul.f32 %v7432_v14, %v5787_v50 }
 0x3b5   : > { %v5628_v6 = vadd.f32 %v6838_v19, %v5593_v20  ;;  %v6843_v33 = vadd.f32 %v10512_v57, %v3187_v25  ;;  %v3189_v27 = vpop.f32.mrb[61].mxu1  ;;  %v7436_v46 = vpop.eup %7435  ;;  %7455 = vpow2.f32 %v6665_v4 }
 0x3b6   : > { %v6846_v45 = vadd.f32 %v10513_v13, %v3189_v27  ;;  %v7438_v30 = vpop.eup %7437  ;;  %v5629_v0 = vadd.f32 %v6841_v17, %v5593_v20  ;;  %v5754_v28 = vadd.f32 1.0, %v7436_v46  ;;  %v5796_v20 = vmul.f32 %v7434_v10, %v5788_v58  ;;  %v5789_v17 = vld [vmem:[%s10290_s16 + $0x28] sm:$0xff]  ;;  %v5791_v27 = vld [vmem:[%s10290_s16 + $0x38] sm:$0xff]  ;;  %s7511_s16 = scalar_lea.vmem %s10341_s21, 1024 }
 0x3b7   : > { %v6844_v54 = vadd.f32 %v6843_v33, %v10514_v60  ;;  %7457 = vtanh.f32 %v5628_v6  ;;  %v10297_v15 = vpop.eup %7439  ;;  %v5755_v63 = vadd.f32 1.0, %v7438_v30  ;;  %p7512_p12 = scmp.ne.s32.totalorder %s10341_s21, %s7511_s16  ;;  %p7519_p2 = scmp.lt.s32.totalorder %s7517_s12, %s7511_s16 }
 0x3b8   : > { %v6847_v49 = vadd.f32 %v6846_v45, %v10515_v9  ;;  %7459 = vpow2.f32 %v6666_v23  ;;  %v10300_v56 = vpop.eup %7441 }
 0x3b9   : > { %v5630_v52 = vadd.f32 %v6844_v54, %v5598_v62  ;;  %7461 = vrcp.f32 %v5711_v11  ;;  %v7444_v18 = vpop.eup %7443  ;;  %v5798_v10 = vmul.f32 %v10300_v56, %v5790_v21  ;;  %p7513_p13 = pnand %p7512_p12, %p7721_p4  ;;  %p7520_p3 = por %p7519_p2, %p7518_p1 }
 0x3ba   : > { %v5631_v12 = vadd.f32 %v6847_v49, %v5598_v62  ;;  %7463 = vrcp.f32 %v5752_v51  ;;  %v7446_v5 = vpop.eup %7445  ;;  %v5800_v61 = vmul.f32 %v7444_v18, %v10246_v41  ;;  %v5794_v41 = vmul.f32 %v10279_v53, %v5786_v22 }
 0x3bb   : > { %7465 = vtanh.f32 %v5629_v0  ;;  %v7448_v34 = vpop.eup %7447  ;;  %v5801_v48 = vmul.f32 %v7446_v5, %v10251_v35  ;;  %p7514_p0 = pneg %p7513_p13 }
 0x3bc   : > { %7467 = vtanh.f32 %v5630_v52  ;;  %v7450_v37 = vpop.eup %7449  ;;  %v5808_v38 = vadd.f32 %v5800_v61, %v5792_v43  ;;  %v5756_v1 = vadd.f32 1.0, %v7448_v34 }
 0x3bd   : > { %7469 = vtanh.f32 %v5631_v12  ;;  %v7452_v26 = vpop.eup %7451  ;;  %v5809_v47 = vadd.f32 %v5801_v48, %v5793_v8  ;;  %v5757_v25 = vadd.f32 1.0, %v7450_v37  ;;  %p7521_p5 = pnand %p7520_p3, %p7514_p0 }
 0x3be   : > { %7471 = vrcp.f32 %v5753_v36  ;;  %v7454_v31 = vpop.eup %7453  ;;  %5840 = vst [vmem:[%s10313_s22] sm:$0xff] %v5808_v38  ;;  %v5802_v35 = vmul.f32 %v7452_v26, %v10254_v7 }
 0x3bf   : > { %7473 = vtanh.f32 %v5808_v38  ;;  %v7456_v29 = vpop.eup %7455  ;;  %5841 = vst [vmem:[%s10313_s22 + $0x8] sm:$0xff] %v5809_v47  ;;  %v5803_v55 = vmul.f32 %v7454_v31, %v10259_v24 }
 0x3c0   : > { %7475 = vtanh.f32 %v5809_v47  ;;  %v5810_v19 = vadd.f32 %v5802_v35, %v5794_v41  ;;  %v5758_v6 = vadd.f32 1.0, %v7456_v29 }
 0x3c1   : > { %v7458_v53 = vpop.eup %7457  ;;  %7477 = vrcp.f32 %v5754_v28  ;;  %v5811_v4 = vadd.f32 %v5803_v55, %v5795_v44 }
 0x3c2   : > { %v7460_v16 = vpop.eup %7459  ;;  %7479 = vrcp.f32 %v5755_v63  ;;  %v5804_v7 = vmul.f32 %v7458_v53, %v10262_v59  ;;  %5842 = vst [vmem:[%s10313_s22 + $0x10] sm:$0xff] %v5810_v19  ;;  %v5797_v59 = vmul.f32 %v10297_v15, %v5789_v17 }
 0x3c3   : > { %v7462_v32 = vpop.eup %7461  ;;  %7481 = vtanh.f32 %v5810_v19  ;;  %5843 = vst [vmem:[%s10313_s22 + $0x18] sm:$0xff] %v5811_v4  ;;  %v5759_v14 = vadd.f32 1.0, %v7460_v16 }
 0x3c4   : > { %v7464_v24 = vpop.eup %7463  ;;  %7483 = vtanh.f32 %v5811_v4  ;;  %v5812_v57 = vadd.f32 %v5804_v7, %v5796_v20  ;;  %v5799_v54 = vmul.f32 %v7462_v32, %v5791_v27 }
 0x3c5   : > { %v7466_v33 = vpop.eup %7465  ;;  %7485 = vrcp.f32 %v5756_v1 }
 0x3c6   : > { %v7468_v23 = vpop.eup %7467  ;;  %7487 = vtanh.f32 %v5812_v57  ;;  %5844 = vst [vmem:[%s10313_s22 + $0x20] sm:$0xff] %v5812_v57  ;;  %v5805_v13 = vmul.f32 %v7466_v33, %v10265_v2 }
 0x3c7   : > { %v7470_v45 = vpop.eup %7469  ;;  %7489 = vrcp.f32 %v5757_v25  ;;  %v5806_v11 = vmul.f32 %v7468_v23, %v10268_v3 }
 0x3c8   : > { %v7472_v60 = vpop.eup %7471  ;;  %7491 = vrcp.f32 %v5758_v6  ;;  %v5813_v46 = vadd.f32 %v5805_v13, %v5797_v59  ;;  %v5807_v51 = vmul.f32 %v7470_v45, %v10271_v42 }
 0x3c9   : > { %v7474_v9 = vpop.eup %7473  ;;  %7493 = vrcp.f32 %v5759_v14  ;;  %v5814_v2 = vadd.f32 %v5806_v11, %v5798_v10 }
 0x3ca   : > { %v7476_v49 = vpop.eup %7475  ;;  %v5824_v30 = vmul.f32 %v7474_v9, %v7464_v24  ;;  %7495 = vtanh.f32 %v5813_v46  ;;  %5845 = vst [vmem:[%s10313_s22 + $0x28] sm:$0xff] %v5813_v46  ;;  %v5815_v3 = vadd.f32 %v5807_v51, %v5799_v54 }
 0x3cb   : > { %v7478_v42 = vpop.eup %7477  ;;  %v5825_v62 = vmul.f32 %v7476_v49, %v7472_v60  ;;  %7497 = vtanh.f32 %v5814_v2  ;;  %5846 = vst [vmem:[%s10313_s22 + $0x30] sm:$0xff] %v5814_v2 }
 0x3cc   : > { %v7480_v0 = vpop.eup %7479  ;;  %5832 = vst [vmem:[%s10346_s26] sm:$0xff] %v5824_v30  ;;  %7499 = vtanh.f32 %v5815_v3  ;;  %5847 = vst [vmem:[%s10313_s22 + $0x38] sm:$0xff] %v5815_v3 }
 0x3cd   : > { %v7482_v15 = vpop.eup %7481  ;;  %5833 = vst [vmem:[%s10346_s26 + $0x8] sm:$0xff] %v5825_v62 }
 0x3ce   : > { %7524 = shalt.err (!%p7521_p5)
}
 0x3cf   : > { %s7525_s19 = scalar_lea.hbm %s10339_s24, 1024  ;;  %s7529_s23 = scalar_lea.hbm %s10451_s8, 2048 }
 0x3d0   : > { %p7526_p6 = scmp.ne.s32.totalorder %s10339_s24, %s7525_s19  ;;  %p7530_p10 = scmp.lt.u32.totalorder %s10339_s24, %s10451_s8 }
 0x3d1   : > { %p7531_p11 = scmp.lt.u32.totalorder %s7529_s23, %s7525_s19  ;;  %p7533_p13 = scmp.lt.u32.totalorder %s7525_s19, %s10339_s24 }
 0x3d2   : > { %p7527_p7 = pnand %p7526_p6, %p7721_p4 }
 0x3d3   : > { %p7532_p12 = por %p7531_p11, %p7530_p10 }
 0x3d4   : > { %p7528_p9 = pneg %p7527_p7 }
 0x3d5   : > { %p7534_p0 = por %p7533_p13, %p7532_p12 }
 0x3d7   : > { %p7535_p1 = pnand %p7534_p0, %p7528_p9 }
 0x3d9   : > { %7538 = shalt.err (!%p7535_p1)
}
 0x3da   : > { %s7634_s12 = smov 256   ;;  %s10516_s16 = smov 16   ;;  %v7484_v40 = vpop.eup %7483  ;;  %v5826_v52 = vmul.f32 %v7482_v15, %v7478_v42 }
 0x3db   : > { %s10517_s0 = scalar_lea.sflag [#allocation5], %s10294_s25  ;;  %v7486_v56 = vpop.eup %7485  ;;  %v5827_v39 = vmul.f32 %v7484_v40, %v7480_v0  ;;  %s10518_s11 = sshll.u32 %s7613_s30, 10 }
 0x3dc   : > { %7301 = dma.vmem_to_hbm [thread:$0]  (%p7721_p4), %s10341_s21, 1024, %s10339_s24, %s10517_s0, %s7634_s12, %s7634_s12, %s10516_s16   ;;  %v7488_v12 = vpop.eup %7487 }
 0x3dd   : > { %5834 = vst [vmem:[%s10346_s26 + $0x10] sm:$0xff] %v5826_v52  ;;  %v7490_v18 = vpop.eup %7489  ;;  %5835 = vst [vmem:[%s10346_s26 + $0x18] sm:$0xff] %v5827_v39  ;;  %v5828_v36 = vmul.f32 %v7488_v12, %v7486_v56  ;;  %s5870_s0 = sshll.u32 %s10346_s26, 4  ;;  %s10388_s20 = scalar_lea.hbm %s10450_s7, %s10518_s11  ;;  %s10390_s0 = int_to_ptr.vmem [resolvable:$true] %s5870_s0 }
 0x3de   : > { %v7492_v5 = vpop.eup %7491  ;;  %s5849_s19 = scalar_lea.sflag [#allocation3], %s10294_s25  ;;  %s7539_s22 = scalar_lea.vmem %s10390_s0, 1024 }
 0x3df   : > { %v7494_v43 = vpop.eup %7493  ;;  %5836 = vst [vmem:[%s10346_s26 + $0x20] sm:$0xff] %v5828_v36  ;;  %p7540_p2 = scmp.ne.s32.totalorder %s10390_s0, %s7539_s22  ;;  %s7635_s23 = smov [#allocation2]  }
 0x3e0   : > { %v7496_v61 = vpop.eup %7495  ;;  %s7543_s30 = sshll.u32 %s7635_s23, 4  ;;  %s7544_s30 = int_to_ptr.vmem [resolvable:$false] %s7543_s30 }
 0x3e1   : > { %v7498_v34 = vpop.eup %7497  ;;  %v5829_v8 = vmul.f32 %v7496_v61, %v7490_v18  ;;  %p7541_p3 = pnand %p7540_p2, %p7721_p4  ;;  %s7545_s14 = scalar_lea.vmem %s7544_s30, 2048 }
 0x3e2   : > { %v7500_v22 = vpop.eup %7499  ;;  %v5830_v48 = vmul.f32 %v7498_v34, %v7492_v5  ;;  %p7546_p6 = scmp.lt.s32.totalorder %s10390_s0, %s7544_s30  ;;  %p7547_p7 = scmp.lt.s32.totalorder %s7545_s14, %s7539_s22 }
 0x3e3   : > { %5837 = vst [vmem:[%s10346_s26 + $0x28] sm:$0xff] %v5829_v8  ;;  %v5831_v37 = vmul.f32 %v7500_v22, %v7494_v43  ;;  %p7542_p5 = pneg %p7541_p3 }
 0x3e4   : > { %5838 = vst [vmem:[%s10346_s26 + $0x30] sm:$0xff] %v5830_v48  ;;  %p7548_p9 = por %p7547_p7, %p7546_p6 }
 0x3e5   : > { %5839 = vst [vmem:[%s10346_s26 + $0x38] sm:$0xff] %v5831_v37 }
 0x3e6   : > { %p7549_p10 = pnand %p7548_p9, %p7542_p5 }
 0x3e8   : > { %7552 = shalt.err (!%p7549_p10)
}
 0x3e9   : > { %s7553_s26 = scalar_lea.hbm %s10388_s20, 1024  ;;  %s7557_s24 = scalar_lea.hbm %s10450_s7, 2048 }
 0x3ea   : > { %p7554_p11 = scmp.ne.s32.totalorder %s10388_s20, %s7553_s26  ;;  %p7558_p0 = scmp.lt.u32.totalorder %s10388_s20, %s10450_s7 }
 0x3eb   : > { %p7559_p1 = scmp.lt.u32.totalorder %s7557_s24, %s7553_s26  ;;  %p7561_p3 = scmp.lt.u32.totalorder %s7553_s26, %s10388_s20 }
 0x3ec   : > { %p7555_p12 = pnand %p7554_p11, %p7721_p4 }
 0x3ed   : > { %p7560_p2 = por %p7559_p1, %p7558_p0 }
 0x3ee   : > { %p7556_p13 = pneg %p7555_p12 }
 0x3ef   : > { %p7562_p5 = por %p7561_p3, %p7560_p2 }
 0x3f1   : > { %p7563_p6 = pnand %p7562_p5, %p7556_p13 }
 0x3f3   : > { %7566 = shalt.err (!%p7563_p6)
}
 0x3f4   : > { %7300 = dma.vmem_to_hbm [thread:$0]  (%p7721_p4), %s10390_s0, 1024, %s10388_s20, %s5849_s19, %s7634_s12, %s7634_s12, %s10516_s16  }
 0x3f5 PF: > { %p7311_p7 = scmp.ge.s32.totalorder %s7621_s10, 2  ;;  %s5904_s22 = sand.u32 1, %s7601_s27  }
 0x3f6   : > { %s5905_s14 = scalar_lea.sflag [#allocation3], %s5904_s22 }
 0x3f7   : > { %p7305_p9 = pnand %p7311_p7, %p7728_p8 }
 0x3f9   : > { %7592 = dma.done.wait (!%p7305_p9), %s5905_s14, 1024  }
 0x3fa   : > { %7594 = vsyncadd (!%p7305_p9), %s5905_s14, 4294966272  ;;  %s5914_s15 = scalar_lea.sflag [#allocation5], %s5904_s22 }
 0x3fb   : > { %7596 = dma.done.wait (!%p7305_p9), %s5914_s15, 1024  }
 0x3fc   : > { %7598 = vsyncadd (!%p7305_p9), %s5914_s15, 4294966272  ;;  %s25_s10 = sadd.s32 1, %s7621_s10   ;;  %s10519_s27 = smov %s7605_s28 }
 0x3fd   : > { %p22_p10 = scmp.ge.s32.totalorder %s25_s10, 4   ;;  %s10520_s28 = smov %s7609_s29 }
 0x3fe   : > { %s10521_s29 = smov %s7734_s18  ;;  %s10522_s30 = smov %s7617_s9 }
 0x3ff   : > { %s10523_s9 = smov %s10525_s13  ;;  %24 = sbr.rel (!%p22_p10) target bundleno = 8 (0x8), region = 139 }
 0x406   :  { %5919 = vsyncpa [#allocation3], 1 }
 0x407   :  { %5921 = vsyncpa [#allocation3 + $0x1], 1 }
 0x408   :  { %5922 = vsyncpa [#allocation5], 1 }
 0x409   :  { %5924 = vsyncpa [#allocation5 + $0x1], 1 }

</bundles_post_ra>
